<compile_context>
chip_gen: v7x
topology: tpu7x:2x2x1
jax: 0.10.0
libtpu: 0.0.40
codegen_flags: <defaults>
</compile_context>

<pallas_src>
import functools

import jax
import jax.numpy as jnp
import numpy as np
from jax.experimental import pallas as pl
from jax.experimental.pallas import tpu as pltpu


def _round_up(x, m):
    return (x + m - 1) // m * m


@functools.partial(jax.jit, static_argnames=("pool_size", "out_dtype"))
def conv_block_forward(x_nchw, conv1_w, bn1_gamma, bn1_beta,
                       pool_size=(2, 2), out_dtype=jnp.float32):
    """Reproduces ConvBlock.forward(x, pool_size=(2,2), pool_type='avg')."""
    assert pool_size == (2, 2), "only the default pool_size=(2,2) path is kernelized"
    N, Cin, H, W = x_nchw.shape
    Cout = conv1_w.shape[0]
    assert H % 2 == 0 and W % 2 == 0, "2x2 avg-pool path assumes even H, W"
    Hp, Wp = H // 2, W // 2
    HW = H * W
    K = 9 * Cin                                   # im2col contraction depth
    Cp = _round_up(Cout, 128)                     # lane-dense channel dim
    eps = 1e-5

    # ------------- glue: one transpose+cast fusion (padding is done in-kernel) -----
    x_nhwc = jnp.transpose(x_nchw, (0, 2, 3, 1)).astype(jnp.bfloat16)       # (N,H,W,Cin)
    # (Cout,Cin,3,3) -> (kh,kw,Cin,Cout) -> (9*Cin, Cp), zero-padded channels, bf16.
    w_flat = jnp.transpose(conv1_w, (2, 3, 1, 0)).reshape(K, Cout)
    w_flat = jnp.pad(w_flat, ((0, 0), (0, Cp - Cout))).astype(jnp.bfloat16)

    def _im2col(x_blk, xpad_scr, patch_scr):
        """x_blk (H,W,Cin) bf16 -> (HW, 9*Cin) bf16 patch matrix (stays bf16)."""
        # In-kernel 'same' zero padding. The scratch is fully rewritten every grid
        # step (no cross-step persistence assumed -> megacore safe).
        xpad_scr[...] = jnp.zeros_like(xpad_scr)
        xpad_scr[1:H + 1, 1:W + 1, :] = x_blk
        for kw in range(3):                        # 3 sublane-shifted loads (hoisted)
            xkw = xpad_scr[:, kw:kw + W, :]        # (H+2, W, Cin)
            for kh in range(3):                    # leading-dim slices: free
                t = kh * 3 + kw                    # matches (kh, kw, ci) weight layout
                patch_scr[:, t * Cin:(t + 1) * Cin] = xkw[kh:kh + H].reshape(HW, Cin)
        return patch_scr[...]

    # ------------- pass 1: conv (one matmul) -> per-batch BN partial sums ----------
    def conv_stats_kernel(x_ref, w_ref, sum_ref, sumsq_ref, xpad_scr, patch_scr):
        patches = _im2col(x_ref[0], xpad_scr, patch_scr)                    # (HW, K)
        acc = jnp.dot(patches, w_ref[...],
                      preferred_element_type=jnp.float32)                  # (HW, Cp) f32
        sum_ref[0] = jnp.sum(acc, axis=0, keepdims=True)
        sumsq_ref[0] = jnp.sum(acc * acc, axis=0, keepdims=True)

    psum, psumsq = pl.pallas_call(
        conv_stats_kernel,
        grid=(N,),
        in_specs=[
            pl.BlockSpec((1, H, W, Cin), lambda n: (n, 0, 0, 0)),
            pl.BlockSpec((K, Cp), lambda n: (0, 0)),
        ],
        out_specs=(
            pl.BlockSpec((1, 1, Cp), lambda n: (n, 0, 0)),   # per-n partials
            pl.BlockSpec((1, 1, Cp), lambda n: (n, 0, 0)),
        ),
        out_shape=(
            jax.ShapeDtypeStruct((N, 1, Cp), jnp.float32),
            jax.ShapeDtypeStruct((N, 1, Cp), jnp.float32),
        ),
        scratch_shapes=[
            pltpu.VMEM((H + 2, W + 2, Cin), jnp.bfloat16),   # padded input tile
            pltpu.VMEM((HW, K), jnp.bfloat16),               # im2col patch matrix
        ],
        compiler_params=pltpu.CompilerParams(dimension_semantics=("parallel",)),
    )(x_nhwc, w_flat)

    # ------- glue: fold training-mode BN (batch stats) into per-channel scale/shift
    count = jnp.float32(N * HW)
    mean = jnp.sum(psum, axis=0) / count                          # (1, Cp)
    var = jnp.maximum(jnp.sum(psumsq, axis=0) / count - mean * mean, 0.0)
    gamma_p = jnp.pad(bn1_gamma, (0, Cp - Cout))[None, :]
    beta_p = jnp.pad(bn1_beta, (0, Cp - Cout))[None, :]
    scale = gamma_p * jax.lax.rsqrt(var + eps)                    # (1, Cp) f32
    shift = beta_p - mean * scale                                 # (1, Cp) f32

    # ------------- pass 2: recompute conv + BN affine + ReLU + 2x2 avg-pool --------
    def conv_bn_relu_pool_kernel(x_ref, w_ref, scale_ref, shift_ref, o_ref,
                                 xpad_scr, patch_scr, pool_scr):
        patches = _im2col(x_ref[0], xpad_scr, patch_scr)                    # (HW, K)
        y = jnp.dot(patches, w_ref[...],
                    preferred_element_type=jnp.float32)                    # (HW, Cp)
        # BN affine + ReLU in f32 (the exact values pass 1 computed stats from;
        # f32 VPU math is also the safe choice on v5e, which has no bf16 VALU).
        y = jnp.maximum(y * scale_ref[...] + shift_ref[...], 0.0)
        # H-pool: rows are ordered h*W + w, so H-pairs are free leading-dim slices.
        y4 = y.reshape(Hp, 2, W, Cp)
        th = y4[:, 0] + y4[:, 1]                                            # (Hp, W, Cp)
        # W-pool: adjacent rows of the (Hp*W, Cp) view; pick even/odd rows with a
        # stride-2 VMEM read so no strided-slice epilogue is left to XLA.
        pool_scr[...] = th.reshape(Hp * W, Cp)
        even = pool_scr[pl.ds(0, Hp * Wp, stride=2), :]                     # (Hp*Wp, Cp)
        odd = pool_scr[pl.ds(1, Hp * Wp, stride=2), :]
        pooled = 0.25 * (even + odd)
        o_ref[0] = pooled.reshape(Hp, Wp, Cp).astype(o_ref.dtype)

    pooled_padded = pl.pallas_call(
        conv_bn_relu_pool_kernel,
        grid=(N,),
        in_specs=[
            pl.BlockSpec((1, H, W, Cin), lambda n: (n, 0, 0, 0)),
            pl.BlockSpec((K, Cp), lambda n: (0, 0)),
            pl.BlockSpec((1, Cp), lambda n: (0, 0)),
            pl.BlockSpec((1, Cp), lambda n: (0, 0)),
        ],
        out_specs=pl.BlockSpec((1, Hp, Wp, Cp), lambda n: (n, 0, 0, 0)),
        out_shape=jax.ShapeDtypeStruct((N, Hp, Wp, Cp), out_dtype),
        scratch_shapes=[
            pltpu.VMEM((H + 2, W + 2, Cin), jnp.bfloat16),   # padded input tile
            pltpu.VMEM((HW, K), jnp.bfloat16),               # im2col patch matrix
            pltpu.VMEM((Hp * W, Cp), jnp.float32),           # H-pooled rows for W-pool
        ],
        compiler_params=pltpu.CompilerParams(dimension_semantics=("parallel",)),
    )(x_nhwc, w_flat, scale, shift)

    # ------------- epilogue: drop channel padding, back to NCHW --------------------
    pooled = pooled_padded[..., :Cout]                           # (N, Hp, Wp, Cout)
    return jnp.transpose(pooled, (0, 3, 1, 2))                   # (N, Cout, Hp, Wp)


def _reference(x_nchw, conv1_w, gamma, beta, pool_size=(2, 2)):
    """Pure-JAX f32 reference mirroring the PyTorch forward (training-mode BN)."""
    eps = 1e-5
    y = jax.lax.conv_general_dilated(
        x_nchw, conv1_w, window_strides=(1, 1), padding="SAME",
        dimension_numbers=("NCHW", "OIHW", "NCHW"))
    mean = y.mean(axis=(0, 2, 3))
    var = y.var(axis=(0, 2, 3))
    y = (y - mean[None, :, None, None]) * jax.lax.rsqrt(var + eps)[None, :, None, None]
    y = y * gamma[None, :, None, None] + beta[None, :, None, None]
    y = jnp.maximum(y, 0.0)
    N, C, H, W = y.shape
    ph, pw = pool_size
    return y.reshape(N, C, H // ph, ph, W // pw, pw).mean(axis=(3, 5))


if __name__ == "__main__":
    # Small, module-consistent shapes.
    N, Cin, Cout, H, W = 2, 4, 8, 16, 16

    key = jax.random.PRNGKey(0)
    kx, kw = jax.random.split(key)

    # Input (NCHW, as PyTorch).
    x = jax.random.normal(kx, (N, Cin, H, W), dtype=jnp.float32)

    # conv1 weight: xavier_uniform_, shape (Cout, Cin, 3, 3); bias=False.
    fan_in, fan_out = Cin * 9, Cout * 9
    bound = float(np.sqrt(6.0 / (fan_in + fan_out)))
    conv1_w = jax.random.uniform(kw, (Cout, Cin, 3, 3), jnp.float32, -bound, bound)

    # bn1: weight=1, bias=0 (init_bn).
    gamma = jnp.ones((Cout,), jnp.float32)
    beta = jnp.zeros((Cout,), jnp.float32)

    out = jax.block_until_ready(
        conv_block_forward(x, conv1_w, gamma, beta, pool_size=(2, 2)))
    ref = jax.block_until_ready(_reference(x, conv1_w, gamma, beta, (2, 2)))

    # bf16 MXU operands vs. an all-f32 reference -> loose tolerance.
    np.testing.assert_allclose(np.asarray(out), np.asarray(ref), rtol=5e-2, atol=5e-2)

    print("KERNEL_OK")
</pallas_src>

<mosaic_0001>
module attributes {stable_mosaic.version = 11 : i64} {
  func.func @conv_stats_kernel(%arg0: i32, %arg1: memref<1x16x16x4xbf16, #tpu.memory_space<vmem>>, %arg2: memref<36x128xbf16, #tpu.memory_space<vmem>>, %arg3: memref<1x1x128xf32, #tpu.memory_space<vmem>>, %arg4: memref<1x1x128xf32, #tpu.memory_space<vmem>>, %arg5: memref<18x18x4xbf16, #tpu.memory_space<vmem>>, %arg6: memref<256x36xbf16, #tpu.memory_space<vmem>>) attributes {dimension_semantics = [#tpu.dimension_semantics<parallel>], iteration_bounds = array<i64: 2>, scalar_prefetch = 0 : i64, scratch_operands = 2 : i64, tpu.core_type = #tpu.core_type<tc>, window_params = [{transform_indices = @transform_0, window_bounds = array<i64: 1, 16, 16, 4>}, {pipeline_mode = #tpu.pipeline_mode<synchronous>, transform_indices = @transform_1, window_bounds = array<i64: 36, 128>}, {transform_indices = @transform_2, window_bounds = array<i64: 1, 1, 128>}, {transform_indices = @transform_3, window_bounds = array<i64: 1, 1, 128>}]} {
    %c0 = arith.constant 0 : index
    %c0_0 = arith.constant 0 : index
    %c0_1 = arith.constant 0 : index
    %c0_2 = arith.constant 0 : index
    %0 = vector.load %arg1[%c0, %c0_0, %c0_1, %c0_2] : memref<1x16x16x4xbf16, #tpu.memory_space<vmem>>, vector<1x16x16x4xbf16>
    %1 = vector.shape_cast %0 : vector<1x16x16x4xbf16> to vector<16x16x4xbf16>
    %cst = arith.constant 0.000000e+00 : bf16
    %2 = vector.broadcast %cst : bf16 to vector<18x18x4xbf16>
    %c0_3 = arith.constant 0 : index
    %c0_4 = arith.constant 0 : index
    %c0_5 = arith.constant 0 : index
    %3 = vector.load %arg5[%c0_3, %c0_4, %c0_5] : memref<18x18x4xbf16, #tpu.memory_space<vmem>>, vector<18x18x4xbf16>
    tpu.vector_store %arg5[%c0_3, %c0_4, %c0_5], %2 {strides = array<i32>} : memref<18x18x4xbf16, #tpu.memory_space<vmem>>, vector<18x18x4xbf16>,
    %c1 = arith.constant 1 : index
    %c1_6 = arith.constant 1 : index
    %c0_7 = arith.constant 0 : index
    %4 = vector.load %arg5[%c1, %c1_6, %c0_7] : memref<18x18x4xbf16, #tpu.memory_space<vmem>>, vector<16x16x4xbf16>
    tpu.vector_store %arg5[%c1, %c1_6, %c0_7], %1 {strides = array<i32>} : memref<18x18x4xbf16, #tpu.memory_space<vmem>>, vector<16x16x4xbf16>,
    %c0_8 = arith.constant 0 : index
    %c0_9 = arith.constant 0 : index
    %c0_10 = arith.constant 0 : index
    %5 = vector.load %arg5[%c0_8, %c0_9, %c0_10] : memref<18x18x4xbf16, #tpu.memory_space<vmem>>, vector<18x16x4xbf16>
    %6 = vector.extract_strided_slice %5 {offsets = [0, 0, 0], sizes = [16, 16, 4], strides = [1, 1, 1]} : vector<18x16x4xbf16> to vector<16x16x4xbf16>
    %7 = vector.shape_cast %6 : vector<16x16x4xbf16> to vector<256x4xbf16>
    %c0_11 = arith.constant 0 : index
    %c0_12 = arith.constant 0 : index
    %8 = vector.load %arg6[%c0_11, %c0_12] : memref<256x36xbf16, #tpu.memory_space<vmem>>, vector<256x4xbf16>
    tpu.vector_store %arg6[%c0_11, %c0_12], %7 {strides = array<i32>} : memref<256x36xbf16, #tpu.memory_space<vmem>>, vector<256x4xbf16>,
    %9 = vector.extract_strided_slice %5 {offsets = [1, 0, 0], sizes = [16, 16, 4], strides = [1, 1, 1]} : vector<18x16x4xbf16> to vector<16x16x4xbf16>
    %10 = vector.shape_cast %9 : vector<16x16x4xbf16> to vector<256x4xbf16>
    %c0_13 = arith.constant 0 : index
    %c12 = arith.constant 12 : index
    %11 = vector.load %arg6[%c0_13, %c12] : memref<256x36xbf16, #tpu.memory_space<vmem>>, vector<256x4xbf16>
    tpu.vector_store %arg6[%c0_13, %c12], %10 {strides = array<i32>} : memref<256x36xbf16, #tpu.memory_space<vmem>>, vector<256x4xbf16>,
    %12 = vector.extract_strided_slice %5 {offsets = [2, 0, 0], sizes = [16, 16, 4], strides = [1, 1, 1]} : vector<18x16x4xbf16> to vector<16x16x4xbf16>
    %13 = vector.shape_cast %12 : vector<16x16x4xbf16> to vector<256x4xbf16>
    %c0_14 = arith.constant 0 : index
    %c24 = arith.constant 24 : index
    %14 = vector.load %arg6[%c0_14, %c24] : memref<256x36xbf16, #tpu.memory_space<vmem>>, vector<256x4xbf16>
    tpu.vector_store %arg6[%c0_14, %c24], %13 {strides = array<i32>} : memref<256x36xbf16, #tpu.memory_space<vmem>>, vector<256x4xbf16>,
    %c0_15 = arith.constant 0 : index
    %c1_16 = arith.constant 1 : index
    %c0_17 = arith.constant 0 : index
    %15 = vector.load %arg5[%c0_15, %c1_16, %c0_17] : memref<18x18x4xbf16, #tpu.memory_space<vmem>>, vector<18x16x4xbf16>
    %16 = vector.extract_strided_slice %15 {offsets = [0, 0, 0], sizes = [16, 16, 4], strides = [1, 1, 1]} : vector<18x16x4xbf16> to vector<16x16x4xbf16>
    %17 = vector.shape_cast %16 : vector<16x16x4xbf16> to vector<256x4xbf16>
    %c0_18 = arith.constant 0 : index
    %c4 = arith.constant 4 : index
    %18 = vector.load %arg6[%c0_18, %c4] : memref<256x36xbf16, #tpu.memory_space<vmem>>, vector<256x4xbf16>
    tpu.vector_store %arg6[%c0_18, %c4], %17 {strides = array<i32>} : memref<256x36xbf16, #tpu.memory_space<vmem>>, vector<256x4xbf16>,
    %19 = vector.extract_strided_slice %15 {offsets = [1, 0, 0], sizes = [16, 16, 4], strides = [1, 1, 1]} : vector<18x16x4xbf16> to vector<16x16x4xbf16>
    %20 = vector.shape_cast %19 : vector<16x16x4xbf16> to vector<256x4xbf16>
    %c0_19 = arith.constant 0 : index
    %c16 = arith.constant 16 : index
    %21 = vector.load %arg6[%c0_19, %c16] : memref<256x36xbf16, #tpu.memory_space<vmem>>, vector<256x4xbf16>
    tpu.vector_store %arg6[%c0_19, %c16], %20 {strides = array<i32>} : memref<256x36xbf16, #tpu.memory_space<vmem>>, vector<256x4xbf16>,
    %22 = vector.extract_strided_slice %15 {offsets = [2, 0, 0], sizes = [16, 16, 4], strides = [1, 1, 1]} : vector<18x16x4xbf16> to vector<16x16x4xbf16>
    %23 = vector.shape_cast %22 : vector<16x16x4xbf16> to vector<256x4xbf16>
    %c0_20 = arith.constant 0 : index
    %c28 = arith.constant 28 : index
    %24 = vector.load %arg6[%c0_20, %c28] : memref<256x36xbf16, #tpu.memory_space<vmem>>, vector<256x4xbf16>
    tpu.vector_store %arg6[%c0_20, %c28], %23 {strides = array<i32>} : memref<256x36xbf16, #tpu.memory_space<vmem>>, vector<256x4xbf16>,
    %c0_21 = arith.constant 0 : index
    %c2 = arith.constant 2 : index
    %c0_22 = arith.constant 0 : index
    %25 = vector.load %arg5[%c0_21, %c2, %c0_22] : memref<18x18x4xbf16, #tpu.memory_space<vmem>>, vector<18x16x4xbf16>
    %26 = vector.extract_strided_slice %25 {offsets = [0, 0, 0], sizes = [16, 16, 4], strides = [1, 1, 1]} : vector<18x16x4xbf16> to vector<16x16x4xbf16>
    %27 = vector.shape_cast %26 : vector<16x16x4xbf16> to vector<256x4xbf16>
    %c0_23 = arith.constant 0 : index
    %c8 = arith.constant 8 : index
    %28 = vector.load %arg6[%c0_23, %c8] : memref<256x36xbf16, #tpu.memory_space<vmem>>, vector<256x4xbf16>
    tpu.vector_store %arg6[%c0_23, %c8], %27 {strides = array<i32>} : memref<256x36xbf16, #tpu.memory_space<vmem>>, vector<256x4xbf16>,
    %29 = vector.extract_strided_slice %25 {offsets = [1, 0, 0], sizes = [16, 16, 4], strides = [1, 1, 1]} : vector<18x16x4xbf16> to vector<16x16x4xbf16>
    %30 = vector.shape_cast %29 : vector<16x16x4xbf16> to vector<256x4xbf16>
    %c0_24 = arith.constant 0 : index
    %c20 = arith.constant 20 : index
    %31 = vector.load %arg6[%c0_24, %c20] : memref<256x36xbf16, #tpu.memory_space<vmem>>, vector<256x4xbf16>
    tpu.vector_store %arg6[%c0_24, %c20], %30 {strides = array<i32>} : memref<256x36xbf16, #tpu.memory_space<vmem>>, vector<256x4xbf16>,
    %32 = vector.extract_strided_slice %25 {offsets = [2, 0, 0], sizes = [16, 16, 4], strides = [1, 1, 1]} : vector<18x16x4xbf16> to vector<16x16x4xbf16>
    %33 = vector.shape_cast %32 : vector<16x16x4xbf16> to vector<256x4xbf16>
    %c0_25 = arith.constant 0 : index
    %c32 = arith.constant 32 : index
    %34 = vector.load %arg6[%c0_25, %c32] : memref<256x36xbf16, #tpu.memory_space<vmem>>, vector<256x4xbf16>
    tpu.vector_store %arg6[%c0_25, %c32], %33 {strides = array<i32>} : memref<256x36xbf16, #tpu.memory_space<vmem>>, vector<256x4xbf16>,
    %c0_26 = arith.constant 0 : index
    %c0_27 = arith.constant 0 : index
    %35 = vector.load %arg6[%c0_26, %c0_27] : memref<256x36xbf16, #tpu.memory_space<vmem>>, vector<256x36xbf16>
    %c0_28 = arith.constant 0 : index
    %c0_29 = arith.constant 0 : index
    %36 = vector.load %arg2[%c0_28, %c0_29] : memref<36x128xbf16, #tpu.memory_space<vmem>>, vector<36x128xbf16>
    %cst_30 = arith.constant dense<0.000000e+00> : vector<256x128xf32>
    %37 = tpu.matmul %35, %36, %cst_30 {dimension_numbers = #tpu.dot_dimension_numbers<[1], [0], [0], [1], [0, 0, 1, 1], [], []>} : vector<256x36xbf16>, vector<36x128xbf16>, vector<256x128xf32> -> vector<256x128xf32>
    %cst_31 = arith.constant dense<0.000000e+00> : vector<128xf32>
    %38 = vector.multi_reduction <add>, %37, %cst_31 [0] : vector<256x128xf32> to vector<128xf32>
    %39 = vector.shape_cast %38 : vector<128xf32> to vector<1x128xf32>
    %c0_32 = arith.constant 0 : index
    %c0_33 = arith.constant 0 : index
    %c0_34 = arith.constant 0 : index
    %40 = vector.load %arg3[%c0_32, %c0_33, %c0_34] : memref<1x1x128xf32, #tpu.memory_space<vmem>>, vector<1x1x128xf32>
    %41 = vector.shape_cast %40 : vector<1x1x128xf32> to vector<1x128xf32>
    %42 = vector.shape_cast %39 : vector<1x128xf32> to vector<1x1x128xf32>
    tpu.vector_store %arg3[%c0_32, %c0_33, %c0_34], %42 {strides = array<i32>} : memref<1x1x128xf32, #tpu.memory_space<vmem>>, vector<1x1x128xf32>,
    %43 = arith.mulf %37, %37 : vector<256x128xf32>
    %cst_35 = arith.constant dense<0.000000e+00> : vector<128xf32>
    %44 = vector.multi_reduction <add>, %43, %cst_35 [0] : vector<256x128xf32> to vector<128xf32>
    %45 = vector.shape_cast %44 : vector<128xf32> to vector<1x128xf32>
    %c0_36 = arith.constant 0 : index
    %c0_37 = arith.constant 0 : index
    %c0_38 = arith.constant 0 : index
    %46 = vector.load %arg4[%c0_36, %c0_37, %c0_38] : memref<1x1x128xf32, #tpu.memory_space<vmem>>, vector<1x1x128xf32>
    %47 = vector.shape_cast %46 : vector<1x1x128xf32> to vector<1x128xf32>
    %48 = vector.shape_cast %45 : vector<1x128xf32> to vector<1x1x128xf32>
    tpu.vector_store %arg4[%c0_36, %c0_37, %c0_38], %48 {strides = array<i32>} : memref<1x1x128xf32, #tpu.memory_space<vmem>>, vector<1x1x128xf32>,
    return
  }
  func.func @transform_0(%arg0: i32) -> (i32, i32, i32, i32) {
    %c0_i32 = arith.constant 0 : i32
    %c0_i32_0 = arith.constant 0 : i32
    %c0_i32_1 = arith.constant 0 : i32
    %c0_i32_2 = arith.constant 0 : i32
    return %arg0, %c0_i32, %c0_i32_0, %c0_i32_1 : i32, i32, i32, i32
  }
  func.func @transform_1(%arg0: i32) -> (i32, i32) {
    %c0_i32 = arith.constant 0 : i32
    %c0_i32_0 = arith.constant 0 : i32
    %c0_i32_1 = arith.constant 0 : i32
    return %c0_i32, %c0_i32_0 : i32, i32
  }
  func.func @transform_2(%arg0: i32) -> (i32, i32, i32) {
    %c0_i32 = arith.constant 0 : i32
    %c0_i32_0 = arith.constant 0 : i32
    %c0_i32_1 = arith.constant 0 : i32
    return %arg0, %c0_i32, %c0_i32_0 : i32, i32, i32
  }
  func.func @transform_3(%arg0: i32) -> (i32, i32, i32) {
    %c0_i32 = arith.constant 0 : i32
    %c0_i32_0 = arith.constant 0 : i32
    %c0_i32_1 = arith.constant 0 : i32
    return %arg0, %c0_i32, %c0_i32_0 : i32, i32, i32
  }
}

module attributes {stable_mosaic.version = 11 : i64} {
  func.func @conv_bn_relu_pool_kernel(%arg0: i32, %arg1: memref<1x16x16x4xbf16, #tpu.memory_space<vmem>>, %arg2: memref<36x128xbf16, #tpu.memory_space<vmem>>, %arg3: memref<1x128xf32, #tpu.memory_space<vmem>>, %arg4: memref<1x128xf32, #tpu.memory_space<vmem>>, %arg5: memref<1x8x8x128xf32, #tpu.memory_space<vmem>>, %arg6: memref<18x18x4xbf16, #tpu.memory_space<vmem>>, %arg7: memref<256x36xbf16, #tpu.memory_space<vmem>>, %arg8: memref<128x128xf32, #tpu.memory_space<vmem>>) attributes {dimension_semantics = [#tpu.dimension_semantics<parallel>], iteration_bounds = array<i64: 2>, scalar_prefetch = 0 : i64, scratch_operands = 3 : i64, tpu.core_type = #tpu.core_type<tc>, window_params = [{transform_indices = @transform_0, window_bounds = array<i64: 1, 16, 16, 4>}, {pipeline_mode = #tpu.pipeline_mode<synchronous>, transform_indices = @transform_1, window_bounds = array<i64: 36, 128>}, {pipeline_mode = #tpu.pipeline_mode<synchronous>, transform_indices = @transform_2, window_bounds = array<i64: 1, 128>}, {pipeline_mode = #tpu.pipeline_mode<synchronous>, transform_indices = @transform_3, window_bounds = array<i64: 1, 128>}, {transform_indices = @transform_4, window_bounds = array<i64: 1, 8, 8, 128>}]} {
    %c0 = arith.constant 0 : index
    %c0_0 = arith.constant 0 : index
    %c0_1 = arith.constant 0 : index
    %c0_2 = arith.constant 0 : index
    %0 = vector.load %arg1[%c0, %c0_0, %c0_1, %c0_2] : memref<1x16x16x4xbf16, #tpu.memory_space<vmem>>, vector<1x16x16x4xbf16>
    %1 = vector.shape_cast %0 : vector<1x16x16x4xbf16> to vector<16x16x4xbf16>
    %cst = arith.constant 0.000000e+00 : bf16
    %2 = vector.broadcast %cst : bf16 to vector<18x18x4xbf16>
    %c0_3 = arith.constant 0 : index
    %c0_4 = arith.constant 0 : index
    %c0_5 = arith.constant 0 : index
    %3 = vector.load %arg6[%c0_3, %c0_4, %c0_5] : memref<18x18x4xbf16, #tpu.memory_space<vmem>>, vector<18x18x4xbf16>
    tpu.vector_store %arg6[%c0_3, %c0_4, %c0_5], %2 {strides = array<i32>} : memref<18x18x4xbf16, #tpu.memory_space<vmem>>, vector<18x18x4xbf16>,
    %c1 = arith.constant 1 : index
    %c1_6 = arith.constant 1 : index
    %c0_7 = arith.constant 0 : index
    %4 = vector.load %arg6[%c1, %c1_6, %c0_7] : memref<18x18x4xbf16, #tpu.memory_space<vmem>>, vector<16x16x4xbf16>
    tpu.vector_store %arg6[%c1, %c1_6, %c0_7], %1 {strides = array<i32>} : memref<18x18x4xbf16, #tpu.memory_space<vmem>>, vector<16x16x4xbf16>,
    %c0_8 = arith.constant 0 : index
    %c0_9 = arith.constant 0 : index
    %c0_10 = arith.constant 0 : index
    %5 = vector.load %arg6[%c0_8, %c0_9, %c0_10] : memref<18x18x4xbf16, #tpu.memory_space<vmem>>, vector<18x16x4xbf16>
    %6 = vector.extract_strided_slice %5 {offsets = [0, 0, 0], sizes = [16, 16, 4], strides = [1, 1, 1]} : vector<18x16x4xbf16> to vector<16x16x4xbf16>
    %7 = vector.shape_cast %6 : vector<16x16x4xbf16> to vector<256x4xbf16>
    %c0_11 = arith.constant 0 : index
    %c0_12 = arith.constant 0 : index
    %8 = vector.load %arg7[%c0_11, %c0_12] : memref<256x36xbf16, #tpu.memory_space<vmem>>, vector<256x4xbf16>
    tpu.vector_store %arg7[%c0_11, %c0_12], %7 {strides = array<i32>} : memref<256x36xbf16, #tpu.memory_space<vmem>>, vector<256x4xbf16>,
    %9 = vector.extract_strided_slice %5 {offsets = [1, 0, 0], sizes = [16, 16, 4], strides = [1, 1, 1]} : vector<18x16x4xbf16> to vector<16x16x4xbf16>
    %10 = vector.shape_cast %9 : vector<16x16x4xbf16> to vector<256x4xbf16>
    %c0_13 = arith.constant 0 : index
    %c12 = arith.constant 12 : index
    %11 = vector.load %arg7[%c0_13, %c12] : memref<256x36xbf16, #tpu.memory_space<vmem>>, vector<256x4xbf16>
    tpu.vector_store %arg7[%c0_13, %c12], %10 {strides = array<i32>} : memref<256x36xbf16, #tpu.memory_space<vmem>>, vector<256x4xbf16>,
    %12 = vector.extract_strided_slice %5 {offsets = [2, 0, 0], sizes = [16, 16, 4], strides = [1, 1, 1]} : vector<18x16x4xbf16> to vector<16x16x4xbf16>
    %13 = vector.shape_cast %12 : vector<16x16x4xbf16> to vector<256x4xbf16>
    %c0_14 = arith.constant 0 : index
    %c24 = arith.constant 24 : index
    %14 = vector.load %arg7[%c0_14, %c24] : memref<256x36xbf16, #tpu.memory_space<vmem>>, vector<256x4xbf16>
    tpu.vector_store %arg7[%c0_14, %c24], %13 {strides = array<i32>} : memref<256x36xbf16, #tpu.memory_space<vmem>>, vector<256x4xbf16>,
    %c0_15 = arith.constant 0 : index
    %c1_16 = arith.constant 1 : index
    %c0_17 = arith.constant 0 : index
    %15 = vector.load %arg6[%c0_15, %c1_16, %c0_17] : memref<18x18x4xbf16, #tpu.memory_space<vmem>>, vector<18x16x4xbf16>
    %16 = vector.extract_strided_slice %15 {offsets = [0, 0, 0], sizes = [16, 16, 4], strides = [1, 1, 1]} : vector<18x16x4xbf16> to vector<16x16x4xbf16>
    %17 = vector.shape_cast %16 : vector<16x16x4xbf16> to vector<256x4xbf16>
    %c0_18 = arith.constant 0 : index
    %c4 = arith.constant 4 : index
    %18 = vector.load %arg7[%c0_18, %c4] : memref<256x36xbf16, #tpu.memory_space<vmem>>, vector<256x4xbf16>
    tpu.vector_store %arg7[%c0_18, %c4], %17 {strides = array<i32>} : memref<256x36xbf16, #tpu.memory_space<vmem>>, vector<256x4xbf16>,
    %19 = vector.extract_strided_slice %15 {offsets = [1, 0, 0], sizes = [16, 16, 4], strides = [1, 1, 1]} : vector<18x16x4xbf16> to vector<16x16x4xbf16>
    %20 = vector.shape_cast %19 : vector<16x16x4xbf16> to vector<256x4xbf16>
    %c0_19 = arith.constant 0 : index
    %c16 = arith.constant 16 : index
    %21 = vector.load %arg7[%c0_19, %c16] : memref<256x36xbf16, #tpu.memory_space<vmem>>, vector<256x4xbf16>
    tpu.vector_store %arg7[%c0_19, %c16], %20 {strides = array<i32>} : memref<256x36xbf16, #tpu.memory_space<vmem>>, vector<256x4xbf16>,
    %22 = vector.extract_strided_slice %15 {offsets = [2, 0, 0], sizes = [16, 16, 4], strides = [1, 1, 1]} : vector<18x16x4xbf16> to vector<16x16x4xbf16>
    %23 = vector.shape_cast %22 : vector<16x16x4xbf16> to vector<256x4xbf16>
    %c0_20 = arith.constant 0 : index
    %c28 = arith.constant 28 : index
    %24 = vector.load %arg7[%c0_20, %c28] : memref<256x36xbf16, #tpu.memory_space<vmem>>, vector<256x4xbf16>
    tpu.vector_store %arg7[%c0_20, %c28], %23 {strides = array<i32>} : memref<256x36xbf16, #tpu.memory_space<vmem>>, vector<256x4xbf16>,
    %c0_21 = arith.constant 0 : index
    %c2 = arith.constant 2 : index
    %c0_22 = arith.constant 0 : index
    %25 = vector.load %arg6[%c0_21, %c2, %c0_22] : memref<18x18x4xbf16, #tpu.memory_space<vmem>>, vector<18x16x4xbf16>
    %26 = vector.extract_strided_slice %25 {offsets = [0, 0, 0], sizes = [16, 16, 4], strides = [1, 1, 1]} : vector<18x16x4xbf16> to vector<16x16x4xbf16>
    %27 = vector.shape_cast %26 : vector<16x16x4xbf16> to vector<256x4xbf16>
    %c0_23 = arith.constant 0 : index
    %c8 = arith.constant 8 : index
    %28 = vector.load %arg7[%c0_23, %c8] : memref<256x36xbf16, #tpu.memory_space<vmem>>, vector<256x4xbf16>
    tpu.vector_store %arg7[%c0_23, %c8], %27 {strides = array<i32>} : memref<256x36xbf16, #tpu.memory_space<vmem>>, vector<256x4xbf16>,
    %29 = vector.extract_strided_slice %25 {offsets = [1, 0, 0], sizes = [16, 16, 4], strides = [1, 1, 1]} : vector<18x16x4xbf16> to vector<16x16x4xbf16>
    %30 = vector.shape_cast %29 : vector<16x16x4xbf16> to vector<256x4xbf16>
    %c0_24 = arith.constant 0 : index
    %c20 = arith.constant 20 : index
    %31 = vector.load %arg7[%c0_24, %c20] : memref<256x36xbf16, #tpu.memory_space<vmem>>, vector<256x4xbf16>
    tpu.vector_store %arg7[%c0_24, %c20], %30 {strides = array<i32>} : memref<256x36xbf16, #tpu.memory_space<vmem>>, vector<256x4xbf16>,
    %32 = vector.extract_strided_slice %25 {offsets = [2, 0, 0], sizes = [16, 16, 4], strides = [1, 1, 1]} : vector<18x16x4xbf16> to vector<16x16x4xbf16>
    %33 = vector.shape_cast %32 : vector<16x16x4xbf16> to vector<256x4xbf16>
    %c0_25 = arith.constant 0 : index
    %c32 = arith.constant 32 : index
    %34 = vector.load %arg7[%c0_25, %c32] : memref<256x36xbf16, #tpu.memory_space<vmem>>, vector<256x4xbf16>
    tpu.vector_store %arg7[%c0_25, %c32], %33 {strides = array<i32>} : memref<256x36xbf16, #tpu.memory_space<vmem>>, vector<256x4xbf16>,
    %c0_26 = arith.constant 0 : index
    %c0_27 = arith.constant 0 : index
    %35 = vector.load %arg7[%c0_26, %c0_27] : memref<256x36xbf16, #tpu.memory_space<vmem>>, vector<256x36xbf16>
    %c0_28 = arith.constant 0 : index
    %c0_29 = arith.constant 0 : index
    %36 = vector.load %arg2[%c0_28, %c0_29] : memref<36x128xbf16, #tpu.memory_space<vmem>>, vector<36x128xbf16>
    %cst_30 = arith.constant dense<0.000000e+00> : vector<256x128xf32>
    %37 = tpu.matmul %35, %36, %cst_30 {dimension_numbers = #tpu.dot_dimension_numbers<[1], [0], [0], [1], [0, 0, 1, 1], [], []>} : vector<256x36xbf16>, vector<36x128xbf16>, vector<256x128xf32> -> vector<256x128xf32>
    %c0_31 = arith.constant 0 : index
    %c0_32 = arith.constant 0 : index
    %38 = vector.load %arg3[%c0_31, %c0_32] : memref<1x128xf32, #tpu.memory_space<vmem>>, vector<1x128xf32>
    %39 = vector.broadcast %38 : vector<1x128xf32> to vector<256x128xf32>
    %40 = arith.mulf %37, %39 : vector<256x128xf32>
    %c0_33 = arith.constant 0 : index
    %c0_34 = arith.constant 0 : index
    %41 = vector.load %arg4[%c0_33, %c0_34] : memref<1x128xf32, #tpu.memory_space<vmem>>, vector<1x128xf32>
    %42 = vector.broadcast %41 : vector<1x128xf32> to vector<256x128xf32>
    %43 = arith.addf %40, %42 : vector<256x128xf32>
    %cst_35 = arith.constant 0.000000e+00 : f32
    %44 = vector.broadcast %cst_35 : f32 to vector<256x128xf32>
    %45 = arith.maximumf %43, %44 : vector<256x128xf32>
    %46 = vector.shape_cast %45 : vector<256x128xf32> to vector<8x2x16x128xf32>
    %47 = vector.extract_strided_slice %46 {offsets = [0, 0, 0, 0], sizes = [8, 1, 16, 128], strides = [1, 1, 1, 1]} : vector<8x2x16x128xf32> to vector<8x1x16x128xf32>
    %48 = vector.shape_cast %47 : vector<8x1x16x128xf32> to vector<8x16x128xf32>
    %49 = vector.extract_strided_slice %46 {offsets = [0, 1, 0, 0], sizes = [8, 1, 16, 128], strides = [1, 1, 1, 1]} : vector<8x2x16x128xf32> to vector<8x1x16x128xf32>
    %50 = vector.shape_cast %49 : vector<8x1x16x128xf32> to vector<8x16x128xf32>
    %51 = arith.addf %48, %50 : vector<8x16x128xf32>
    %52 = vector.shape_cast %51 : vector<8x16x128xf32> to vector<128x128xf32>
    %c0_36 = arith.constant 0 : index
    %c0_37 = arith.constant 0 : index
    %53 = vector.load %arg8[%c0_36, %c0_37] : memref<128x128xf32, #tpu.memory_space<vmem>>, vector<128x128xf32>
    tpu.vector_store %arg8[%c0_36, %c0_37], %52 {strides = array<i32>} : memref<128x128xf32, #tpu.memory_space<vmem>>, vector<128x128xf32>,
    %c0_38 = arith.constant 0 : index
    %c0_39 = arith.constant 0 : index
    %54 = tpu.strided_load %arg8[%c0_38, %c0_39] {strides = array<i32: 2, 1>} : memref<128x128xf32, #tpu.memory_space<vmem>>, vector<64x128xf32>
    %c1_40 = arith.constant 1 : index
    %c0_41 = arith.constant 0 : index
    %55 = tpu.strided_load %arg8[%c1_40, %c0_41] {strides = array<i32: 2, 1>} : memref<128x128xf32, #tpu.memory_space<vmem>>, vector<64x128xf32>
    %56 = arith.addf %54, %55 : vector<64x128xf32>
    %cst_42 = arith.constant 2.500000e-01 : f32
    %57 = vector.broadcast %cst_42 : f32 to vector<64x128xf32>
    %58 = arith.mulf %57, %56 : vector<64x128xf32>
    %59 = vector.shape_cast %58 : vector<64x128xf32> to vector<8x8x128xf32>
    %c0_43 = arith.constant 0 : index
    %c0_44 = arith.constant 0 : index
    %c0_45 = arith.constant 0 : index
    %c0_46 = arith.constant 0 : index
    %60 = vector.load %arg5[%c0_43, %c0_44, %c0_45, %c0_46] : memref<1x8x8x128xf32, #tpu.memory_space<vmem>>, vector<1x8x8x128xf32>
    %61 = vector.shape_cast %60 : vector<1x8x8x128xf32> to vector<8x8x128xf32>
    %62 = vector.shape_cast %59 : vector<8x8x128xf32> to vector<1x8x8x128xf32>
    tpu.vector_store %arg5[%c0_43, %c0_44, %c0_45, %c0_46], %62 {strides = array<i32>} : memref<1x8x8x128xf32, #tpu.memory_space<vmem>>, vector<1x8x8x128xf32>,
    return
  }
  func.func @transform_0(%arg0: i32) -> (i32, i32, i32, i32) {
    %c0_i32 = arith.constant 0 : i32
    %c0_i32_0 = arith.constant 0 : i32
    %c0_i32_1 = arith.constant 0 : i32
    %c0_i32_2 = arith.constant 0 : i32
    return %arg0, %c0_i32, %c0_i32_0, %c0_i32_1 : i32, i32, i32, i32
  }
  func.func @transform_1(%arg0: i32) -> (i32, i32) {
    %c0_i32 = arith.constant 0 : i32
    %c0_i32_0 = arith.constant 0 : i32
    %c0_i32_1 = arith.constant 0 : i32
    return %c0_i32, %c0_i32_0 : i32, i32
  }
  func.func @transform_2(%arg0: i32) -> (i32, i32) {
    %c0_i32 = arith.constant 0 : i32
    %c0_i32_0 = arith.constant 0 : i32
    %c0_i32_1 = arith.constant 0 : i32
    return %c0_i32, %c0_i32_0 : i32, i32
  }
  func.func @transform_3(%arg0: i32) -> (i32, i32) {
    %c0_i32 = arith.constant 0 : i32
    %c0_i32_0 = arith.constant 0 : i32
    %c0_i32_1 = arith.constant 0 : i32
    return %c0_i32, %c0_i32_0 : i32, i32
  }
  func.func @transform_4(%arg0: i32) -> (i32, i32, i32, i32) {
    %c0_i32 = arith.constant 0 : i32
    %c0_i32_0 = arith.constant 0 : i32
    %c0_i32_1 = arith.constant 0 : i32
    %c0_i32_2 = arith.constant 0 : i32
    return %arg0, %c0_i32, %c0_i32_0, %c0_i32_1 : i32, i32, i32, i32
  }
}

</mosaic_0001>

<bundles_post_ra>
// kernel: conv_block_forward.3
= control target key start
LH: loop header
LB: loop body
LE: loop exit
PB: predicated region body
PF: predicated region fallthrough
CT: control target
= control target key end

     0   :  { %s2994_s15 = smov 0   ;;  %s4051_s0 = inlined_call_operand.vmem [shape: bf16[2,16,16,4], index: 0, kind: input, shape index: {}]   ;;  %s4052_s1 = inlined_call_operand.vmem [shape: bf16[36,128], index: 1, kind: input, shape index: {}]   ;;  %s4053_s2 = inlined_call_operand.vmem [shape: f32[1,128], index: 2, kind: input, shape index: {}]   ;;  %s4054_s3 = inlined_call_operand.vmem [shape: f32[1,128], index: 3, kind: input, shape index: {}]   ;;  %s4055_s4 = inlined_call_operand.vmem [shape: f32[2,8,8,128], index: 4, kind: output, shape index: {}]  }
   0x1 LB: > { %s2743_s16 = sadd.s32 4294967295, %s2958_s15   ;;  %p2747_p0 = scmp.ge.s32.totalorder %s2958_s15, 1  ;;  %s2958_s15 = sphi %s2994_s15, %s14_s15  }
   0x2   : > { %p162_p1 = scmp.lt.s32.totalorder %s2958_s15, 3 }
   0x4   : > { %p163_p2 = pnand %p2747_p0, %p162_p1 }
   0x5   : > { %vm231_vm0 = vcmask (!%p163_p2), 27648   ;;  %vm234_vm1 = vcmask (!%p163_p2), 24576   ;;  %v2960_v0 = vmov (!%p163_p2), 0   ;;  %p188_p3 = scmp.lt.s32.totalorder (!%p163_p2), %s2743_s16, 1  ;;  %vm1071_vm2 = vsmask.f32 (!%p163_p2), 3328 }
   0x6   : > { %166 = sbr.rel (%p163_p2) target bundleno = 673 (0x2a1), region = 36  ;;  %232 = vst.msk [vmem:[#allocation2] sm:$0xf] (!%p163_p2), %vm231_vm0, %v2960_v0  ;;  %233 = vst.msk [vmem:[#allocation2 + $0x4] sm:$0xf] (!%p163_p2), %vm231_vm0, %v2960_v0  ;;  %s2961_s21 = smov (!%p163_p2), 4  }
   0x7   : > { %235 = vst.msk [vmem:[#allocation2 + $0x8] sm:$0x1] (!%p163_p2), %vm234_vm1, %v2960_v0  ;;  %238 = vst.msk [vmem:[#allocation2 + $0x14] sm:$0x1] (!%p163_p2), %vm234_vm1, %v2960_v0  ;;  %vm1072_vm3 = vsmask.f32 (!%p163_p2), 7440 }
   0x8   : > { %236 = vst.msk [vmem:[#allocation2 + $0xc] sm:$0xf] (!%p163_p2), %vm231_vm0, %v2960_v0  ;;  %237 = vst.msk [vmem:[#allocation2 + $0x10] sm:$0xf] (!%p163_p2), %vm231_vm0, %v2960_v0  ;;  %vm287_vm4 = vsmask.f32 (!%p163_p2), 256 }
   0x9   : > { %239 = vst.msk [vmem:[#allocation2 + $0x18] sm:$0xf] (!%p163_p2), %vm231_vm0, %v2960_v0  ;;  %240 = vst.msk [vmem:[#allocation2 + $0x1c] sm:$0xf] (!%p163_p2), %vm231_vm0, %v2960_v0  ;;  %vm288_vm5 = vsmask.f32 (!%p163_p2), 4368 }
   0xa   : > { %241 = vst.msk [vmem:[#allocation2 + $0x20] sm:$0x1] (!%p163_p2), %vm234_vm1, %v2960_v0  ;;  %244 = vst.msk [vmem:[#allocation2 + $0x2c] sm:$0x1] (!%p163_p2), %vm234_vm1, %v2960_v0  ;;  %vm612_vm6 = vsmask.f32 (!%p163_p2), 7938 }
   0xb   : > { %242 = vst.msk [vmem:[#allocation2 + $0x24] sm:$0xf] (!%p163_p2), %vm231_vm0, %v2960_v0  ;;  %243 = vst.msk [vmem:[#allocation2 + $0x28] sm:$0xf] (!%p163_p2), %vm231_vm0, %v2960_v0  ;;  %s2962_s22 = smov (!%p163_p2), 12   ;;  %s2963_s23 = smov (!%p163_p2), 24  }
   0xc   : > { %245 = vst.msk [vmem:[#allocation2 + $0x30] sm:$0xf] (!%p163_p2), %vm231_vm0, %v2960_v0  ;;  %246 = vst.msk [vmem:[#allocation2 + $0x34] sm:$0xf] (!%p163_p2), %vm231_vm0, %v2960_v0  ;;  %vm1857_vm11 = vcmask (!%p163_p2), 1042432   ;;  %vm1858_vm12 = vcmask (!%p163_p2), 1046532  }
   0xd   : > { %247 = vst.msk [vmem:[#allocation2 + $0x38] sm:$0x1] %vm234_vm1, %v2960_v0  ;;  %250 = vst.msk [vmem:[#allocation2 + $0x44] sm:$0x1] %vm234_vm1, %v2960_v0  ;;  %s4067_s16 = smov (!%p188_p3, %s2743_s16), 1  ;;  %s2964_s24 = smov 16  }
   0xe   : > { %248 = vst.msk [vmem:[#allocation2 + $0x3c] sm:$0xf] %vm231_vm0, %v2960_v0  ;;  %249 = vst.msk [vmem:[#allocation2 + $0x40] sm:$0xf] %vm231_vm0, %v2960_v0  ;;  %s2847_s17 = sshll.u32 %s4067_s16, 7  ;;  %s2965_s25 = smov 28  }
   0xf   : > { %251 = vst.msk [vmem:[#allocation2 + $0x48] sm:$0xf] %vm231_vm0, %v2960_v0  ;;  %252 = vst.msk [vmem:[#allocation2 + $0x4c] sm:$0xf] %vm231_vm0, %v2960_v0  ;;  %s3066_s20 = scalar_lea.vmem %s4051_s0, %s2847_s17  ;;  %v1017_v3 = vld [vmem:[#allocation2] sm:$0xf] }
  0x10   : > { %253 = vst.msk [vmem:[#allocation2 + $0x50] sm:$0x1] %vm234_vm1, %v2960_v0  ;;  %256 = vst.msk [vmem:[#allocation2 + $0x5c] sm:$0x1] %vm234_vm1, %v2960_v0  ;;  %v201_v1 = vld [vmem:[%s3066_s20 + $0x8] sm:$0xf] }
  0x11   : > { %254 = vst.msk [vmem:[#allocation2 + $0x54] sm:$0xf] %vm231_vm0, %v2960_v0  ;;  %255 = vst.msk [vmem:[#allocation2 + $0x58] sm:$0xf] %vm231_vm0, %v2960_v0  ;;  %v202_v2 = vld [vmem:[%s3066_s20 + $0xc] sm:$0xf] }
  0x12   : > { %257 = vst.msk [vmem:[#allocation2 + $0x60] sm:$0xf] %vm231_vm0, %v2960_v0  ;;  %258 = vst.msk [vmem:[#allocation2 + $0x64] sm:$0xf] %vm231_vm0, %v2960_v0  ;;  %v1018_v4 = vld [vmem:[#allocation2 + $0x4] sm:$0xf] }
  0x13   : > { %259 = vst.msk [vmem:[#allocation2 + $0x68] sm:$0x1] %vm234_vm1, %v2960_v0  ;;  %262 = vst.msk [vmem:[#allocation2 + $0x74] sm:$0x1] %vm234_vm1, %v2960_v0  ;;  %v1019_v5 = vld [vmem:[#allocation2 + $0x8] sm:$0x1] }
  0x14   : > { %260 = vst.msk [vmem:[#allocation2 + $0x6c] sm:$0xf] %vm231_vm0, %v2960_v0  ;;  %261 = vst.msk [vmem:[#allocation2 + $0x70] sm:$0xf] %vm231_vm0, %v2960_v0  ;;  %v1075_v6 = vshrl.u32 %v1017_v3, 16  ;;  %v1078_v7 = vshll.u32 %v1017_v3, 16 }
  0x15   : > { %263 = vst.msk [vmem:[#allocation2 + $0x78] sm:$0xf] %vm231_vm0, %v2960_v0  ;;  %264 = vst.msk [vmem:[#allocation2 + $0x7c] sm:$0xf] %vm231_vm0, %v2960_v0  ;;  %v1084_v8 = vshll.u32 %v1018_v4, 16  ;;  %v1088_v9 = vshrl.u32 %v1018_v4, 16 }
  0x16   : > { %265 = vst.msk [vmem:[#allocation2 + $0x80] sm:$0x1] %vm234_vm1, %v2960_v0  ;;  %268 = vst.msk [vmem:[#allocation2 + $0x8c] sm:$0x1] %vm234_vm1, %v2960_v0  ;;  %v1094_v10 = vshll.u32 %v1019_v5, 16  ;;  %v308_v11 = vshrl.u32 %v201_v1, 16 }
  0x17   : > { %266 = vst.msk [vmem:[#allocation2 + $0x84] sm:$0xf] %vm231_vm0, %v2960_v0  ;;  %267 = vst.msk [vmem:[#allocation2 + $0x88] sm:$0xf] %vm231_vm0, %v2960_v0  ;;  %v311_v12 = vshll.u32 %v201_v1, 16  ;;  %v316_v13 = vshrl.u32 %v202_v2, 16 }
  0x18   : > { %269 = vst.msk [vmem:[#allocation2 + $0x90] sm:$0xf] %vm231_vm0, %v2960_v0  ;;  %270 = vst.msk [vmem:[#allocation2 + $0x94] sm:$0xf] %vm231_vm0, %v2960_v0  ;;  %v199_v14 = vld [vmem:[%s3066_s20] sm:$0xf] }
  0x19   : > { %271 = vst.msk [vmem:[#allocation2 + $0x98] sm:$0x1] %vm234_vm1, %v2960_v0  ;;  %274 = vst.msk [vmem:[#allocation2 + $0xa4] sm:$0x1] %vm234_vm1, %v2960_v0  ;;  %v1077_v15 = vrot.slane %v1075_v6, 4  ;;  %v1080_v16 = vrot.slane %v1078_v7, 5 }
  0x1a   : > { %272 = vst.msk [vmem:[#allocation2 + $0x9c] sm:$0xf] %vm231_vm0, %v2960_v0  ;;  %273 = vst.msk [vmem:[#allocation2 + $0xa0] sm:$0xf] %vm231_vm0, %v2960_v0  ;;  %v1086_v17 = vrot.slane %v1084_v8, 5  ;;  %v1090_v18 = vrot.slane %v1088_v9, 4 }
  0x1b   : > { %275 = vst.msk [vmem:[#allocation2 + $0xa8] sm:$0xf] %vm231_vm0, %v2960_v0  ;;  %276 = vst.msk [vmem:[#allocation2 + $0xac] sm:$0xf] %vm231_vm0, %v2960_v0  ;;  %v1096_v19 = vrot.slane %v1094_v10, 5  ;;  %v310_v21 = vrot.slane %v308_v11, 7  ;;  %v1081_v25 = vor.u32 %v1080_v16, %v1077_v15 }
  0x1c   : > { %277 = vst.msk [vmem:[#allocation2 + $0xb0] sm:$0x1] %vm234_vm1, %v2960_v0  ;;  %280 = vst.msk [vmem:[#allocation2 + $0xbc] sm:$0x1] %vm234_vm1, %v2960_v0  ;;  %v3077_v22 = vrot.slane %v316_v13, 7  ;;  %v319_v23 = vshll.u32 %v202_v2, 16  ;;  %v1091_v26 = vor.u32 %v1090_v18, %v1086_v17 }
  0x1d   : > { %278 = vst.msk [vmem:[#allocation2 + $0xb4] sm:$0xf] %vm231_vm0, %v2960_v0  ;;  %279 = vst.msk [vmem:[#allocation2 + $0xb8] sm:$0xf] %vm231_vm0, %v2960_v0  ;;  %v200_v24 = vld [vmem:[%s3066_s20 + $0x4] sm:$0xf]  ;;  %v313_v33 = vor.u32 %v311_v12, %v310_v21 }
  0x1e   : > { %281 = vst.msk [vmem:[#allocation2 + $0xc0] sm:$0xf] %vm231_vm0, %v2960_v0  ;;  %282 = vst.msk [vmem:[#allocation2 + $0xc4] sm:$0xf] %vm231_vm0, %v2960_v0  ;;  %v623_v28 = vld [vmem:[#allocation2 + $0x18] sm:$0xf]  ;;  %v321_v35 = vor.u32 %v319_v23, %v3077_v22 }
  0x1f   : > { %283 = vst.msk [vmem:[#allocation2 + $0xc8] sm:$0x1] %vm234_vm1, %v2960_v0  ;;  %286 = vst.msk [vmem:[#allocation2 + $0xd4] sm:$0x1] %vm234_vm1, %v2960_v0  ;;  %v291_v29 = vshrl.u32 %v199_v14, 16  ;;  %v294_v30 = vshll.u32 %v199_v14, 16 }
  0x20   : > { %284 = vst.msk [vmem:[#allocation2 + $0xcc] sm:$0xf] %vm231_vm0, %v2960_v0  ;;  %285 = vst.msk [vmem:[#allocation2 + $0xd0] sm:$0xf] %vm231_vm0, %v2960_v0  ;;  %v217_v31 = vld [vmem:[%s3066_s20 + $0x48] sm:$0xf] }
  0x21   : > { %vm3073_vm7 = vmor %vm287_vm4, %vm288_vm5  ;;  %v314_v34 = vrot.slane %v310_v21, 4  ;;  %v323_v36 = vrot.slane %v3077_v22, 4  ;;  %v1082_v37 = vrot.slane %v1081_v25, 4  ;;  %v1092_v38 = vrot.slane %v1091_v26, 4  ;;  %v614_v41 = vld [vmem:[#allocation2 + $0xc] sm:$0xf] }
  0x22   : > { %vm3082_vm8 = vmand %vm231_vm0, %vm612_vm6  ;;  %v293_v39 = vrot.slane %v291_v29, 7  ;;  %v299_v40 = vshrl.u32 %v200_v24, 16  ;;  %v302_v44 = vshll.u32 %v200_v24, 16  ;;  %v218_v45 = vld [vmem:[%s3066_s20 + $0x4c] sm:$0xf]  ;;  %v444_v46 = vshrl.u32 %v217_v31, 16 }
  0x23   : > { %vm3089_vm9 = vmor %vm1071_vm2, %vm1072_vm3  ;;  %v322_v42 = vsel %vm3073_vm7, %v314_v34, %v321_v35  ;;  %v624_v43 = vsel %vm3082_vm8, %v313_v33, %v623_v28  ;;  %v215_v47 = vld [vmem:[%s3066_s20 + $0x40] sm:$0xf]  ;;  %v679_v52 = vld [vmem:[#allocation2 + $0x78] sm:$0xf]  ;;  %v447_v56 = vshll.u32 %v217_v31, 16  ;;  %v452_v59 = vshrl.u32 %v218_v45, 16 }
  0x24   : > { %v1087_v48 = vsel %vm3089_vm9, %v1082_v37, %v1086_v17  ;;  %v1097_v49 = vsel %vm3089_vm9, %v1092_v38, %v1096_v19  ;;  %625 = vst [vmem:[#allocation2 + $0x18] sm:$0xf] %v624_v43  ;;  %626 = vst.msk [vmem:[#allocation2 + $0x1c] sm:$0xf] %vm231_vm0, %v322_v42  ;;  %v296_v50 = vor.u32 %v294_v30, %v293_v39  ;;  %v297_v51 = vrot.slane %v293_v39, 4  ;;  %s2966_s26 = smov 8  }
  0x25   : > { %v2770_v53 = vcombine.low %v1087_v48, %v1097_v49  ;;  %v301_v54 = vrot.slane %v299_v40, 7  ;;  %v446_v55 = vrot.slane %v444_v46, 7  ;;  %v216_v57 = vld [vmem:[%s3066_s20 + $0x44] sm:$0xf]  ;;  %v455_v60 = vshll.u32 %v218_v45, 16  ;;  %vm3113_vm10 = vmand %vm234_vm1, %vm287_vm4  ;;  %s2967_s27 = smov 20  }
  0x26   : > { %v615_v58 = vsel %vm3082_vm8, %v296_v50, %v614_v41  ;;  %v427_v61 = vshrl.u32 %v215_v47, 16  ;;  %v219_v62 = vld [vmem:[%s3066_s20 + $0x50] sm:$0xf]  ;;  %v672_v3 = vld [vmem:[#allocation2 + $0x6c] sm:$0xf]  ;;  %v3117_v5 = vrot.slane %v452_v59, 7  ;;  %vm3242_vm13 = vmor %vm1857_vm11, %vm1858_vm12 }
  0x27   : > { %1506 = vrot.lane.b32.xlu0 %v2770_v53, %s2961_s21  ;;  %v304_v63 = vor.u32 %v302_v44, %v301_v54  ;;  %v306_v0 = vrot.slane %v301_v54, 4  ;;  %616 = vst [vmem:[#allocation2 + $0xc] sm:$0xf] %v615_v58  ;;  %v449_v1 = vor.u32 %v447_v56, %v446_v55  ;;  %v450_v2 = vrot.slane %v446_v55, 4  ;;  %v220_v9 = vld [vmem:[%s3066_s20 + $0x54] sm:$0xf] }
  0x28   : > { %v429_v6 = vrot.slane %v427_v61, 7  ;;  %v430_v7 = vshll.u32 %v215_v47, 16  ;;  %v435_v8 = vshrl.u32 %v216_v57, 16  ;;  %v438_v12 = vshll.u32 %v216_v57, 16  ;;  %v203_v14 = vld [vmem:[%s3066_s20 + $0x10] sm:$0xf] }
  0x29   : > { %v305_v10 = vsel %vm3073_vm7, %v297_v51, %v304_v63  ;;  %v680_v11 = vsel %vm3082_vm8, %v449_v1, %v679_v52  ;;  %v461_v13 = vshrl.u32 %v219_v62, 16  ;;  %v620_v15 = vld [vmem:[#allocation2 + $0x14] sm:$0x1]  ;;  %v457_v16 = vor.u32 %v455_v60, %v3117_v5  ;;  %v627_v22 = vld [vmem:[#allocation2 + $0x20] sm:$0x1]  ;;  %s2968_s30 = smov 32  }
  0x2a   : > { %617 = vst.msk [vmem:[#allocation2 + $0x10] sm:$0xf] %vm231_vm0, %v305_v10  ;;  %v459_v17 = vrot.slane %v3117_v5, 4  ;;  %681 = vst [vmem:[#allocation2 + $0x78] sm:$0xf] %v680_v11  ;;  %v432_v18 = vor.u32 %v430_v7, %v429_v6  ;;  %v433_v19 = vrot.slane %v429_v6, 4  ;;  %v621_v26 = vsel %vm3113_vm10, %v306_v0, %v620_v15 }
  0x2b   : > { %v204_v21 = vld [vmem:[%s3066_s20 + $0x14] sm:$0xf]  ;;  %v3129_v23 = vld [vmem:[#allocation2 + $0x18] sm:$0xff]   ;;  %v437_v24 = vrot.slane %v435_v8, 7  ;;  %v686_v25 = vld [vmem:[#allocation2 + $0x84] sm:$0xf]  ;;  %v628_v28 = vsel %vm3113_vm10, %v323_v36, %v627_v22  ;;  %v458_v29 = vsel %vm3073_vm7, %v450_v2, %v457_v16 }
  0x2c   : > { %v673_v30 = vsel %vm3082_vm8, %v432_v18, %v672_v3  ;;  %v463_v31 = vrot.slane %v461_v13, 7  ;;  %v464_v33 = vshll.u32 %v219_v62, 16  ;;  %v213_v34 = vld [vmem:[%s3066_s20 + $0x38] sm:$0xf]  ;;  %622 = vst [vmem:[#allocation2 + $0x14] sm:$0x1] %v621_v26  ;;  %884 = vrot.lane.b32.xlu1 %v3129_v23, %s2962_s22 }
  0x2d   : > { %v676_v35 = vld [vmem:[#allocation2 + $0x74] sm:$0x1]  ;;  %629 = vst [vmem:[#allocation2 + $0x20] sm:$0x1] %v628_v28  ;;  %682 = vst.msk [vmem:[#allocation2 + $0x7c] sm:$0xf] %vm231_vm0, %v458_v29  ;;  %v440_v36 = vor.u32 %v438_v12, %v437_v24 }
  0x2e   : > { %v442_v37 = vrot.slane %v437_v24, 4  ;;  %674 = vst [vmem:[#allocation2 + $0x6c] sm:$0xf] %v673_v30  ;;  %v469_v38 = vshrl.u32 %v220_v9, 16  ;;  %v472_v39 = vshll.u32 %v220_v9, 16  ;;  %v466_v41 = vor.u32 %v464_v33, %v463_v31  ;;  %s2848_s13 = sshll.u32 %s4067_s16, 6 }
  0x2f   : > { %v683_v40 = vld [vmem:[#allocation2 + $0x80] sm:$0x1]  ;;  %v467_v42 = vrot.slane %v463_v31, 4  ;;  %v325_v43 = vshrl.u32 %v203_v14, 16  ;;  %v328_v44 = vshll.u32 %v203_v14, 16  ;;  %v441_v45 = vsel %vm3073_vm7, %v433_v19, %v440_v36  ;;  %s3990_s18 = scalar_lea.vmem %s4055_s4, %s2848_s13 }
  0x30   : > { %v3145_v46 = vrot.slane %v469_v38, 7  ;;  %v333_v47 = vshrl.u32 %v204_v21, 16  ;;  %v336_v48 = vshll.u32 %v204_v21, 16  ;;  %v630_v49 = vld [vmem:[#allocation2 + $0x24] sm:$0xf]  ;;  %v687_v51 = vsel %vm3082_vm8, %v466_v41, %v686_v25 }
  0x31   : > { %v214_v50 = vld [vmem:[%s3066_s20 + $0x3c] sm:$0xf]  ;;  %675 = vst.msk [vmem:[#allocation2 + $0x70] sm:$0xf] %vm231_vm0, %v441_v45  ;;  %v327_v52 = vrot.slane %v325_v43, 7  ;;  %v410_v53 = vshrl.u32 %v213_v34, 16  ;;  %v677_v59 = vsel %vm3113_vm10, %v442_v37, %v676_v35  ;;  %v684_v60 = vsel %vm3113_vm10, %v459_v17, %v683_v40 }
  0x32   : > { %v413_v54 = vshll.u32 %v213_v34, 16  ;;  %v1020_v55 = vld [vmem:[#allocation2 + $0xc] sm:$0xf]  ;;  %v474_v57 = vor.u32 %v472_v39, %v3145_v46  ;;  %688 = vst [vmem:[#allocation2 + $0x84] sm:$0xf] %v687_v51  ;;  %v335_v63 = vrot.slane %v333_v47, 7 }
  0x33   : > { %v3151_v56 = vld [vmem:[#allocation2 + $0xc] sm:$0xff]   ;;  %v665_v58 = vld [vmem:[#allocation2 + $0x60] sm:$0xf]  ;;  %v330_v61 = vor.u32 %v328_v44, %v327_v52  ;;  %v331_v62 = vrot.slane %v327_v52, 4  ;;  %v412_v0 = vrot.slane %v410_v53, 7  ;;  %v418_v3 = vshrl.u32 %v214_v50, 16 }
  0x34   : > { %v1021_v1 = vld [vmem:[#allocation2 + $0x10] sm:$0xf]  ;;  %678 = vst [vmem:[#allocation2 + $0x74] sm:$0x1] %v677_v59  ;;  %685 = vst [vmem:[#allocation2 + $0x80] sm:$0x1] %v684_v60  ;;  %882 = vrot.lane.b32.xlu0 %v3151_v56, %s2962_s22  ;;  %v475_v2 = vsel %vm3073_vm7, %v467_v42, %v474_v57  ;;  %v338_v9 = vor.u32 %v336_v48, %v335_v63 }
  0x35   : > { %v421_v5 = vshll.u32 %v214_v50, 16  ;;  %v1022_v6 = vld [vmem:[#allocation2 + $0x14] sm:$0x1]  ;;  %v1099_v7 = vshrl.u32 %v1020_v55, 16  ;;  %v3162_v8 = vld [vmem:[#allocation2 + $0x78] sm:$0xff]   ;;  %v340_v10 = vrot.slane %v335_v63, 4  ;;  %v631_v11 = vsel %vm3082_vm8, %v330_v61, %v630_v49 }
  0x36   : > { %689 = vst.msk [vmem:[#allocation2 + $0x88] sm:$0xf] %vm231_vm0, %v475_v2  ;;  %v415_v12 = vor.u32 %v413_v54, %v412_v0  ;;  %632 = vst [vmem:[#allocation2 + $0x24] sm:$0xf] %v631_v11  ;;  %v416_v13 = vrot.slane %v412_v0, 4  ;;  %v420_v14 = vrot.slane %v418_v3, 7  ;;  %900 = vrot.lane.b32.xlu1 %v3162_v8, %s2962_s22  ;;  %v339_v18 = vsel %vm3073_vm7, %v331_v62, %v338_v9 }
  0x37   : > { %v1101_v15 = vrot.slane %v1099_v7, 4  ;;  %v1102_v16 = vshll.u32 %v1020_v55, 16  ;;  %v634_v17 = vld [vmem:[#allocation2 + $0x2c] sm:$0x1]  ;;  %v669_v21 = vld [vmem:[#allocation2 + $0x68] sm:$0x1] }
  0x38   : > { %v666_v19 = vsel %vm3082_vm8, %v415_v12, %v665_v58  ;;  %v1108_v22 = vshll.u32 %v1021_v1, 16  ;;  %v1112_v24 = vshrl.u32 %v1021_v1, 16  ;;  %v1044_v25 = vld [vmem:[#allocation2 + $0x6c] sm:$0xf]  ;;  %633 = vst.msk [vmem:[#allocation2 + $0x28] sm:$0xf] %vm231_vm0, %v339_v18  ;;  %v423_v28 = vor.u32 %v421_v5, %v420_v14 }
  0x39   : > { %v3173_v26 = vld [vmem:[#allocation2 + $0x6c] sm:$0xff]   ;;  %v425_v29 = vrot.slane %v420_v14, 4  ;;  %667 = vst [vmem:[#allocation2 + $0x60] sm:$0xf] %v666_v19  ;;  %v1104_v30 = vrot.slane %v1102_v16, 5  ;;  %v1118_v31 = vshll.u32 %v1022_v6, 16  ;;  %v635_v36 = vsel %vm3113_vm10, %v340_v10, %v634_v17 }
  0x3a   : > { %v1110_v33 = vrot.slane %v1108_v22, 5  ;;  %v1114_v34 = vrot.slane %v1112_v24, 4  ;;  %v1045_v35 = vld [vmem:[#allocation2 + $0x70] sm:$0xf]  ;;  %898 = vrot.lane.b32.xlu0 %v3173_v26, %s2962_s22  ;;  %v424_v37 = vsel %vm3073_vm7, %v416_v13, %v423_v28  ;;  %636 = vst [vmem:[#allocation2 + $0x2c] sm:$0x1] %v635_v36  ;;  %968 = vrot.lane.b32.xlu1 %v3162_v8, %s2963_s23 }
  0x3b   : > { %v670_v38 = vsel %vm3113_vm10, %v425_v29, %v669_v21  ;;  %v1105_v39 = vor.u32 %v1104_v30, %v1101_v15  ;;  %v1120_v40 = vrot.slane %v1118_v31, 5  ;;  %v1046_v41 = vld [vmem:[#allocation2 + $0x74] sm:$0x1]  ;;  %668 = vst.msk [vmem:[#allocation2 + $0x64] sm:$0xf] %vm231_vm0, %v424_v37  ;;  %v1291_v43 = vshrl.u32 %v1044_v25, 16 }
  0x3c   : > { %671 = vst [vmem:[#allocation2 + $0x68] sm:$0x1] %v670_v38  ;;  %v1115_v42 = vor.u32 %v1114_v34, %v1110_v33  ;;  %v1294_v44 = vshll.u32 %v1044_v25, 16  ;;  %v1300_v45 = vshll.u32 %v1045_v35, 16  ;;  %v1023_v47 = vld [vmem:[#allocation2 + $0x18] sm:$0xf] }
  0x3d   : > { %v3187_v48 = vld [vmem:[#allocation2 + $0x84] sm:$0xff]   ;;  %v1106_v49 = vrot.slane %v1105_v39, 4  ;;  %v1304_v50 = vshrl.u32 %v1045_v35, 16  ;;  %v1310_v51 = vshll.u32 %v1046_v41, 16  ;;  %v1293_v53 = vrot.slane %v1291_v43, 4 }
  0x3e   : > { %v1116_v52 = vrot.slane %v1115_v42, 4  ;;  %v1296_v54 = vrot.slane %v1294_v44, 5  ;;  %v1302_v55 = vrot.slane %v1300_v45, 5  ;;  %952 = vrot.lane.b32.xlu0 %v3129_v23, %s2963_s23  ;;  %v476_v57 = vrot.slane %v3145_v46, 4  ;;  %v1024_v59 = vld [vmem:[#allocation2 + $0x1c] sm:$0xf]  ;;  %970 = vrot.lane.b32.xlu1 %v3187_v48, %s2963_s23 }
  0x3f   : > { %v1306_v58 = vrot.slane %v1304_v50, 4  ;;  %v1123_v60 = vshrl.u32 %v1023_v47, 16  ;;  %v3194_v61 = vld [vmem:[#allocation2 + $0x24] sm:$0xff]   ;;  %v1111_v63 = vsel %vm3089_vm9, %v1106_v49, %v1110_v33  ;;  %v1126_v2 = vshll.u32 %v1023_v47, 16  ;;  %v690_v7 = vld [vmem:[#allocation2 + $0x8c] sm:$0x1] }
  0x40   : > { %v1041_v62 = vld [vmem:[#allocation2 + $0x60] sm:$0xf]  ;;  %v1121_v0 = vsel %vm3089_vm9, %v1116_v52, %v1120_v40  ;;  %v1297_v1 = vor.u32 %v1296_v54, %v1293_v53  ;;  %v1312_v6 = vrot.slane %v1310_v51, 5  ;;  %v1132_v12 = vshll.u32 %v1024_v59, 16  ;;  %v1047_v33 = vld [vmem:[#allocation2 + $0x78] sm:$0xf] }
  0x41   : > { %v1267_v3 = vshrl.u32 %v1041_v62, 16  ;;  %v1270_v5 = vshll.u32 %v1041_v62, 16  ;;  %v1307_v46 = vor.u32 %v1306_v58, %v1302_v55  ;;  %v1125_v10 = vrot.slane %v1123_v60, 4  ;;  %v1025_v25 = vld [vmem:[#allocation2 + $0x20] sm:$0x1] }
  0x42   : > { %v1298_v9 = vrot.slane %v1297_v1, 4  ;;  %v1128_v11 = vrot.slane %v1126_v2, 5  ;;  %954 = vrot.lane.b32.xlu0 %v3194_v61, %s2963_s23  ;;  %v1042_v13 = vld [vmem:[#allocation2 + $0x64] sm:$0xf]  ;;  %v2771_v17 = vcombine.low %v1111_v63, %v1121_v0  ;;  %v691_v18 = vsel %vm3113_vm10, %v476_v57, %v690_v7  ;;  %v1048_v42 = vld [vmem:[#allocation2 + $0x7c] sm:$0xf] }
  0x43   : > { %v1043_v14 = vld [vmem:[#allocation2 + $0x68] sm:$0x1]  ;;  %v1269_v15 = vrot.slane %v1267_v3, 4  ;;  %v1272_v16 = vrot.slane %v1270_v5, 5  ;;  %v1276_v19 = vshll.u32 %v1042_v13, 16  ;;  %v1280_v21 = vshrl.u32 %v1042_v13, 16 }
  0x44   : > { %v1286_v22 = vshll.u32 %v1043_v14, 16  ;;  %v1303_v24 = vsel %vm3089_vm9, %v1298_v9, %v1302_v55  ;;  %692 = vst [vmem:[#allocation2 + $0x8c] sm:$0x1] %v691_v18  ;;  %v1308_v29 = vrot.slane %v1307_v46, 4  ;;  %v1129_v30 = vor.u32 %v1128_v11, %v1125_v10  ;;  %v1049_v47 = vld [vmem:[#allocation2 + $0x80] sm:$0x1] }
  0x45   : > { %v1273_v28 = vor.u32 %v1272_v16, %v1269_v15  ;;  %v1134_v31 = vrot.slane %v1132_v12, 5  ;;  %v1278_v34 = vrot.slane %v1276_v19, 5  ;;  %v1282_v35 = vrot.slane %v1280_v21, 4  ;;  %v1026_v50 = vld [vmem:[#allocation2 + $0x24] sm:$0xf] }
  0x46   : > { %v1288_v36 = vrot.slane %v1286_v22, 5  ;;  %v1136_v37 = vshrl.u32 %v1024_v59, 16  ;;  %1508 = vrot.lane.b32.xlu0 %v2771_v17, %s2961_s21  ;;  %v1313_v39 = vsel %vm3089_vm9, %v1308_v29, %v1312_v6  ;;  %v1130_v40 = vrot.slane %v1129_v30, 4  ;;  %v1027_v0 = vld [vmem:[#allocation2 + $0x28] sm:$0xf] }
  0x47   : > { %v1274_v38 = vrot.slane %v1273_v28, 4  ;;  %v1142_v41 = vshll.u32 %v1025_v25, 16  ;;  %v1283_v43 = vor.u32 %v1282_v35, %v1278_v34  ;;  %v3209_v44 = vcombine.low %v1303_v24, %v1313_v39  ;;  %v1028_v11 = vld [vmem:[#allocation2 + $0x2c] sm:$0x1]  ;;  %v1050_v12 = vld [vmem:[#allocation2 + $0x84] sm:$0xf] }
  0x48   : > { %v1138_v45 = vrot.slane %v1136_v37, 4  ;;  %v1315_v49 = vshrl.u32 %v1047_v33, 16  ;;  %v1135_v52 = vsel %vm3089_vm9, %v1130_v40, %v1134_v31  ;;  %v1318_v54 = vshll.u32 %v1047_v33, 16  ;;  %v1051_v22 = vld [vmem:[#allocation2 + $0x88] sm:$0xf] }
  0x49   : > { %v1279_v51 = vsel %vm3089_vm9, %v1274_v38, %v1278_v34  ;;  %v1144_v53 = vrot.slane %v1142_v41, 5  ;;  %v1284_v55 = vrot.slane %v1283_v43, 4  ;;  %v1324_v59 = vshll.u32 %v1048_v42, 16  ;;  %v1755_v30 = vld [vmem:[#allocation2] sm:$0xe] }
  0x4a   : > { %v1139_v57 = vor.u32 %v1138_v45, %v1134_v31  ;;  %v1317_v58 = vrot.slane %v1315_v49, 4  ;;  %1598 = vrot.lane.b32.xlu0 %v2771_v17, %s2964_s24  ;;  %v1320_v60 = vrot.slane %v1318_v54, 5  ;;  %v1328_v62 = vshrl.u32 %v1048_v42, 16  ;;  %v1756_v41 = vld [vmem:[#allocation2 + $0x4] sm:$0xf] }
  0x4b   : > { %v1334_v63 = vshll.u32 %v1049_v47, 16  ;;  %v1147_v1 = vshrl.u32 %v1026_v50, 16  ;;  %v1289_v2 = vsel %vm3089_vm9, %v1284_v55, %v1288_v36  ;;  %v1326_v5 = vrot.slane %v1324_v59, 5  ;;  %v1052_v35 = vld [vmem:[#allocation2 + $0x8c] sm:$0x1] }
  0x4c   : > { %v1140_v3 = vrot.slane %v1139_v57, 4  ;;  %v1150_v46 = vshll.u32 %v1026_v50, 16  ;;  %v3218_v6 = vcombine.low %v1279_v51, %v1289_v2  ;;  %v1321_v7 = vor.u32 %v1320_v60, %v1317_v58  ;;  %v1757_v49 = vld [vmem:[#allocation2 + $0x8] sm:$0x1]  ;;  %v1779_v50 = vld [vmem:[#allocation2 + $0x60] sm:$0xe] }
  0x4d   : > { %v1330_v9 = vrot.slane %v1328_v62, 4  ;;  %v1336_v10 = vrot.slane %v1334_v63, 5  ;;  %v1149_v14 = vrot.slane %v1147_v1, 4  ;;  %v1156_v16 = vshll.u32 %v1027_v0, 16  ;;  %v1780_v55 = vld [vmem:[#allocation2 + $0x64] sm:$0xf] }
  0x4e   : > { %v1145_v13 = vsel %vm3089_vm9, %v1140_v3, %v1144_v53  ;;  %v1152_v15 = vrot.slane %v1150_v46, 5  ;;  %1522 = vrot.lane.b32.xlu1 %v3218_v6, %s2961_s21  ;;  %v1322_v18 = vrot.slane %v1321_v7, 4  ;;  %v1160_v21 = vshrl.u32 %v1027_v0, 16  ;;  %v1781_v63 = vld [vmem:[#allocation2 + $0x68] sm:$0x1] }
  0x4f   : > { %v3224_v17 = vcombine.low %v1135_v52, %v1145_v13  ;;  %v1331_v19 = vor.u32 %v1330_v9, %v1326_v5  ;;  %v1158_v25 = vrot.slane %v1156_v16, 5  ;;  %v1166_v28 = vshll.u32 %v1028_v11, 16  ;;  %v1759_v11 = vld [vmem:[#allocation2 + $0x10] sm:$0xf] }
  0x50   : > { %v1153_v24 = vor.u32 %v1152_v15, %v1149_v14  ;;  %v1339_v29 = vshrl.u32 %v1050_v12, 16  ;;  %v1327_v31 = vsel %vm3089_vm9, %v1322_v18, %v1326_v5  ;;  %v1162_v34 = vrot.slane %v1160_v21, 4  ;;  %v1758_v5 = vld [vmem:[#allocation2 + $0xc] sm:$0xe] }
  0x51   : > { %1600 = vrot.lane.b32.xlu0 %v3224_v17, %s2964_s24  ;;  %v1332_v33 = vrot.slane %v1331_v19, 4  ;;  %v1342_v36 = vshll.u32 %v1050_v12, 16  ;;  %v1168_v38 = vrot.slane %v1166_v28, 5  ;;  %v1348_v40 = vshll.u32 %v1051_v22, 16  ;;  %v1760_v12 = vld [vmem:[#allocation2 + $0x14] sm:$0x1] }
  0x52   : > { %v1154_v37 = vrot.slane %v1153_v24, 4  ;;  %v1341_v39 = vrot.slane %v1339_v29, 4  ;;  %1524 = vrot.lane.b32.xlu1 %v3209_v44, %s2961_s21  ;;  %v1163_v43 = vor.u32 %v1162_v34, %v1158_v25  ;;  %v1352_v47 = vshrl.u32 %v1051_v22, 16  ;;  %v1782_v18 = vld [vmem:[#allocation2 + $0x6c] sm:$0xe] }
  0x53   : > { %v1337_v42 = vsel %vm3089_vm9, %v1332_v33, %v1336_v10  ;;  %v1344_v45 = vrot.slane %v1342_v36, 5  ;;  %v1350_v53 = vrot.slane %v1348_v40, 5  ;;  %v1358_v54 = vshll.u32 %v1052_v35, 16  ;;  %v1783_v22 = vld [vmem:[#allocation2 + $0x70] sm:$0xf] }
  0x54   : > { %v3234_v51 = vcombine.low %v1327_v31, %v1337_v42  ;;  %v1159_v52 = vsel %vm3089_vm9, %v1154_v37, %v1158_v25  ;;  %v1164_v57 = vrot.slane %v1163_v43, 4  ;;  %v1354_v59 = vrot.slane %v1352_v47, 4  ;;  %v1784_v24 = vld [vmem:[#allocation2 + $0x74] sm:$0x1]  ;;  %v1762_v31 = vld [vmem:[#allocation2 + $0x1c] sm:$0xf] }
  0x55   : > { %1690 = vrot.lane.b32.xlu0 %v3224_v17, %s2965_s25  ;;  %v1345_v58 = vor.u32 %v1344_v45, %v1341_v39  ;;  %v2788_v62 = vrot.slane %v1755_v30, 9  ;;  %v1360_v0 = vrot.slane %v1358_v54, 5  ;;  %v1862_v1 = vrot.slane %v1756_v41, 5  ;;  %v1761_v36 = vld [vmem:[#allocation2 + $0x18] sm:$0xe] }
  0x56   : > { %v1865_v2 = vrot.slane %v1757_v49, 5  ;;  %v2796_v3 = vrot.slane %v1779_v50, 9  ;;  %1614 = vrot.lane.b32.xlu1 %v3209_v44, %s2964_s24  ;;  %v1169_v46 = vsel %vm3089_vm9, %v1164_v57, %v1168_v38  ;;  %v1355_v9 = vor.u32 %v1354_v59, %v1350_v53  ;;  %v1786_v37 = vld [vmem:[#allocation2 + $0x7c] sm:$0xf]  ;;  %v1763_v42 = vld [vmem:[#allocation2 + $0x20] sm:$0x1] }
  0x57   : > { %v1346_v7 = vrot.slane %v1345_v58, 4  ;;  %v1918_v10 = vrot.slane %v1780_v55, 5  ;;  %v3250_v13 = vcombine.low %v1159_v52, %v1169_v46  ;;  %v1863_v14 = vsel %vm3242_vm13, %v2788_v62, %v1862_v1  ;;  %v1785_v43 = vld [vmem:[#allocation2 + $0x78] sm:$0xe]  ;;  %v1787_v52 = vld [vmem:[#allocation2 + $0x80] sm:$0x1] }
  0x58   : > { %v1864_v15 = vrot.slane %v1862_v1, 4  ;;  %v1921_v16 = vrot.slane %v1781_v63, 5  ;;  %v1356_v19 = vrot.slane %v1355_v9, 4  ;;  %v2789_v28 = vrot.slane %v1758_v5, 9  ;;  %v1764_v58 = vld [vmem:[#allocation2 + $0x24] sm:$0xe] }
  0x59   : > { %v1920_v21 = vrot.slane %v1918_v10, 4  ;;  %1692 = vrot.lane.b32.xlu0 %v3250_v13, %s2965_s25  ;;  %v1869_v29 = vrot.slane %v1759_v11, 5  ;;  %v1872_v30 = vrot.slane %v1760_v12, 5  ;;  %v1351_v33 = vsel %vm3089_vm9, %v1346_v7, %v1350_v53  ;;  %v1765_v59 = vld [vmem:[#allocation2 + $0x28] sm:$0xf] }
  0x5a   : > { %v1866_v25 = vsel %vm3242_vm13, %v1864_v15, %v1865_v2  ;;  %1616 = vrot.lane.b32.xlu1 %v3234_v51, %s2964_s24  ;;  %v1361_v34 = vsel %vm3089_vm9, %v1356_v19, %v1360_v0  ;;  %v1919_v38 = vsel %vm3242_vm13, %v2796_v3, %v1918_v10  ;;  %v2797_v45 = vrot.slane %v1782_v18, 9  ;;  %v1766_v2 = vld [vmem:[#allocation2 + $0x2c] sm:$0x1]  ;;  %v205_v7 = vld [vmem:[%s3066_s20 + $0x18] sm:$0xf] }
  0x5b   : > { %v2804_v35 = vcombine.low %v1863_v14, %v1866_v25  ;;  %v1922_v39 = vsel %vm3242_vm13, %v1920_v21, %v1921_v16  ;;  %v1870_v40 = vsel %vm3242_vm13, %v2789_v28, %v1869_v29  ;;  %v1871_v41 = vrot.slane %v1869_v29, 4  ;;  %v206_v12 = vld [vmem:[%s3066_s20 + $0x1c] sm:$0xf]  ;;  %v221_v14 = vld [vmem:[%s3066_s20 + $0x58] sm:$0xf] }
  0x5c   : > { %v1925_v47 = vrot.slane %v1783_v22, 5  ;;  %v1928_v49 = vrot.slane %v1784_v24, 5  ;;  %v1876_v50 = vrot.slane %v1762_v31, 5  ;;  %v3270_v53 = vcombine.low %v1351_v33, %v1361_v34  ;;  %v3300_v33 = vld [vmem:[#allocation2 + $0x88] sm:$0xf] }
  0x5d   : > { %2020 = vrot.lane.b32.xlu0 %v2804_v35, %s2966_s26  ;;  %v1873_v54 = vsel %vm3242_vm13, %v1871_v41, %v1872_v30  ;;  %v2790_v55 = vrot.slane %v1761_v36, 9  ;;  %v1932_v57 = vrot.slane %v1786_v37, 5  ;;  %v1879_v0 = vrot.slane %v1763_v42, 5  ;;  %v222_v30 = vld [vmem:[%s3066_s20 + $0x5c] sm:$0xf] }
  0x5e   : > { %1706 = vrot.lane.b32.xlu1 %v3234_v51, %s2965_s25  ;;  %v2805_v62 = vcombine.low %v1870_v40, %v1873_v54  ;;  %v1927_v63 = vrot.slane %v1925_v47, 4  ;;  %v2798_v1 = vrot.slane %v1785_v43, 9  ;;  %v1878_v3 = vrot.slane %v1876_v50, 4  ;;  %v637_v41 = vld [vmem:[#allocation2 + $0x30] sm:$0xf] }
  0x5f   : > { %v1934_v5 = vrot.slane %v1932_v57, 4  ;;  %v1935_v46 = vrot.slane %v1787_v52, 5  ;;  %v1926_v9 = vsel %vm3242_vm13, %v2797_v45, %v1925_v47  ;;  %v1883_v11 = vrot.slane %v1765_v59, 5  ;;  %v693_v42 = vld [vmem:[#allocation2 + $0x90] sm:$0xf] }
  0x60   : > { %v1929_v10 = vsel %vm3242_vm13, %v1927_v63, %v1928_v49  ;;  %v3284_v15 = vcombine.low %v1919_v38, %v1922_v39  ;;  %v2791_v16 = vrot.slane %v1764_v58, 9  ;;  %v1877_v18 = vsel %vm3242_vm13, %v2790_v55, %v1876_v50  ;;  %v207_v50 = vld [vmem:[%s3066_s20 + $0x20] sm:$0xf]  ;;  %v208_v58 = vld [vmem:[%s3066_s20 + $0x24] sm:$0xf] }
  0x61   : > { %2022 = vrot.lane.b32.xlu0 %v2805_v62, %s2966_s26  ;;  %v1880_v19 = vsel %vm3242_vm13, %v1878_v3, %v1879_v0  ;;  %v1933_v21 = vsel %vm3242_vm13, %v2798_v1, %v1932_v57  ;;  %v1936_v22 = vsel %vm3242_vm13, %v1934_v5, %v1935_v46  ;;  %v3297_v24 = vcombine.low %v1926_v9, %v1929_v10  ;;  %v223_v1 = vld [vmem:[%s3066_s20 + $0x60] sm:$0xf]  ;;  %v224_v9 = vld [vmem:[%s3066_s20 + $0x64] sm:$0xf] }
  0x62   : > { %1708 = vrot.lane.b32.xlu1 %v3270_v53, %s2965_s25  ;;  %v1886_v25 = vrot.slane %v1766_v2, 5  ;;  %v342_v28 = vshrl.u32 %v205_v7, 16  ;;  %v345_v29 = vshll.u32 %v205_v7, 16  ;;  %v1885_v31 = vrot.slane %v1883_v11, 4  ;;  %v2947_v2 = vld [vmem:[%s4052_s1] sm:$0xff]  }
  0x63   : > { %v350_v34 = vshrl.u32 %v206_v12, 16  ;;  %v353_v35 = vshll.u32 %v206_v12, 16  ;;  %v478_v36 = vshrl.u32 %v221_v14, 16  ;;  %v3303_v37 = vcombine.low %v1877_v18, %v1880_v19  ;;  %v2941_v18 = vld [vmem:[#allocation2] sm:$0xff]   ;;  %2868 = vmatprep.subr.bf16.mxu0 %v2947_v2  ;;  %2906 = vmatprep.subr.bf16.mxu1 %v2947_v2 }
  0x64   : > { %v3305_v38 = vcombine.low %v1933_v21, %v1936_v22  ;;  %v3309_v39 = vsel %vm3242_vm13, %v2791_v16, %v1883_v11  ;;  %v344_v40 = vrot.slane %v342_v28, 7  ;;  %v481_v47 = vshll.u32 %v221_v14, 16  ;;  %v644_v16 = vld [vmem:[#allocation2 + $0x3c] sm:$0xf]  ;;  %v641_v28 = vld [vmem:[#allocation2 + $0x38] sm:$0x1]  ;;  %2869 = vmatpush3.bf16.msra.mxu0 %v2947_v2  ;;  %2909 = vmatpush3.bf16.msra.mxu1 %v2947_v2 }
  0x65   : > { %2098 = vrot.lane.b32.xlu0 %v2805_v62, %s2967_s27  ;;  %v3313_v43 = vrot.slane %v350_v34, 7  ;;  %v480_v45 = vrot.slane %v478_v36, 7  ;;  %v486_v49 = vshrl.u32 %v222_v30, 16  ;;  %v1939_v52 = vrot.slane %v3300_v33, 5  ;;  %v697_v36 = vld [vmem:[#allocation2 + $0x98] sm:$0x1] }
  0x66   : > { %2036 = vrot.lane.b32.xlu1 %v3284_v15, %s2966_s26  ;;  %v347_v54 = vor.u32 %v345_v29, %v344_v40  ;;  %v348_v55 = vrot.slane %v344_v40, 4  ;;  %v489_v57 = vshll.u32 %v222_v30, 16  ;;  %v3320_v59 = vsel %vm3242_vm13, %v1885_v31, %v1886_v25  ;;  %v3340_v29 = vld [vmem:[#allocation2 + $0x60] sm:$0xff]   ;;  %v1790_v2 = vld [vmem:[#allocation2 + $0x8c] sm:$0x1] }
  0x67   : > { %v355_v62 = vor.u32 %v353_v35, %v3313_v43  ;;  %v357_v63 = vrot.slane %v3313_v43, 4  ;;  %v483_v0 = vor.u32 %v481_v47, %v480_v45  ;;  %v484_v5 = vrot.slane %v480_v45, 4  ;;  %v3344_v40 = vld [vmem:[#allocation2 + $0x84] sm:$0xe]  ;;  %v648_v47 = vld [vmem:[#allocation2 + $0x44] sm:$0x1] }
  0x68   : > { %v638_v3 = vsel %vm3082_vm8, %v347_v54, %v637_v41  ;;  %v488_v46 = vrot.slane %v486_v49, 7  ;;  %v359_v7 = vshrl.u32 %v207_v50, 16  ;;  %v362_v12 = vshll.u32 %v207_v50, 16 }
  0x69   : > { %2100 = vrot.lane.b32.xlu0 %v3303_v37, %s2967_s27  ;;  %v356_v10 = vsel %vm3073_vm7, %v348_v55, %v355_v62  ;;  %639 = vst [vmem:[#allocation2 + $0x30] sm:$0xf] %v638_v3  ;;  %v694_v11 = vsel %vm3082_vm8, %v483_v0, %v693_v42  ;;  %v367_v14 = vshrl.u32 %v208_v58, 16  ;;  %v370_v25 = vshll.u32 %v208_v58, 16  ;;  %v700_v62 = vld [vmem:[#allocation2 + $0x9c] sm:$0xf] }
  0x6a   : > { %2038 = vrot.lane.b32.xlu1 %v3297_v24, %s2966_s26  ;;  %640 = vst.msk [vmem:[#allocation2 + $0x34] sm:$0xf] %vm231_vm0, %v356_v10  ;;  %v491_v19 = vor.u32 %v489_v57, %v488_v46  ;;  %v493_v21 = vrot.slane %v488_v46, 4  ;;  %695 = vst [vmem:[#allocation2 + $0x90] sm:$0xf] %v694_v11  ;;  %v361_v22 = vrot.slane %v359_v7, 7  ;;  %v642_v0 = vsel %vm3113_vm10, %v357_v63, %v641_v28 }
  0x6b   : > { %v369_v30 = vrot.slane %v367_v14, 7  ;;  %v495_v31 = vshrl.u32 %v223_v1, 16  ;;  %v498_v34 = vshll.u32 %v223_v1, 16  ;;  %v503_v35 = vshrl.u32 %v224_v9, 16  ;;  %v2948_v57 = vld [vmem:[%s4052_s1 + $0x8] sm:$0xff]  }
  0x6c   : > { %v492_v41 = vsel %vm3073_vm7, %v484_v5, %v491_v19  ;;  %v364_v42 = vor.u32 %v362_v12, %v361_v22  ;;  %v365_v43 = vrot.slane %v361_v22, 4  ;;  %v506_v45 = vshll.u32 %v224_v9, 16  ;;  %643 = vst [vmem:[#allocation2 + $0x38] sm:$0x1] %v642_v0  ;;  %v704_v9 = vld [vmem:[#allocation2 + $0xa4] sm:$0x1]  ;;  %2870 = vmatprep.subr.bf16.mxu0 %v2948_v57  ;;  %2907 = vmatprep.subr.bf16.mxu1 %v2948_v57 }
  0x6d   : > { %2176 = vrot.lane.b32.xlu0 %v3303_v37, %s2968_s30  ;;  %696 = vst.msk [vmem:[#allocation2 + $0x94] sm:$0xf] %vm231_vm0, %v492_v41  ;;  %v372_v49 = vor.u32 %v370_v25, %v369_v30  ;;  %v374_v50 = vrot.slane %v369_v30, 4  ;;  %v497_v54 = vrot.slane %v495_v31, 7  ;;  %v505_v55 = vrot.slane %v503_v35, 7  ;;  %2871 = vmatpush3.bf16.msra.mxu0 %v2948_v57 }
  0x6e   : > { %2114 = vrot.lane.b32.xlu1 %v3297_v24, %s2967_s27  ;;  %v645_v58 = vsel %vm3082_vm8, %v364_v42, %v644_v16  ;;  %v698_v1 = vsel %vm3113_vm10, %v493_v21, %v697_v36  ;;  %vm860_vm14 = vcmask 31744   ;;  %v2799_v63 = vrot.slane %v3344_v40, 9  ;;  %2910 = vmatpush3.bf16.msra.mxu1 %v2948_v57 }
  0x6f   : > { %v373_v3 = vsel %vm3073_vm7, %v365_v43, %v372_v49  ;;  %646 = vst [vmem:[#allocation2 + $0x3c] sm:$0xf] %v645_v58  ;;  %v500_v5 = vor.u32 %v498_v34, %v497_v54  ;;  %v501_v46 = vrot.slane %v497_v54, 4  ;;  %v508_v7 = vor.u32 %v506_v45, %v505_v55  ;;  %699 = vst [vmem:[#allocation2 + $0x98] sm:$0x1] %v698_v1 }
  0x70   : > { %862 = vst.msk [vmem:[#allocation3 + $0x8] sm:$0xff] %vm860_vm14, %v3151_v56  ;;  %863 = vst.msk [vmem:[#allocation3 + $0x10] sm:$0xff] %vm860_vm14, %v3129_v23  ;;  %v3381_v23 = vcombine.low %v3309_v39, %v3320_v59  ;;  %v510_v56 = vrot.slane %v505_v55, 4  ;;  %v1941_v59 = vrot.slane %v1939_v52, 4  ;;  %v1942_v11 = vrot.slane %v1790_v2, 5 }
  0x71   : > { %864 = vst.msk [vmem:[#allocation3 + $0x18] sm:$0xff] %vm860_vm14, %v3194_v61  ;;  %870 = vst.msk [vmem:[#allocation3 + $0x48] sm:$0xff] %vm860_vm14, %v3173_v26  ;;  %886 = vrot.lane.b32.xlu0 %v3194_v61, %s2962_s22  ;;  %v2937_v10 = vld [vmem:[#allocation2 + $0x30] sm:$0xff]   ;;  %v509_v61 = vsel %vm3073_vm7, %v501_v46, %v508_v7  ;;  %v701_v39 = vsel %vm3082_vm8, %v500_v5, %v700_v62  ;;  %v1940_v21 = vsel %vm3242_vm13, %v2799_v63, %v1939_v52  ;;  %vm930_vm15 = vcmask 130144  }
  0x72   : > { %871 = vst.msk [vmem:[#allocation3 + $0x50] sm:$0xff] %vm860_vm14, %v3162_v8  ;;  %872 = vst.msk [vmem:[#allocation3 + $0x58] sm:$0xff] %vm860_vm14, %v3187_v48  ;;  %v649_v8 = vsel %vm3113_vm10, %v374_v50, %v648_v47  ;;  %2116 = vrot.lane.b32.xlu1 %v3305_v38, %s2967_s27  ;;  %v705_v12 = vsel %vm3113_vm10, %v510_v56, %v704_v9  ;;  %v1029_v14 = vld [vmem:[#allocation2 + $0x30] sm:$0xf]  ;;  %v1030_v16 = vld [vmem:[#allocation2 + $0x34] sm:$0xf]  ;;  %v1943_v25 = vsel %vm3242_vm13, %v1941_v59, %v1942_v11 }
  0x73   : > { %861 = vst.msk [vmem:[#allocation3] sm:$0xff] %vm860_vm14, %v2941_v18  ;;  %869 = vst.msk [vmem:[#allocation3 + $0x40] sm:$0xff] %vm860_vm14, %v3340_v29  ;;  %v1053_v19 = vld [vmem:[#allocation2 + $0x90] sm:$0xf]  ;;  %v1171_v28 = vshrl.u32 %v1029_v14, 16  ;;  %v1174_v30 = vshll.u32 %v1029_v14, 16  ;;  %v3418_v52 = vcombine.low %v1940_v21, %v1943_v25 }
  0x74   : > { %647 = vst.msk [vmem:[#allocation2 + $0x40] sm:$0xf] %vm231_vm0, %v373_v3  ;;  %650 = vst [vmem:[#allocation2 + $0x44] sm:$0x1] %v649_v8  ;;  %v3401_v18 = vld [vmem:[#allocation2 + $0x90] sm:$0xff]   ;;  %v1180_v31 = vshll.u32 %v1030_v16, 16 }
  0x75   : > { %702 = vst [vmem:[#allocation2 + $0x9c] sm:$0xf] %v701_v39  ;;  %703 = vst.msk [vmem:[#allocation2 + $0xa0] sm:$0xf] %vm231_vm0, %v509_v61  ;;  %2178 = vrot.lane.b32.xlu0 %v3381_v23, %s2968_s30  ;;  %v1054_v22 = vld [vmem:[#allocation2 + $0x94] sm:$0xf] }
  0x76   : > { %706 = vst [vmem:[#allocation2 + $0xa4] sm:$0x1] %v705_v12  ;;  %865 = vst.msk [vmem:[#allocation3 + $0x20] sm:$0xff] %vm860_vm14, %v2937_v10  ;;  %2192 = vrot.lane.b32.xlu1 %v3305_v38, %s2968_s30  ;;  %v1184_v35 = vshrl.u32 %v1030_v16, 16  ;;  %v1363_v36 = vshrl.u32 %v1053_v19, 16  ;;  %v1366_v40 = vshll.u32 %v1053_v19, 16 }
  0x77   : > { %873 = vst.msk [vmem:[#allocation3 + $0x60] sm:$0xff] %vm860_vm14, %v3401_v18  ;;  %v1372_v33 = vshll.u32 %v1054_v22, 16  ;;  %v1032_v41 = vld [vmem:[#allocation2 + $0x3c] sm:$0xf]  ;;  %v1376_v43 = vshrl.u32 %v1054_v22, 16  ;;  %v1173_v45 = vrot.slane %v1171_v28, 4 }
  0x78   : > { %v1176_v47 = vrot.slane %v1174_v30, 5  ;;  %v3424_v50 = vrot.slane %v1180_v31, 5  ;;  %v1186_v54 = vrot.slane %v1184_v35, 4  ;;  %v1365_v55 = vrot.slane %v1363_v36, 4  ;;  %v1055_v46 = vld [vmem:[#allocation2 + $0x98] sm:$0x1] }
  0x79   : > { %888 = vrot.lane.b32.xlu0 %v2937_v10, %s2962_s22  ;;  %v1368_v57 = vrot.slane %v1366_v40, 5  ;;  %v1195_v58 = vshrl.u32 %v1032_v41, 16  ;;  %v1198_v62 = vshll.u32 %v1032_v41, 16  ;;  %v1374_v2 = vrot.slane %v1372_v33, 5 }
  0x7a   : > { %902 = vrot.lane.b32.xlu1 %v3187_v48, %s2962_s22  ;;  %v1031_v48 = vld [vmem:[#allocation2 + $0x38] sm:$0x1]  ;;  %v1378_v3 = vrot.slane %v1376_v43, 4  ;;  %v1177_v5 = vor.u32 %v1176_v47, %v1173_v45  ;;  %v1187_v7 = vor.u32 %v1186_v54, %v3424_v50  ;;  %v1382_v11 = vshll.u32 %v1055_v46, 16 }
  0x7b   : > { %v3413_v34 = vld [vmem:[#allocation2 + $0x3c] sm:$0xff]   ;;  %v1190_v9 = vshll.u32 %v1031_v48, 16  ;;  %v1369_v56 = vor.u32 %v1368_v57, %v1365_v55  ;;  %v1197_v8 = vrot.slane %v1195_v58, 4  ;;  %v1200_v63 = vrot.slane %v1198_v62, 5  ;;  %v1034_v12 = vld [vmem:[#allocation2 + $0x44] sm:$0x1] }
  0x7c   : > { %v3420_v42 = vld [vmem:[#allocation2 + $0x9c] sm:$0xff]   ;;  %866 = vst.msk [vmem:[#allocation3 + $0x28] sm:$0xff] %vm860_vm14, %v3413_v34  ;;  %v1379_v59 = vor.u32 %v1378_v3, %v1374_v2  ;;  %v1178_v14 = vrot.slane %v1177_v5, 4  ;;  %v1188_v19 = vrot.slane %v1187_v7, 4  ;;  %v1214_v35 = vshll.u32 %v1034_v12, 16 }
  0x7d   : > { %v1033_v49 = vld [vmem:[#allocation2 + $0x40] sm:$0xf]  ;;  %874 = vst.msk [vmem:[#allocation3 + $0x68] sm:$0xff] %vm860_vm14, %v3420_v42  ;;  %956 = vrot.lane.b32.xlu0 %v2937_v10, %s2963_s23  ;;  %v1056_v39 = vld [vmem:[#allocation2 + $0x9c] sm:$0xf]  ;;  %v1192_v21 = vrot.slane %v1190_v9, 5  ;;  %v1201_v30 = vor.u32 %v1200_v63, %v1197_v8 }
  0x7e   : > { %v1204_v0 = vshll.u32 %v1033_v49, 16  ;;  %v1208_v1 = vshrl.u32 %v1033_v49, 16  ;;  %2194 = vrot.lane.b32.xlu1 %v3418_v52, %s2968_s30  ;;  %v1057_v16 = vld [vmem:[#allocation2 + $0xa0] sm:$0xf]  ;;  %v1387_v22 = vshrl.u32 %v1056_v39, 16  ;;  %v1390_v25 = vshll.u32 %v1056_v39, 16 }
  0x7f   : > { %v1370_v28 = vrot.slane %v1369_v56, 4  ;;  %v1380_v36 = vrot.slane %v1379_v59, 4  ;;  %v1384_v40 = vrot.slane %v1382_v11, 5  ;;  %v1396_v33 = vshll.u32 %v1057_v16, 16  ;;  %v1058_v45 = vld [vmem:[#allocation2 + $0xa4] sm:$0x1] }
  0x80   : > { %v3434_v10 = vrot.slane %v1204_v0, 5  ;;  %v1210_v61 = vrot.slane %v1208_v1, 4  ;;  %v1400_v41 = vshrl.u32 %v1057_v16, 16  ;;  %v1183_v43 = vsel %vm3089_vm9, %v1178_v14, %v3424_v50  ;;  %v209_v49 = vld [vmem:[%s3066_s20 + $0x28] sm:$0xf] }
  0x81   : > { %958 = vrot.lane.b32.xlu0 %v3413_v34, %s2963_s23  ;;  %v1389_v47 = vrot.slane %v1387_v22, 4  ;;  %v1193_v54 = vsel %vm3089_vm9, %v1188_v19, %v1192_v21  ;;  %v1216_v57 = vrot.slane %v1214_v35, 5  ;;  %v210_v48 = vld [vmem:[%s3066_s20 + $0x2c] sm:$0xf]  ;;  %v1375_v50 = vsel %vm3089_vm9, %v1370_v28, %v1374_v2  ;;  %v225_v5 = vld [vmem:[%s3066_s20 + $0x68] sm:$0xf] }
  0x82   : > { %904 = vrot.lane.b32.xlu1 %v3401_v18, %s2962_s22  ;;  %v1211_v31 = vor.u32 %v1210_v61, %v3434_v10  ;;  %v1385_v58 = vsel %vm3089_vm9, %v1380_v36, %v1384_v40  ;;  %v3458_v62 = vrot.slane %v1396_v33, 5  ;;  %v3460_v0 = vrot.slane %v1400_v41, 4  ;;  %v651_v39 = vld [vmem:[#allocation2 + $0x48] sm:$0xf]  ;;  %v226_v12 = vld [vmem:[%s3066_s20 + $0x6c] sm:$0xf] }
  0x83   : > { %v1406_v1 = vshll.u32 %v1058_v45, 16  ;;  %v376_v3 = vshrl.u32 %v209_v49, 16  ;;  %v3463_v46 = vcombine.low %v1183_v43, %v1193_v54  ;;  %v379_v9 = vshll.u32 %v209_v49, 16  ;;  %v211_v22 = vld [vmem:[%s3066_s20 + $0x30] sm:$0xf] }
  0x84   : > { %v1212_v55 = vrot.slane %v1211_v31, 4  ;;  %v384_v56 = vshrl.u32 %v210_v48, 16  ;;  %v3467_v2 = vcombine.low %v1375_v50, %v1385_v58  ;;  %v1403_v59 = vor.u32 %v3460_v0, %v3458_v62  ;;  %v707_v31 = vld [vmem:[#allocation2 + $0xa8] sm:$0xf]  ;;  %v212_v35 = vld [vmem:[%s3066_s20 + $0x34] sm:$0xf] }
  0x85   : > { %1510 = vrot.lane.b32.xlu0 %v3224_v17, %s2961_s21  ;;  %v1392_v17 = vrot.slane %v1390_v25, 5  ;;  %v378_v61 = vrot.slane %v376_v3, 7  ;;  %v387_v11 = vshll.u32 %v210_v48, 16  ;;  %v512_v14 = vshrl.u32 %v225_v5, 16  ;;  %v227_v43 = vld [vmem:[%s3066_s20 + $0x70] sm:$0xf] }
  0x86   : > { %972 = vrot.lane.b32.xlu1 %v3401_v18, %s2963_s23  ;;  %v1202_v18 = vrot.slane %v1201_v30, 4  ;;  %v1217_v63 = vsel %vm3089_vm9, %v1212_v55, %v1216_v57  ;;  %v3481_v16 = vrot.slane %v1406_v1, 5  ;;  %v515_v21 = vshll.u32 %v225_v5, 16  ;;  %v228_v54 = vld [vmem:[%s3066_s20 + $0x74] sm:$0xf] }
  0x87   : > { %v1393_v7 = vor.u32 %v1392_v17, %v1389_v47  ;;  %v382_v19 = vrot.slane %v378_v61, 4  ;;  %v514_v30 = vrot.slane %v512_v14, 7  ;;  %v520_v33 = vshrl.u32 %v226_v12, 16  ;;  %v658_v0 = vld [vmem:[#allocation2 + $0x54] sm:$0xf] }
  0x88   : > { %v1207_v8 = vsel %vm3089_vm9, %v1202_v18, %v3434_v10  ;;  %v381_v10 = vor.u32 %v379_v9, %v378_v61  ;;  %v523_v41 = vshll.u32 %v226_v12, 16  ;;  %v393_v49 = vshrl.u32 %v211_v22, 16  ;;  %v1768_v14 = vld [vmem:[#allocation2 + $0x34] sm:$0xf] }
  0x89   : > { %1512 = vrot.lane.b32.xlu0 %v3250_v13, %s2961_s21  ;;  %v3484_v25 = vcombine.low %v1207_v8, %v1217_v63  ;;  %v3486_v28 = vrot.slane %v1393_v7, 4  ;;  %v517_v47 = vor.u32 %v515_v21, %v514_v30  ;;  %v518_v17 = vrot.slane %v514_v30, 4  ;;  %v714_v8 = vld [vmem:[#allocation2 + $0xb4] sm:$0xf] }
  0x8a   : > { %974 = vrot.lane.b32.xlu1 %v3420_v42, %s2963_s23  ;;  %v652_v40 = vsel %vm3082_vm8, %v381_v10, %v651_v39  ;;  %v522_v18 = vrot.slane %v520_v33, 7  ;;  %v396_v55 = vshll.u32 %v211_v22, 16  ;;  %v401_v57 = vshrl.u32 %v212_v35, 16  ;;  %v711_v22 = vld [vmem:[#allocation2 + $0xb0] sm:$0x1] }
  0x8b   : > { %653 = vst [vmem:[#allocation2 + $0x48] sm:$0xf] %v652_v40  ;;  %v404_v48 = vshll.u32 %v212_v35, 16  ;;  %v708_v50 = vsel %vm3082_vm8, %v517_v47, %v707_v31  ;;  %v395_v58 = vrot.slane %v393_v49, 7  ;;  %v529_v1 = vshrl.u32 %v227_v43, 16 }
  0x8c   : > { %v532_v3 = vshll.u32 %v227_v43, 16  ;;  %v525_v5 = vor.u32 %v523_v41, %v522_v18  ;;  %v527_v7 = vrot.slane %v522_v18, 4  ;;  %709 = vst [vmem:[#allocation2 + $0xa8] sm:$0xf] %v708_v50  ;;  %v403_v9 = vrot.slane %v401_v57, 7 }
  0x8d   : > { %1602 = vrot.lane.b32.xlu0 %v3250_v13, %s2964_s24  ;;  %v3478_v13 = vrot.slane %v384_v56, 7  ;;  %v537_v56 = vshrl.u32 %v228_v54, 16  ;;  %v398_v63 = vor.u32 %v396_v55, %v395_v58  ;;  %v399_v61 = vrot.slane %v395_v58, 4  ;;  %v662_v35 = vld [vmem:[#allocation2 + $0x5c] sm:$0x1] }
  0x8e   : > { %1526 = vrot.lane.b32.xlu1 %v3234_v51, %s2961_s21  ;;  %v531_v39 = vrot.slane %v529_v1, 7  ;;  %v1404_v12 = vrot.slane %v1403_v59, 4  ;;  %v526_v10 = vsel %vm3073_vm7, %v518_v17, %v525_v5  ;;  %v718_v41 = vld [vmem:[#allocation2 + $0xbc] sm:$0x1]  ;;  %v1890_v43 = vrot.slane %v1768_v14, 5 }
  0x8f   : > { %v389_v51 = vor.u32 %v387_v11, %v3478_v13  ;;  %v391_v36 = vrot.slane %v3478_v13, 4  ;;  %v540_v13 = vshll.u32 %v228_v54, 16  ;;  %v655_v11 = vld [vmem:[#allocation2 + $0x50] sm:$0x1]  ;;  %v539_v21 = vrot.slane %v537_v56, 7 }
  0x90   : > { %710 = vst.msk [vmem:[#allocation2 + $0xac] sm:$0xf] %vm231_vm0, %v526_v10  ;;  %v659_v30 = vsel %vm3082_vm8, %v398_v63, %v658_v0  ;;  %v535_v31 = vrot.slane %v531_v39, 4  ;;  %v712_v49 = vsel %vm3113_vm10, %v527_v7, %v711_v22  ;;  %v1399_v54 = vsel %vm3089_vm9, %v3486_v28, %v3458_v62  ;;  %v1767_v55 = vld [vmem:[#allocation2 + $0x30] sm:$0xe] }
  0x91   : > { %1604 = vrot.lane.b32.xlu0 %v3463_v46, %s2964_s24  ;;  %v390_v45 = vsel %vm3073_vm7, %v382_v19, %v389_v51  ;;  %v406_v19 = vor.u32 %v404_v48, %v403_v9  ;;  %v408_v51 = vrot.slane %v403_v9, 4  ;;  %660 = vst [vmem:[#allocation2 + $0x54] sm:$0xf] %v659_v30  ;;  %v542_v40 = vor.u32 %v540_v13, %v539_v21  ;;  %v1769_v57 = vld [vmem:[#allocation2 + $0x38] sm:$0x1] }
  0x92   : > { %1528 = vrot.lane.b32.xlu1 %v3270_v53, %s2961_s21  ;;  %654 = vst.msk [vmem:[#allocation2 + $0x4c] sm:$0xf] %vm231_vm0, %v390_v45  ;;  %v544_v33 = vrot.slane %v539_v21, 4  ;;  %v656_v17 = vsel %vm3113_vm10, %v391_v36, %v655_v11  ;;  %v1409_v18 = vsel %vm3089_vm9, %v1404_v12, %v3481_v16  ;;  %713 = vst [vmem:[#allocation2 + $0xb0] sm:$0x1] %v712_v49  ;;  %v2792_v36 = vrot.slane %v1767_v55, 9 }
  0x93   : > { %v407_v59 = vsel %vm3073_vm7, %v399_v61, %v406_v19  ;;  %v543_v48 = vsel %vm3073_vm7, %v535_v31, %v542_v40  ;;  %657 = vst [vmem:[#allocation2 + $0x50] sm:$0x1] %v656_v17  ;;  %v663_v62 = vsel %vm3113_vm10, %v408_v51, %v662_v35  ;;  %v3548_v16 = vcombine.low %v1399_v54, %v1409_v18  ;;  %v1792_v5 = vld [vmem:[#allocation2 + $0x94] sm:$0xf]  ;;  %v1791_v61 = vld [vmem:[#allocation2 + $0x90] sm:$0xe] }
  0x94   : > { %661 = vst.msk [vmem:[#allocation2 + $0x58] sm:$0xf] %vm231_vm0, %v407_v59  ;;  %717 = vst.msk [vmem:[#allocation2 + $0xb8] sm:$0xf] %vm231_vm0, %v543_v48  ;;  %v719_v28 = vsel %vm3113_vm10, %v544_v33, %v718_v41  ;;  %v1892_v50 = vrot.slane %v1890_v43, 4  ;;  %v1893_v58 = vrot.slane %v1769_v57, 5  ;;  %v1891_v7 = vsel %vm3242_vm13, %v2792_v36, %v1890_v43 }
  0x95   : > { %1694 = vrot.lane.b32.xlu0 %v3463_v46, %s2965_s25  ;;  %664 = vst [vmem:[#allocation2 + $0x5c] sm:$0x1] %v663_v62  ;;  %720 = vst [vmem:[#allocation2 + $0xbc] sm:$0x1] %v719_v28  ;;  %v1946_v56 = vrot.slane %v1792_v5, 5  ;;  %v2800_v10 = vrot.slane %v1791_v61, 9 }
  0x96   : > { %1618 = vrot.lane.b32.xlu1 %v3270_v53, %s2964_s24  ;;  %v534_v53 = vor.u32 %v532_v3, %v531_v39  ;;  %v1894_v9 = vsel %vm3242_vm13, %v1892_v50, %v1893_v58  ;;  %v1793_v39 = vld [vmem:[#allocation2 + $0x98] sm:$0x1]  ;;  %v1770_v12 = vld [vmem:[#allocation2 + $0x3c] sm:$0xe]  ;;  %v1772_v22 = vld [vmem:[#allocation2 + $0x44] sm:$0x1] }
  0x97   : > { %v3550_v0 = vld [vmem:[#allocation2 + $0xa8] sm:$0xff]   ;;  %v3573_v13 = vcombine.low %v1891_v7, %v1894_v9  ;;  %v1948_v19 = vrot.slane %v1946_v56, 4  ;;  %v1949_v21 = vrot.slane %v1793_v39, 5  ;;  %v2793_v51 = vrot.slane %v1770_v12, 9  ;;  %v1795_v35 = vld [vmem:[#allocation2 + $0xa0] sm:$0xf] }
  0x98   : > { %v715_v47 = vsel %vm3082_vm8, %v534_v53, %v714_v8  ;;  %875 = vst.msk [vmem:[#allocation3 + $0x70] sm:$0xff] %vm860_vm14, %v3550_v0  ;;  %v1771_v8 = vld [vmem:[#allocation2 + $0x40] sm:$0xf]  ;;  %v1900_v30 = vrot.slane %v1772_v22, 5  ;;  %v1947_v53 = vsel %vm3242_vm13, %v2800_v10, %v1946_v56  ;;  %vm1000_vm1 = vcmask 228544  }
  0x99   : > { %1696 = vrot.lane.b32.xlu0 %v3484_v25, %s2965_s25  ;;  %v3519_v45 = vld [vmem:[#allocation2 + $0x48] sm:$0xff]   ;;  %716 = vst [vmem:[#allocation2 + $0xb4] sm:$0xf] %v715_v47  ;;  %v3552_v1 = vpop.permute.xlu0 %1506  ;;  %v1897_v14 = vrot.slane %v1771_v8, 5  ;;  %v1950_v31 = vsel %vm3242_vm13, %v1948_v19, %v1949_v21  ;;  %v1794_v17 = vld [vmem:[#allocation2 + $0x9c] sm:$0xe] }
  0x9a   : > { %1620 = vrot.lane.b32.xlu1 %v3467_v2, %s2964_s24  ;;  %867 = vst.msk [vmem:[#allocation3 + $0x30] sm:$0xff] %vm860_vm14, %v3519_v45  ;;  %v2949_v59 = vld [vmem:[%s4052_s1 + $0x10] ss:$0 sps:$4 sm:$0x33]   ;;  %v3599_v43 = vcombine.low %v1947_v53, %v1950_v31  ;;  %v1953_v49 = vrot.slane %v1795_v35, 5  ;;  %vm2326_vm2 = vcmask 1041408  }
  0x9b   : > { %v1898_v41 = vsel %vm3242_vm13, %v2793_v51, %v1897_v14  ;;  %v1796_v54 = vld [vmem:[#allocation2 + $0xa4] sm:$0x1]  ;;  %vm1554_vm3 = vcmask 64544   ;;  %2912 = vmatprep.subr.msk.bf16.mxu0 %vm2326_vm2, %v2949_v59  ;;  %2913 = vmatprep.subr.msk.bf16.mxu1 %vm2326_vm2, %v2949_v59  ;;  %v2328_v55 = vsel %vm2326_vm2, %v2949_v59, 0  ;;  %v2801_v48 = vrot.slane %v1794_v17, 9 }
  0x9c   : > { %2873 = vmatpush3.bf16.msra.mxu0 %v2328_v55  ;;  %v229_v62 = vld [vmem:[%s3066_s20 + $0x78] sm:$0xf]  ;;  %v1955_v28 = vrot.slane %v1953_v49, 4  ;;  %v1956_v36 = vrot.slane %v1796_v54, 5  ;;  %2911 = vmatpush3.bf16.msra.mxu1 %v2328_v55  ;;  %v1035_v58 = vld [vmem:[#allocation2 + $0x48] sm:$0xf] }
  0x9d   : > { %2024 = vrot.lane.b32.xlu0 %v3303_v37, %s2966_s26  ;;  %v3559_v37 = vld [vmem:[#allocation2 + $0x54] sm:$0xff]   ;;  %v1954_v5 = vsel %vm3242_vm13, %v2801_v48, %v1953_v49  ;;  %v549_v56 = vshll.u32 %v229_v62, 16  ;;  %v1219_v61 = vshrl.u32 %v1035_v58, 16  ;;  %vm1646_vm4 = vcmask 162944   ;;  %v1059_v27 = vld [vmem:[#allocation2 + $0xa8] sm:$0xf] }
  0x9e   : > { %1710 = vrot.lane.b32.xlu1 %v3467_v2, %s2965_s25  ;;  %v885_v3 = vpop.permute.xlu1 %884  ;;  %868 = vst.msk [vmem:[#allocation3 + $0x38] sm:$0xff] %vm860_vm14, %v3559_v37  ;;  %v1957_v7 = vsel %vm3242_vm13, %v1955_v28, %v1956_v36  ;;  %v1037_v20 = vld [vmem:[#allocation2 + $0x50] sm:$0x1]  ;;  %v1060_v17 = vld [vmem:[#allocation2 + $0xac] sm:$0xf]  ;;  %v1411_v55 = vshrl.u32 %v1059_v27, 16 }
  0x9f   : > { %932 = vst.msk [vmem:[#allocation3 + $0x8] sm:$0xff] %vm930_vm15, %v885_v3  ;;  %v546_v3 = vshrl.u32 %v229_v62, 16  ;;  %v3625_v22 = vcombine.low %v1954_v5, %v1957_v7  ;;  %v1221_v59 = vrot.slane %v1219_v61, 4  ;;  %v1038_v49 = vld [vmem:[#allocation2 + $0x54] sm:$0xf]  ;;  %v1238_v48 = vshll.u32 %v1037_v20, 16 }
  0xa0   : > { %v3569_v63 = vld [vmem:[#allocation2 + $0xb4] sm:$0xff]   ;;  %v1420_v62 = vshll.u32 %v1060_v17, 16  ;;  %v1424_v28 = vshrl.u32 %v1060_v17, 16  ;;  %vm2068_vm5 = vcmask 97344   ;;  %vm2146_vm6 = vcmask 195744  }
  0xa1   : > { %2026 = vrot.lane.b32.xlu0 %v3381_v23, %s2966_s26  ;;  %876 = vst.msk [vmem:[#allocation3 + $0x78] sm:$0xff] %vm860_vm14, %v3569_v63  ;;  %v548_v9 = vrot.slane %v546_v3, 7  ;;  %v1039_v4 = vld [vmem:[#allocation2 + $0x58] sm:$0xf] }
  0xa2   : > { %1712 = vrot.lane.b32.xlu1 %v3548_v16, %s2965_s25  ;;  %v1256_v3 = vshrl.u32 %v1039_v4, 16  ;;  %v3656_v61 = vrot.slane %v1420_v62, 5 }
  0xa3   : > { %v551_v10 = vor.u32 %v549_v56, %v548_v9  ;;  %v552_v19 = vrot.slane %v548_v9, 4 }
  0xa5   : > { %2102 = vrot.lane.b32.xlu0 %v3381_v23, %s2967_s27 }
  0xa6   : > { %2040 = vrot.lane.b32.xlu1 %v3305_v38, %s2966_s26  ;;  %v883_v11 = vpop.permute.xlu0 %882  ;;  %v1899_v38 = vrot.slane %v1897_v14, 4  ;;  %v1222_v14 = vshll.u32 %v1035_v58, 16  ;;  %v1252_v58 = vshll.u32 %v1039_v4, 16 }
  0xa7   : > { %931 = vst.msk [vmem:[#allocation3] sm:$0xff] %vm930_vm15, %v883_v11  ;;  %v721_v11 = vld [vmem:[#allocation2 + $0xc0] sm:$0xf] }
  0xa8   : > { %v901_v23 = vpop.permute.xlu1 %900  ;;  %v1901_v47 = vsel %vm3242_vm13, %v1899_v38, %v1900_v30  ;;  %v725_v38 = vld [vmem:[#allocation2 + $0xc8] sm:$0x1]  ;;  %v722_v31 = vsel %vm3082_vm8, %v551_v10, %v721_v11  ;;  %vm2277_vm8 = vcmask 293888  }
  0xa9   : > { %2104 = vrot.lane.b32.xlu0 %v3573_v13, %s2967_s27  ;;  %940 = vst.msk [vmem:[#allocation3 + $0x48] sm:$0xff] %vm930_vm15, %v901_v23  ;;  %723 = vst [vmem:[#allocation2 + $0xc0] sm:$0xf] %v722_v31 }
  0xaa   : > { %2042 = vrot.lane.b32.xlu1 %v3418_v52, %s2966_s26 }
  0xac   : > { %v899_v40 = vpop.permute.xlu0 %898  ;;  %v969_v33 = vpop.permute.xlu1 %968 }
  0xad   : > { %2180 = vrot.lane.b32.xlu0 %v3573_v13, %s2968_s30  ;;  %939 = vst.msk [vmem:[#allocation3 + $0x40] sm:$0xff] %vm930_vm15, %v899_v40  ;;  %v1224_v40 = vrot.slane %v1222_v14, 5 }
  0xae   : > { %2118 = vrot.lane.b32.xlu1 %v3418_v52, %s2967_s27  ;;  %1009 = vst.msk [vmem:[#allocation3 + $0x40] sm:$0xff] %vm1000_vm1, %v969_v33  ;;  %v3607_v52 = vcombine.low %v1898_v41, %v1901_v47 }
  0xb0   : > { %v953_v18 = vpop.permute.xlu0 %952  ;;  %v971_v57 = vpop.permute.xlu1 %970 }
  0xb1   : > { %890 = vrot.lane.b32.xlu0 %v3413_v34, %s2962_s22  ;;  %1001 = vst.msk [vmem:[#allocation3] sm:$0xff] %vm1000_vm1, %v953_v18  ;;  %1010 = vst.msk [vmem:[#allocation3 + $0x48] sm:$0xff] %vm1000_vm1, %v971_v57  ;;  %v230_v34 = vld [vmem:[%s3066_s20 + $0x7c] sm:$0xf]  ;;  %v1225_v18 = vor.u32 %v1224_v40, %v1221_v59 }
  0xb2   : > { %2120 = vrot.lane.b32.xlu1 %v3599_v43, %s2967_s27  ;;  %1555 = vst.msk [vmem:[#allocation3] sm:$0xff] %vm1554_vm3, %v3552_v1  ;;  %v1036_v1 = vld [vmem:[#allocation2 + $0x4c] sm:$0xf]  ;;  %v554_v8 = vshrl.u32 %v230_v34, 16  ;;  %v557_v39 = vshll.u32 %v230_v34, 16  ;;  %v1243_v34 = vshrl.u32 %v1038_v49, 16 }
  0xb3   : > { %v1228_v23 = vshll.u32 %v1036_v1, 16  ;;  %v1232_v51 = vshrl.u32 %v1036_v1, 16  ;;  %v1226_v7 = vrot.slane %v1225_v18, 4  ;;  %v1413_v1 = vrot.slane %v1411_v55, 4 }
  0xb4   : > { %v955_v50 = vpop.permute.xlu0 %954  ;;  %v556_v21 = vrot.slane %v554_v8, 7  ;;  %v1240_v8 = vrot.slane %v1238_v48, 5  ;;  %v1245_v14 = vrot.slane %v1243_v34, 4 }
  0xb5   : > { %2182 = vrot.lane.b32.xlu0 %v3607_v52, %s2968_s30  ;;  %1002 = vst.msk [vmem:[#allocation3 + $0x8] sm:$0xff] %vm1000_vm1, %v955_v50  ;;  %v1234_v47 = vrot.slane %v1232_v51, 4  ;;  %v1246_v50 = vshll.u32 %v1038_v49, 16 }
  0xb6   : > { %2196 = vrot.lane.b32.xlu1 %v3599_v43, %s2968_s30  ;;  %v559_v30 = vor.u32 %v557_v39, %v556_v21  ;;  %v561_v53 = vrot.slane %v556_v21, 4  ;;  %v1426_v39 = vrot.slane %v1424_v28, 4  ;;  %v1258_v21 = vrot.slane %v1256_v3, 4 }
  0xb7   : > { %v1248_v10 = vrot.slane %v1246_v50, 5 }
  0xb8   : > { %v1509_v12 = vpop.permute.xlu0 %1508  ;;  %v560_v33 = vsel %vm3073_vm7, %v552_v19, %v559_v30  ;;  %v726_v41 = vsel %vm3113_vm10, %v561_v53, %v725_v38  ;;  %v1254_v19 = vrot.slane %v1252_v58, 5  ;;  %v1062_v38 = vld [vmem:[#allocation2 + $0xb4] sm:$0xf]  ;;  %v1427_v53 = vor.u32 %v1426_v39, %v3656_v61 }
  0xb9   : > { %892 = vrot.lane.b32.xlu0 %v3519_v45, %s2962_s22  ;;  %1556 = vst.msk [vmem:[#allocation3 + $0x8] sm:$0xff] %vm1554_vm3, %v1509_v12  ;;  %727 = vst [vmem:[#allocation2 + $0xc8] sm:$0x1] %v726_v41  ;;  %v1061_v12 = vld [vmem:[#allocation2 + $0xb0] sm:$0x1]  ;;  %v1249_v59 = vor.u32 %v1248_v10, %v1245_v14  ;;  %vm2224_vm7 = vcmask 294144  }
  0xba   : > { %906 = vrot.lane.b32.xlu1 %v3420_v42, %s2962_s22  ;;  %v3641_v42 = vrot.slane %v1228_v23, 5  ;;  %724 = vst.msk [vmem:[#allocation2 + $0xc4] sm:$0xf] %vm231_vm0, %v560_v33  ;;  %vm1738_vm0 = vcmask 261344   ;;  %v1040_v23 = vld [vmem:[#allocation2 + $0x5c] sm:$0x1]  ;;  %v1259_v40 = vor.u32 %v1258_v21, %v1254_v19 }
  0xbb   : > { %v1430_v31 = vshll.u32 %v1061_v12, 16  ;;  %v1262_v33 = vshll.u32 %v1040_v23, 16  ;;  %v1428_v18 = vrot.slane %v1427_v53, 4  ;;  %v1250_v55 = vrot.slane %v1249_v59, 4 }
  0xbc   : > { %v1599_v35 = vpop.permute.xlu0 %1598  ;;  %v1235_v57 = vor.u32 %v1234_v47, %v3641_v42  ;;  %v1435_v47 = vshrl.u32 %v1062_v38, 16 }
  0xbd   : > { %960 = vrot.lane.b32.xlu0 %v3519_v45, %s2963_s23  ;;  %1647 = vst.msk [vmem:[#allocation3] sm:$0xff] %vm1646_vm4, %v1599_v35  ;;  %v1414_v45 = vshll.u32 %v1059_v27, 16  ;;  %v1438_v27 = vshll.u32 %v1062_v38, 16  ;;  %v1255_v58 = vsel %vm3089_vm9, %v1250_v55, %v1254_v19  ;;  %v1774_v19 = vld [vmem:[#allocation2 + $0x4c] sm:$0xf] }
  0xbe   : > { %2198 = vrot.lane.b32.xlu1 %v3625_v22, %s2968_s30  ;;  %v1236_v56 = vrot.slane %v1235_v57, 4  ;;  %v1264_v57 = vrot.slane %v1262_v33, 5  ;;  %v1437_v62 = vrot.slane %v1435_v47, 4  ;;  %v1904_v23 = vrot.slane %v1774_v19, 5  ;;  %v1776_v55 = vld [vmem:[#allocation2 + $0x54] sm:$0xe] }
  0xbf   : > { %v1416_v9 = vrot.slane %v1414_v45, 5  ;;  %v1260_v45 = vrot.slane %v1259_v40, 4  ;;  %v1440_v28 = vrot.slane %v1438_v27, 5  ;;  %v1800_v19 = vld [vmem:[#allocation2 + $0xb4] sm:$0xe] }
  0xc0   : > { %v1523_v54 = vpop.permute.xlu1 %1522  ;;  %v1241_v35 = vsel %vm3089_vm9, %v1236_v56, %v1240_v8 }
  0xc1   : > { %1563 = vst.msk [vmem:[#allocation3 + $0x40] sm:$0xff] %vm1554_vm3, %v1523_v54  ;;  %962 = vrot.lane.b32.xlu0 %v3559_v37, %s2963_s23  ;;  %v1417_v30 = vor.u32 %v1416_v9, %v1413_v1  ;;  %v1432_v54 = vrot.slane %v1430_v31, 5  ;;  %v1265_v3 = vsel %vm3089_vm9, %v1260_v45, %v1264_v57  ;;  %v1441_v1 = vor.u32 %v1440_v28, %v1437_v62 }
  0xc2   : > { %908 = vrot.lane.b32.xlu1 %v3550_v0, %s2962_s22 }
  0xc3   : > { %v1601_v36 = vpop.permute.xlu0 %1600  ;;  %v1418_v4 = vrot.slane %v1417_v30, 4  ;;  %v1442_v12 = vrot.slane %v1441_v1, 4 }
  0xc4   : > { %1648 = vst.msk [vmem:[#allocation3 + $0x8] sm:$0xff] %vm1646_vm4, %v1601_v36  ;;  %v1525_v5 = vpop.permute.xlu1 %1524 }
  0xc5   : > { %1564 = vst.msk [vmem:[#allocation3 + $0x48] sm:$0xff] %vm1554_vm3, %v1525_v5  ;;  %1514 = vrot.lane.b32.xlu0 %v3463_v46, %s2961_s21  ;;  %v1063_v46 = vld [vmem:[#allocation2 + $0xb8] sm:$0xf] }
  0xc6   : > { %976 = vrot.lane.b32.xlu1 %v3550_v0, %s2963_s23  ;;  %v1231_v0 = vsel %vm3089_vm9, %v1226_v7, %v3641_v42  ;;  %v1444_v20 = vshll.u32 %v1063_v46, 16  ;;  %v1448_v17 = vshrl.u32 %v1063_v46, 16  ;;  %v1433_v7 = vsel %vm3089_vm9, %v1428_v18, %v1432_v54  ;;  %v1773_v46 = vld [vmem:[#allocation2 + $0x48] sm:$0xe]  ;;  %v1799_v54 = vld [vmem:[#allocation2 + $0xb0] sm:$0x1] }
  0xc7   : > { %v1691_v11 = vpop.permute.xlu0 %1690  ;;  %v3676_v42 = vcombine.low %v1231_v0, %v1241_v35  ;;  %v1775_v0 = vld [vmem:[#allocation2 + $0x50] sm:$0x1]  ;;  %v2794_v31 = vrot.slane %v1773_v46, 9  ;;  %v1906_v35 = vrot.slane %v1904_v23, 4 }
  0xc8   : > { %1739 = vst.msk [vmem:[#allocation3] sm:$0xff] %vm1738_vm0, %v1691_v11  ;;  %v1615_v51 = vpop.permute.xlu1 %1614  ;;  %v1446_v36 = vrot.slane %v1444_v20, 5  ;;  %v1450_v34 = vrot.slane %v1448_v17, 4  ;;  %v1907_v59 = vrot.slane %v1775_v0, 5  ;;  %v1777_v17 = vld [vmem:[#allocation2 + $0x58] sm:$0xf] }
  0xc9   : > { %1655 = vst.msk [vmem:[#allocation3 + $0x40] sm:$0xff] %vm1646_vm4, %v1615_v51  ;;  %1516 = vrot.lane.b32.xlu0 %v3484_v25, %s2961_s21  ;;  %v1911_v45 = vrot.slane %v1777_v17, 5 }
  0xca   : > { %978 = vrot.lane.b32.xlu1 %v3569_v63, %s2963_s23  ;;  %v1451_v9 = vor.u32 %v1450_v34, %v1446_v36  ;;  %v1447_v51 = vsel %vm3089_vm9, %v1442_v12, %v1446_v36  ;;  %v1908_v47 = vsel %vm3242_vm13, %v1906_v35, %v1907_v59  ;;  %v1963_v36 = vrot.slane %v1799_v54, 5  ;;  %v1778_v34 = vld [vmem:[#allocation2 + $0x5c] sm:$0x1] }
  0xcb   : > { %v1693_v41 = vpop.permute.xlu0 %1692 }
  0xcc   : > { %v1617_v49 = vpop.permute.xlu1 %1616  ;;  %1740 = vst.msk [vmem:[#allocation3 + $0x8] sm:$0xff] %vm1738_vm0, %v1693_v41  ;;  %v1452_v14 = vrot.slane %v1451_v9, 4  ;;  %v1798_v41 = vld [vmem:[#allocation2 + $0xac] sm:$0xf] }
  0xcd   : > { %1656 = vst.msk [vmem:[#allocation3 + $0x48] sm:$0xff] %vm1646_vm4, %v1617_v49  ;;  %1606 = vrot.lane.b32.xlu0 %v3484_v25, %s2964_s24  ;;  %v1064_v25 = vld [vmem:[#allocation2 + $0xbc] sm:$0x1]  ;;  %v1960_v20 = vrot.slane %v1798_v41, 5  ;;  %v2950_v41 = vld [vmem:[#allocation2 + $0xc0] sm:$0xff]  }
  0xce   : > { %1530 = vrot.lane.b32.xlu1 %v3467_v2, %s2961_s21  ;;  %v1423_v2 = vsel %vm3089_vm9, %v1418_v4, %v3656_v61  ;;  %v1454_v56 = vshll.u32 %v1064_v25, 16  ;;  %v3699_v61 = vcombine.low %v1255_v58, %v1265_v3  ;;  %v1797_v4 = vld [vmem:[#allocation2 + $0xa8] sm:$0xe]  ;;  %v1914_v25 = vrot.slane %v1778_v34, 5 }
  0xcf   : > { %v2021_v48 = vpop.permute.xlu0 %2020  ;;  %v3703_v39 = vcombine.low %v1423_v2, %v1433_v7  ;;  %v2802_v62 = vrot.slane %v1797_v4, 9  ;;  %v1962_v28 = vrot.slane %v1960_v20, 4  ;;  %v1801_v7 = vld [vmem:[#allocation2 + $0xb8] sm:$0xf] }
  0xd0   : > { %v1707_v50 = vpop.permute.xlu1 %1706  ;;  %2069 = vst.msk [vmem:[#allocation3] sm:$0xff] %vm2068_vm5, %v2021_v48  ;;  %v1456_v10 = vrot.slane %v1454_v56, 5  ;;  %v1967_v12 = vrot.slane %v1801_v7, 5 }
  0xd1   : > { %1747 = vst.msk [vmem:[#allocation3 + $0x40] sm:$0xff] %vm1738_vm0, %v1707_v50  ;;  %1608 = vrot.lane.b32.xlu0 %v3676_v42, %s2964_s24  ;;  %v1961_v58 = vsel %vm3242_vm13, %v2802_v62, %v1960_v20  ;;  %v1964_v3 = vsel %vm3242_vm13, %v1962_v28, %v1963_v36  ;;  %v1069_v36 = vld [vmem:[#allocation2 + $0xd0] sm:$0xf] }
  0xd2   : > { %1532 = vrot.lane.b32.xlu1 %v3548_v16, %s2961_s21  ;;  %v1457_v38 = vsel %vm3089_vm9, %v1452_v14, %v1456_v10  ;;  %v3758_v1 = vcombine.low %v1961_v58, %v1964_v3 }
  0xd3   : > { %v2023_v5 = vpop.permute.xlu0 %2022  ;;  %v3721_v53 = vcombine.low %v1447_v51, %v1457_v38  ;;  %v1969_v51 = vrot.slane %v1967_v12, 4 }
  0xd4   : > { %v1709_v8 = vpop.permute.xlu1 %1708  ;;  %2070 = vst.msk [vmem:[#allocation3 + $0x8] sm:$0xff] %vm2068_vm5, %v2023_v5 }
  0xd5   : > { %1748 = vst.msk [vmem:[#allocation3 + $0x48] sm:$0xff] %vm1738_vm0, %v1709_v8  ;;  %1698 = vrot.lane.b32.xlu0 %v3676_v42, %s2965_s25 }
  0xd6   : > { %1622 = vrot.lane.b32.xlu1 %v3548_v16, %s2964_s24 }
  0xd7   : > { %v2099_v11 = vpop.permute.xlu0 %2098 }
  0xd8   : > { %v2037_v21 = vpop.permute.xlu1 %2036  ;;  %2147 = vst.msk [vmem:[#allocation3] sm:$0xff] %vm2146_vm6, %v2099_v11 }
  0xd9   : > { %2077 = vst.msk [vmem:[#allocation3 + $0x40] sm:$0xff] %vm2068_vm5, %v2037_v21  ;;  %1700 = vrot.lane.b32.xlu0 %v3699_v61, %s2965_s25  ;;  %v1802_v21 = vld [vmem:[#allocation2 + $0xbc] sm:$0x1] }
  0xda   : > { %1624 = vrot.lane.b32.xlu1 %v3703_v39, %s2964_s24  ;;  %v1970_v38 = vrot.slane %v1802_v21, 5 }
  0xdb   : > { %v2101_v16 = vpop.permute.xlu0 %2100 }
  0xdc   : > { %v2039_v30 = vpop.permute.xlu1 %2038  ;;  %2148 = vst.msk [vmem:[#allocation3 + $0x8] sm:$0xff] %vm2146_vm6, %v2101_v16  ;;  %v2803_v16 = vrot.slane %v1800_v19, 9  ;;  %v1070_v19 = vld [vmem:[#allocation2 + $0xd4] sm:$0x1] }
  0xdd   : > { %2078 = vst.msk [vmem:[#allocation3 + $0x48] sm:$0xff] %vm2068_vm5, %v2039_v30  ;;  %2028 = vrot.lane.b32.xlu0 %v3573_v13, %s2966_s26  ;;  %v1905_v13 = vsel %vm3242_vm13, %v2794_v31, %v1904_v23  ;;  %v1971_v30 = vsel %vm3242_vm13, %v1969_v51, %v1970_v38 }
  0xde   : > { %1714 = vrot.lane.b32.xlu1 %v3703_v39, %s2965_s25  ;;  %v3737_v18 = vcombine.low %v1905_v13, %v1908_v47  ;;  %v1968_v0 = vsel %vm3242_vm13, %v2803_v16, %v1967_v12 }
  0xdf   : > { %v2177_v40 = vpop.permute.xlu0 %2176  ;;  %v3791_v59 = vcombine.low %v1968_v0, %v1971_v30 }
  0xe0   : > { %v2115_v33 = vpop.permute.xlu1 %2114  ;;  %2225 = vst.msk [vmem:[#allocation3] sm:$0xff] %vm2224_vm7, %v2177_v40 }
  0xe1   : > { %2155 = vst.msk [vmem:[#allocation3 + $0x40] sm:$0xff] %vm2146_vm6, %v2115_v33  ;;  %2030 = vrot.lane.b32.xlu0 %v3607_v52, %s2966_s26 }
  0xe2   : > { %1716 = vrot.lane.b32.xlu1 %v3721_v53, %s2965_s25 }
  0xe3   : > { %v887_v27 = vpop.permute.xlu0 %886 }
  0xe4   : > { %v2117_v49 = vpop.permute.xlu1 %2116  ;;  %933 = vst.msk [vmem:[#allocation3 + $0x10] sm:$0xff] %vm930_vm15, %v887_v27  ;;  %v1066_v27 = vld [vmem:[#allocation2 + $0xc4] sm:$0xf] }
  0xe5   : > { %2156 = vst.msk [vmem:[#allocation3 + $0x48] sm:$0xff] %vm2146_vm6, %v2117_v49  ;;  %2106 = vrot.lane.b32.xlu0 %v3607_v52, %s2967_s27  ;;  %v1913_v52 = vrot.slane %v1911_v45, 4  ;;  %v1581_v49 = vshll.u32 %v1066_v27, 16  ;;  %v1585_v4 = vshrl.u32 %v1066_v27, 16  ;;  %v1804_v27 = vld [vmem:[#allocation2 + $0xc4] sm:$0xf] }
  0xe6   : > { %2044 = vrot.lane.b32.xlu1 %v3599_v43, %s2966_s26  ;;  %v2795_v43 = vrot.slane %v1776_v55, 9  ;;  %v2951_v55 = vld [vmem:[#allocation2 + $0xcc] sm:$0xff]  }
  0xe7   : > { %v2179_v57 = vpop.permute.xlu0 %2178  ;;  %v2241_v48 = vld [vmem:[#allocation3] sm:$0xff]  ;;  %v1915_v56 = vsel %vm3242_vm13, %v1913_v52, %v1914_v25  ;;  %v1583_v62 = vrot.slane %v1581_v49, 5  ;;  %v1587_v28 = vrot.slane %v1585_v4, 4  ;;  %v1673_v52 = vshll.u32 %v1069_v36, 16 }
  0xe8   : > { %v2193_v50 = vpop.permute.xlu1 %2192  ;;  %2226 = vst.msk [vmem:[#allocation3 + $0x8] sm:$0xff] %vm2224_vm7, %v2179_v57  ;;  %2874 = vmatprep.mubr.msk.bf16.mxu0 %vm2277_vm8, %v2241_v48  ;;  %v1912_v9 = vsel %vm3242_vm13, %v2795_v43, %v1911_v45  ;;  %v1068_v45 = vld [vmem:[#allocation2 + $0xcc] sm:$0xf] }
  0xe9   : > { %2233 = vst.msk [vmem:[#allocation3 + $0x40] sm:$0xff] %vm2224_vm7, %v2193_v50  ;;  %2108 = vrot.lane.b32.xlu0 %v3737_v18, %s2967_s27  ;;  %v1067_v50 = vld [vmem:[#allocation2 + $0xc8] sm:$0x1]  ;;  %v1667_v43 = vshll.u32 %v1068_v45, 16  ;;  %v1588_v58 = vor.u32 %v1587_v28, %v1583_v62 }
  0xea   : > { %2046 = vrot.lane.b32.xlu1 %v3625_v22, %s2966_s26  ;;  %v1591_v3 = vshll.u32 %v1067_v50, 16 }
  0xeb   : > { %v889_v2 = vpop.permute.xlu0 %888 }
  0xec   : > { %v903_v5 = vpop.permute.xlu1 %902  ;;  %934 = vst.msk [vmem:[#allocation3 + $0x18] sm:$0xff] %vm930_vm15, %v889_v2 }
  0xed   : > { %941 = vst.msk [vmem:[#allocation3 + $0x50] sm:$0xff] %vm930_vm15, %v903_v5  ;;  %2184 = vrot.lane.b32.xlu0 %v3737_v18, %s2968_s30  ;;  %v1677_v5 = vshrl.u32 %v1069_v36, 16  ;;  %v1806_v36 = vld [vmem:[#allocation2 + $0xcc] sm:$0xe] }
  0xee   : > { %2122 = vrot.lane.b32.xlu1 %v3625_v22, %s2967_s27  ;;  %v3770_v22 = vcombine.low %v1912_v9, %v1915_v56  ;;  %v1669_v56 = vrot.slane %v1667_v43, 5 }
  0xef   : > { %v957_v8 = vpop.permute.xlu0 %956  ;;  %v2242_v11 = vld [vmem:[#allocation3 + $0x8] sm:$0xff]  ;;  %v1679_v21 = vrot.slane %v1677_v5, 4 }
  0xf0   : > { %v2195_v14 = vpop.permute.xlu1 %2194  ;;  %v2249_v10 = vld [vmem:[#allocation3 + $0x40] sm:$0xff]  ;;  %1003 = vst.msk [vmem:[#allocation3 + $0x10] sm:$0xff] %vm1000_vm1, %v957_v8  ;;  %2875 = vmatmul.mubr.msk.bf16.vlgmr.msra.gmra.mrb[0].mxu0 %vm2277_vm8, %v2242_v11  ;;  %v1675_v8 = vrot.slane %v1673_v52, 5  ;;  %v2822_v52 = vrot.slane %v1806_v36, 9 }
  0xf1   : > { %2234 = vst.msk [vmem:[#allocation3 + $0x48] sm:$0xff] %vm2224_vm7, %v2195_v14  ;;  %2890 = vmatprep.mubr.msk.bf16.mxu1 %vm2277_vm8, %v2249_v10  ;;  %894 = vrot.lane.b32.xlu0 %v3559_v37, %s2962_s22  ;;  %v1589_v14 = vrot.slane %v1588_v58, 4  ;;  %v1593_v10 = vrot.slane %v1591_v3, 5 }
  0xf2   : > { %2124 = vrot.lane.b32.xlu1 %v3758_v1, %s2967_s27 }
  0xf3   : > { %v959_v23 = vpop.permute.xlu0 %958  ;;  %v1594_v51 = vsel %vm3089_vm9, %v1589_v14, %v1593_v10 }
  0xf4   : > { %v905_v46 = vpop.permute.xlu1 %904  ;;  %1004 = vst.msk [vmem:[#allocation3 + $0x18] sm:$0xff] %vm1000_vm1, %v959_v23 }
  0xf5   : > { %942 = vst.msk [vmem:[#allocation3 + $0x58] sm:$0xff] %vm930_vm15, %v905_v46  ;;  %2186 = vrot.lane.b32.xlu0 %v3770_v22, %s2968_s30  ;;  %v1680_v46 = vor.u32 %v1679_v21, %v1675_v8 }
  0xf6   : > { %2200 = vrot.lane.b32.xlu1 %v3758_v1, %s2968_s30 }
  0xf7   : > { %v1511_v37 = vpop.permute.xlu0 %1510 }
  0xf8   : > { %v973_v31 = vpop.permute.xlu1 %972  ;;  %v2250_v35 = vld [vmem:[#allocation3 + $0x48] sm:$0xff]  ;;  %1557 = vst.msk [vmem:[#allocation3 + $0x10] sm:$0xff] %vm1554_vm3, %v1511_v37 }
  0xf9   : > { %1011 = vst.msk [vmem:[#allocation3 + $0x50] sm:$0xff] %vm1000_vm1, %v973_v31  ;;  %2891 = vmatmul.mubr.msk.bf16.vlgmr.msra.gmra.mrb[0].mxu1 %vm2277_vm8, %v2250_v35  ;;  %896 = vrot.lane.b32.xlu0 %v3340_v29, %s2962_s22  ;;  %v1681_v35 = vrot.slane %v1680_v46, 4 }
  0xfa   : > { %910 = vrot.lane.b32.xlu1 %v3569_v63, %s2962_s22  ;;  %v1065_v63 = vld [vmem:[#allocation2 + $0xc0] sm:$0xf] }
  0xfb   : > { %v1513_v40 = vpop.permute.xlu0 %1512  ;;  %v1572_v17 = vshrl.u32 %v1065_v63, 16 }
  0xfc   : > { %v975_v33 = vpop.permute.xlu1 %974  ;;  %1558 = vst.msk [vmem:[#allocation3 + $0x18] sm:$0xff] %vm1554_vm3, %v1513_v40 }
  0xfd   : > { %1012 = vst.msk [vmem:[#allocation3 + $0x58] sm:$0xff] %vm1000_vm1, %v975_v33  ;;  %964 = vrot.lane.b32.xlu0 %v3340_v29, %s2963_s23  ;;  %v1575_v29 = vshll.u32 %v1065_v63, 16  ;;  %v1574_v57 = vrot.slane %v1572_v17, 4 }
  0xfe   : > { %2202 = vrot.lane.b32.xlu1 %v3791_v59, %s2968_s30 }
  0xff   : > { %v1603_v13 = vpop.permute.xlu0 %1602  ;;  %v1577_v48 = vrot.slane %v1575_v29, 5  ;;  %v1805_v29 = vld [vmem:[#allocation2 + $0xc8] sm:$0x1] }
 0x100   : > { %v1527_v47 = vpop.permute.xlu1 %1526  ;;  %1649 = vst.msk [vmem:[#allocation3 + $0x10] sm:$0xff] %vm1646_vm4, %v1603_v13 }
 0x101   : > { %1565 = vst.msk [vmem:[#allocation3 + $0x50] sm:$0xff] %vm1554_vm3, %v1527_v47  ;;  %966 = vrot.lane.b32.xlu0 %v3173_v26, %s2963_s23  ;;  %v1578_v2 = vor.u32 %v1577_v48, %v1574_v57  ;;  %v1807_v57 = vld [vmem:[#allocation2 + $0xd0] sm:$0xf] }
 0x102   : > { %912 = vrot.lane.b32.xlu1 %v2950_v41, %s2962_s22 }
 0x103   : > { %v1605_v20 = vpop.permute.xlu0 %1604  ;;  %v1579_v12 = vrot.slane %v1578_v2, 4 }
 0x104   : > { %v1529_v54 = vpop.permute.xlu1 %1528  ;;  %1650 = vst.msk [vmem:[#allocation3 + $0x18] sm:$0xff] %vm1646_vm4, %v1605_v20  ;;  %v2090_v20 = vrot.slane %v1804_v27, 5 }
 0x105   : > { %1566 = vst.msk [vmem:[#allocation3 + $0x58] sm:$0xff] %vm1554_vm3, %v1529_v54  ;;  %1518 = vrot.lane.b32.xlu0 %v3676_v42, %s2961_s21  ;;  %v1664_v42 = vshrl.u32 %v1068_v45, 16  ;;  %v1584_v16 = vsel %vm3089_vm9, %v1579_v12, %v1583_v62  ;;  %v2093_v45 = vrot.slane %v1805_v29, 5  ;;  %v2168_v62 = vrot.slane %v1807_v57, 5 }
 0x106   : > { %980 = vrot.lane.b32.xlu1 %v2950_v41, %s2963_s23  ;;  %v2786_v0 = vcombine.low %v1584_v16, %v1594_v51 }
 0x107   : > { %v1695_v26 = vpop.permute.xlu0 %1694  ;;  %v1666_v9 = vrot.slane %v1664_v42, 4 }
 0x108   : > { %v1619_v34 = vpop.permute.xlu1 %1618  ;;  %1741 = vst.msk [vmem:[#allocation3 + $0x10] sm:$0xff] %vm1738_vm0, %v1695_v26 }
 0x109   : > { %1657 = vst.msk [vmem:[#allocation3 + $0x50] sm:$0xff] %vm1646_vm4, %v1619_v34  ;;  %1520 = vrot.lane.b32.xlu0 %v3699_v61, %s2961_s21  ;;  %v1670_v38 = vor.u32 %v1669_v56, %v1666_v9  ;;  %v1808_v34 = vld [vmem:[#allocation2 + $0xd4] sm:$0x1] }
 0x10a   : > { %982 = vrot.lane.b32.xlu1 %v2951_v55, %s2963_s23  ;;  %v2092_v55 = vrot.slane %v2090_v20, 4  ;;  %v2171_v2 = vrot.slane %v1808_v34, 5 }
 0x10b   : > { %v1697_v25 = vpop.permute.xlu0 %1696  ;;  %v1671_v31 = vrot.slane %v1670_v38, 4 }
 0x10c   : > { %v1621_v7 = vpop.permute.xlu1 %1620  ;;  %1742 = vst.msk [vmem:[#allocation3 + $0x18] sm:$0xff] %vm1738_vm0, %v1697_v25  ;;  %v2094_v48 = vsel %vm3242_vm13, %v2092_v55, %v2093_v45  ;;  %v2170_v25 = vrot.slane %v2168_v62, 4 }
 0x10d   : > { %1658 = vst.msk [vmem:[#allocation3 + $0x58] sm:$0xff] %vm1646_vm4, %v1621_v7  ;;  %1610 = vrot.lane.b32.xlu0 %v3699_v61, %s2964_s24  ;;  %v1683_v61 = vshll.u32 %v1070_v19, 16 }
 0x10e   : > { %1534 = vrot.lane.b32.xlu1 %v3703_v39, %s2961_s21  ;;  %v2172_v5 = vsel %vm3242_vm13, %v2170_v25, %v2171_v2 }
 0x10f   : > { %v2025_v11 = vpop.permute.xlu0 %2024  ;;  %v1685_v40 = vrot.slane %v1683_v61, 5 }
 0x110   : > { %v1711_v23 = vpop.permute.xlu1 %1710  ;;  %2071 = vst.msk [vmem:[#allocation3 + $0x10] sm:$0xff] %vm2068_vm5, %v2025_v11 }
 0x111   : > { %1749 = vst.msk [vmem:[#allocation3 + $0x50] sm:$0xff] %vm1738_vm0, %v1711_v23  ;;  %1612 = vrot.lane.b32.xlu0 %v3218_v6, %s2964_s24 }
 0x112   : > { %1536 = vrot.lane.b32.xlu1 %v3721_v53, %s2961_s21 }
 0x113   : > { %v2027_v39 = vpop.permute.xlu0 %2026 }
 0x114   : > { %v1713_v37 = vpop.permute.xlu1 %1712  ;;  %2072 = vst.msk [vmem:[#allocation3 + $0x18] sm:$0xff] %vm2068_vm5, %v2027_v39 }
 0x115   : > { %1750 = vst.msk [vmem:[#allocation3 + $0x58] sm:$0xff] %vm1738_vm0, %v1713_v37  ;;  %1702 = vrot.lane.b32.xlu0 %v3218_v6, %s2965_s25  ;;  %v1676_v6 = vsel %vm3089_vm9, %v1671_v31, %v1675_v8 }
 0x116   : > { %1626 = vrot.lane.b32.xlu1 %v3721_v53, %s2964_s24  ;;  %v1686_v53 = vsel %vm3089_vm9, %v1681_v35, %v1685_v40 }
 0x117   : > { %v2103_v30 = vpop.permute.xlu0 %2102 }
 0x118   : > { %v2041_v33 = vpop.permute.xlu1 %2040  ;;  %2149 = vst.msk [vmem:[#allocation3 + $0x10] sm:$0xff] %vm2146_vm6, %v2103_v30 }
 0x119   : > { %2079 = vst.msk [vmem:[#allocation3 + $0x50] sm:$0xff] %vm2068_vm5, %v2041_v33  ;;  %1704 = vrot.lane.b32.xlu0 %v3209_v44, %s2965_s25  ;;  %v2787_v44 = vcombine.low %v1676_v6, %v1686_v53 }
 0x11a   : > { %1628 = vrot.lane.b32.xlu1 %v2786_v0, %s2964_s24 }
 0x11b   : > { %v2105_v41 = vpop.permute.xlu0 %2104 }
 0x11c   : > { %v2043_v13 = vpop.permute.xlu1 %2042  ;;  %2150 = vst.msk [vmem:[#allocation3 + $0x18] sm:$0xff] %vm2146_vm6, %v2105_v41 }
 0x11d   : > { %2080 = vst.msk [vmem:[#allocation3 + $0x58] sm:$0xff] %vm2068_vm5, %v2043_v13  ;;  %2032 = vrot.lane.b32.xlu0 %v3737_v18, %s2966_s26  ;;  %v1803_v18 = vld [vmem:[#allocation2 + $0xc0] sm:$0xe] }
 0x11e   : > { %1718 = vrot.lane.b32.xlu1 %v2786_v0, %s2965_s25  ;;  %v2820_v54 = vrot.slane %v1803_v18, 9 }
 0x11f   : > { %v2181_v47 = vpop.permute.xlu0 %2180 }
 0x120   : > { %v2119_v63 = vpop.permute.xlu1 %2118  ;;  %2227 = vst.msk [vmem:[#allocation3 + $0x10] sm:$0xff] %vm2224_vm7, %v2181_v47 }
 0x121   : > { %2157 = vst.msk [vmem:[#allocation3 + $0x50] sm:$0xff] %vm2146_vm6, %v2119_v63  ;;  %2034 = vrot.lane.b32.xlu0 %v3770_v22, %s2966_s26 }
 0x122   : > { %1720 = vrot.lane.b32.xlu1 %v2787_v44, %s2965_s25 }
 0x123   : > { %v891_v32 = vpop.permute.xlu0 %890 }
 0x124   : > { %v2121_v17 = vpop.permute.xlu1 %2120  ;;  %935 = vst.msk [vmem:[#allocation3 + $0x20] sm:$0xff] %vm930_vm15, %v891_v32 }
 0x125   : > { %2158 = vst.msk [vmem:[#allocation3 + $0x58] sm:$0xff] %vm2146_vm6, %v2121_v17  ;;  %2110 = vrot.lane.b32.xlu0 %v3770_v22, %s2967_s27  ;;  %v2091_v22 = vsel %vm3242_vm13, %v2820_v54, %v2090_v20 }
 0x126   : > { %2048 = vrot.lane.b32.xlu1 %v3758_v1, %s2966_s26  ;;  %v2821_v50 = vcombine.low %v2091_v22, %v2094_v48 }
 0x127   : > { %v2183_v49 = vpop.permute.xlu0 %2182  ;;  %v2243_v4 = vld [vmem:[#allocation3 + $0x10] sm:$0xff] }
 0x128   : > { %v2197_v26 = vpop.permute.xlu1 %2196  ;;  %2228 = vst.msk [vmem:[#allocation3 + $0x18] sm:$0xff] %vm2224_vm7, %v2183_v49  ;;  %2878 = vmatprep.mubr.msk.bf16.mxu0 %vm2277_vm8, %v2243_v4 }
 0x129   : > { %2235 = vst.msk [vmem:[#allocation3 + $0x50] sm:$0xff] %vm2224_vm7, %v2197_v26  ;;  %2112 = vrot.lane.b32.xlu0 %v3284_v15, %s2967_s27 }
 0x12a   : > { %2050 = vrot.lane.b32.xlu1 %v3791_v59, %s2966_s26 }
 0x12b   : > { %v893_v1 = vpop.permute.xlu0 %892 }
 0x12c   : > { %v907_v28 = vpop.permute.xlu1 %906  ;;  %936 = vst.msk [vmem:[#allocation3 + $0x28] sm:$0xff] %vm930_vm15, %v893_v1 }
 0x12d   : > { %943 = vst.msk [vmem:[#allocation3 + $0x60] sm:$0xff] %vm930_vm15, %v907_v28  ;;  %2188 = vrot.lane.b32.xlu0 %v3284_v15, %s2968_s30 }
 0x12e   : > { %2126 = vrot.lane.b32.xlu1 %v3791_v59, %s2967_s27  ;;  %v2169_v59 = vsel %vm3242_vm13, %v2822_v52, %v2168_v62 }
 0x12f   : > { %v961_v42 = vpop.permute.xlu0 %960  ;;  %v2244_v43 = vld [vmem:[#allocation3 + $0x18] sm:$0xff]  ;;  %v2823_v9 = vcombine.low %v2169_v59, %v2172_v5 }
 0x130   : > { %v2199_v58 = vpop.permute.xlu1 %2198  ;;  %v2251_v3 = vld [vmem:[#allocation3 + $0x50] sm:$0xff]  ;;  %1005 = vst.msk [vmem:[#allocation3 + $0x20] sm:$0xff] %vm1000_vm1, %v961_v42  ;;  %2879 = vmatmul.mubr.msk.bf16.gmra.mrb[4].mxu0 %vm2277_vm8, %v2244_v43 }
 0x131   : > { %2236 = vst.msk [vmem:[#allocation3 + $0x58] sm:$0xff] %vm2224_vm7, %v2199_v58  ;;  %2894 = vmatprep.mubr.msk.bf16.mxu1 %vm2277_vm8, %v2251_v3  ;;  %2190 = vrot.lane.b32.xlu0 %v3297_v24, %s2968_s30 }
 0x132   : > { %2128 = vrot.lane.b32.xlu1 %v2821_v50, %s2967_s27 }
 0x133   : > { %v963_v15 = vpop.permute.xlu0 %962 }
 0x134   : > { %v909_v7 = vpop.permute.xlu1 %908  ;;  %1006 = vst.msk [vmem:[#allocation3 + $0x28] sm:$0xff] %vm1000_vm1, %v963_v15 }
 0x135   : > { %944 = vst.msk [vmem:[#allocation3 + $0x68] sm:$0xff] %vm930_vm15, %v909_v7 }
 0x136   : > { %2204 = vrot.lane.b32.xlu1 %v2821_v50, %s2968_s30 }
 0x137   : > { %v1515_v56 = vpop.permute.xlu0 %1514 }
 0x138   : > { %v977_v8 = vpop.permute.xlu1 %976  ;;  %v2252_v24 = vld [vmem:[#allocation3 + $0x58] sm:$0xff]  ;;  %1559 = vst.msk [vmem:[#allocation3 + $0x20] sm:$0xff] %vm1554_vm3, %v1515_v56 }
 0x139   : > { %1013 = vst.msk [vmem:[#allocation3 + $0x60] sm:$0xff] %vm1000_vm1, %v977_v8  ;;  %2895 = vmatmul.mubr.msk.bf16.gmra.mrb[4].mxu1 %vm2277_vm8, %v2252_v24 }
 0x13a   : > { %2206 = vrot.lane.b32.xlu1 %v2823_v9, %s2968_s30 }
 0x13b   : > { %v1517_v60 = vpop.permute.xlu0 %1516 }
 0x13c   : > { %v979_v11 = vpop.permute.xlu1 %978  ;;  %1560 = vst.msk [vmem:[#allocation3 + $0x28] sm:$0xff] %vm1554_vm3, %v1517_v60  ;;  %v3963_v60 = vld [vmem:[%s4053_s2] ss:$0 sm:$0xff] }
 0x13d   : > { %1014 = vst.msk [vmem:[#allocation3 + $0x68] sm:$0xff] %vm1000_vm1, %v979_v11 }
 0x13f   : > { %v1607_v12 = vpop.permute.xlu0 %1606 }
 0x140   : > { %v1531_v14 = vpop.permute.xlu1 %1530  ;;  %1651 = vst.msk [vmem:[#allocation3 + $0x20] sm:$0xff] %vm1646_vm4, %v1607_v12  ;;  %v3968_v12 = vld [vmem:[%s4054_s3] ss:$0 sm:$0xff] }
 0x141   : > { %1567 = vst.msk [vmem:[#allocation3 + $0x60] sm:$0xff] %vm1554_vm3, %v1531_v14 }
 0x143   : > { %v1609_v10 = vpop.permute.xlu0 %1608 }
 0x144   : > { %v1533_v19 = vpop.permute.xlu1 %1532  ;;  %1652 = vst.msk [vmem:[#allocation3 + $0x28] sm:$0xff] %vm1646_vm4, %v1609_v10 }
 0x145   : > { %1568 = vst.msk [vmem:[#allocation3 + $0x68] sm:$0xff] %vm1554_vm3, %v1533_v19 }
 0x147   : > { %v1699_v21 = vpop.permute.xlu0 %1698 }
 0x148   : > { %v1623_v23 = vpop.permute.xlu1 %1622  ;;  %1743 = vst.msk [vmem:[#allocation3 + $0x20] sm:$0xff] %vm1738_vm0, %v1699_v21 }
 0x149   : > { %1659 = vst.msk [vmem:[#allocation3 + $0x60] sm:$0xff] %vm1646_vm4, %v1623_v23 }
 0x14b   : > { %v1701_v61 = vpop.permute.xlu0 %1700 }
 0x14c   : > { %v1625_v39 = vpop.permute.xlu1 %1624  ;;  %1744 = vst.msk [vmem:[#allocation3 + $0x28] sm:$0xff] %vm1738_vm0, %v1701_v61 }
 0x14d   : > { %1660 = vst.msk [vmem:[#allocation3 + $0x68] sm:$0xff] %vm1646_vm4, %v1625_v39 }
 0x14f   : > { %v2029_v16 = vpop.permute.xlu0 %2028 }
 0x150   : > { %v1715_v51 = vpop.permute.xlu1 %1714  ;;  %2073 = vst.msk [vmem:[#allocation3 + $0x20] sm:$0xff] %vm2068_vm5, %v2029_v16 }
 0x151   : > { %1751 = vst.msk [vmem:[#allocation3 + $0x60] sm:$0xff] %vm1738_vm0, %v1715_v51 }
 0x153   : > { %v2031_v38 = vpop.permute.xlu0 %2030 }
 0x154   : > { %v1717_v46 = vpop.permute.xlu1 %1716  ;;  %2074 = vst.msk [vmem:[#allocation3 + $0x28] sm:$0xff] %vm2068_vm5, %v2031_v38 }
 0x155   : > { %1752 = vst.msk [vmem:[#allocation3 + $0x68] sm:$0xff] %vm1738_vm0, %v1717_v46 }
 0x157   : > { %v2107_v37 = vpop.permute.xlu0 %2106 }
 0x158   : > { %v2045_v0 = vpop.permute.xlu1 %2044  ;;  %2151 = vst.msk [vmem:[#allocation3 + $0x20] sm:$0xff] %vm2146_vm6, %v2107_v37 }
 0x159   : > { %2081 = vst.msk [vmem:[#allocation3 + $0x60] sm:$0xff] %vm2068_vm5, %v2045_v0 }
 0x15b   : > { %v2109_v30 = vpop.permute.xlu0 %2108 }
 0x15c   : > { %v2047_v31 = vpop.permute.xlu1 %2046  ;;  %2152 = vst.msk [vmem:[#allocation3 + $0x28] sm:$0xff] %vm2146_vm6, %v2109_v30 }
 0x15d   : > { %2082 = vst.msk [vmem:[#allocation3 + $0x68] sm:$0xff] %vm2068_vm5, %v2047_v31 }
 0x15f   : > { %v2185_v35 = vpop.permute.xlu0 %2184 }
 0x160   : > { %v2123_v40 = vpop.permute.xlu1 %2122  ;;  %2229 = vst.msk [vmem:[#allocation3 + $0x20] sm:$0xff] %vm2224_vm7, %v2185_v35 }
 0x161   : > { %2159 = vst.msk [vmem:[#allocation3 + $0x60] sm:$0xff] %vm2146_vm6, %v2123_v40 }
 0x163   : > { %v895_v33 = vpop.permute.xlu0 %894 }
 0x164   : > { %v2125_v41 = vpop.permute.xlu1 %2124  ;;  %937 = vst.msk [vmem:[#allocation3 + $0x30] sm:$0xff] %vm930_vm15, %v895_v33 }
 0x165   : > { %2160 = vst.msk [vmem:[#allocation3 + $0x68] sm:$0xff] %vm2146_vm6, %v2125_v41 }
 0x167   : > { %v2187_v6 = vpop.permute.xlu0 %2186  ;;  %v2245_v53 = vld [vmem:[#allocation3 + $0x20] sm:$0xff] }
 0x168   : > { %v2201_v13 = vpop.permute.xlu1 %2200  ;;  %2230 = vst.msk [vmem:[#allocation3 + $0x28] sm:$0xff] %vm2224_vm7, %v2187_v6  ;;  %2882 = vmatprep.mubr.msk.bf16.mxu0 %vm2277_vm8, %v2245_v53 }
 0x169   : > { %2237 = vst.msk [vmem:[#allocation3 + $0x60] sm:$0xff] %vm2224_vm7, %v2201_v13 }
 0x16b   : > { %v897_v44 = vpop.permute.xlu0 %896 }
 0x16c   : > { %v911_v47 = vpop.permute.xlu1 %910  ;;  %938 = vst.msk [vmem:[#allocation3 + $0x38] sm:$0xff] %vm930_vm15, %v897_v44 }
 0x16d   : > { %945 = vst.msk [vmem:[#allocation3 + $0x70] sm:$0xff] %vm930_vm15, %v911_v47 }
 0x16f   : > { %v965_v63 = vpop.permute.xlu0 %964  ;;  %v2246_v27 = vld [vmem:[#allocation3 + $0x28] sm:$0xff] }
 0x170   : > { %v2203_v32 = vpop.permute.xlu1 %2202  ;;  %v2253_v20 = vld [vmem:[#allocation3 + $0x60] sm:$0xff]  ;;  %1007 = vst.msk [vmem:[#allocation3 + $0x30] sm:$0xff] %vm1000_vm1, %v965_v63  ;;  %2883 = vmatmul.mubr.msk.bf16.gmra.mrb[8].mxu0 %vm2277_vm8, %v2246_v27 }
 0x171   : > { %2238 = vst.msk [vmem:[#allocation3 + $0x68] sm:$0xff] %vm2224_vm7, %v2203_v32  ;;  %2898 = vmatprep.mubr.msk.bf16.mxu1 %vm2277_vm8, %v2253_v20 }
 0x173   : > { %v967_v17 = vpop.permute.xlu0 %966 }
 0x174   : > { %v913_v18 = vpop.permute.xlu1 %912  ;;  %1008 = vst.msk [vmem:[#allocation3 + $0x38] sm:$0xff] %vm1000_vm1, %v967_v17 }
 0x175   : > { %946 = vst.msk [vmem:[#allocation3 + $0x78] sm:$0xff] %vm930_vm15, %v913_v18 }
 0x177   : > { %v1519_v29 = vpop.permute.xlu0 %1518 }
 0x178   : > { %v981_v49 = vpop.permute.xlu1 %980  ;;  %v2254_v4 = vld [vmem:[#allocation3 + $0x68] sm:$0xff]  ;;  %1561 = vst.msk [vmem:[#allocation3 + $0x30] sm:$0xff] %vm1554_vm3, %v1519_v29 }
 0x179   : > { %1015 = vst.msk [vmem:[#allocation3 + $0x70] sm:$0xff] %vm1000_vm1, %v981_v49  ;;  %2899 = vmatmul.mubr.msk.bf16.gmra.mrb[8].mxu1 %vm2277_vm8, %v2254_v4 }
 0x17b   : > { %v1521_v54 = vpop.permute.xlu0 %1520 }
 0x17c   : > { %v983_v55 = vpop.permute.xlu1 %982  ;;  %1562 = vst.msk [vmem:[#allocation3 + $0x38] sm:$0xff] %vm1554_vm3, %v1521_v54 }
 0x17d   : > { %1016 = vst.msk [vmem:[#allocation3 + $0x78] sm:$0xff] %vm1000_vm1, %v983_v55 }
 0x17f   : > { %v1611_v45 = vpop.permute.xlu0 %1610 }
 0x180   : > { %v1535_v26 = vpop.permute.xlu1 %1534  ;;  %1653 = vst.msk [vmem:[#allocation3 + $0x30] sm:$0xff] %vm1646_vm4, %v1611_v45 }
 0x181   : > { %1569 = vst.msk [vmem:[#allocation3 + $0x70] sm:$0xff] %vm1554_vm3, %v1535_v26 }
 0x183   : > { %v1613_v57 = vpop.permute.xlu0 %1612 }
 0x184   : > { %v1537_v1 = vpop.permute.xlu1 %1536  ;;  %1654 = vst.msk [vmem:[#allocation3 + $0x38] sm:$0xff] %vm1646_vm4, %v1613_v57 }
 0x185   : > { %1570 = vst.msk [vmem:[#allocation3 + $0x78] sm:$0xff] %vm1554_vm3, %v1537_v1 }
 0x187   : > { %v1703_v22 = vpop.permute.xlu0 %1702 }
 0x188   : > { %v1627_v48 = vpop.permute.xlu1 %1626  ;;  %1745 = vst.msk [vmem:[#allocation3 + $0x30] sm:$0xff] %vm1738_vm0, %v1703_v22 }
 0x189   : > { %1661 = vst.msk [vmem:[#allocation3 + $0x70] sm:$0xff] %vm1646_vm4, %v1627_v48 }
 0x18b   : > { %v1705_v62 = vpop.permute.xlu0 %1704 }
 0x18c   : > { %v1629_v28 = vpop.permute.xlu1 %1628  ;;  %1746 = vst.msk [vmem:[#allocation3 + $0x38] sm:$0xff] %vm1738_vm0, %v1705_v62 }
 0x18d   : > { %1662 = vst.msk [vmem:[#allocation3 + $0x78] sm:$0xff] %vm1646_vm4, %v1629_v28 }
 0x18f   : > { %v2033_v36 = vpop.permute.xlu0 %2032 }
 0x190   : > { %v1719_v34 = vpop.permute.xlu1 %1718  ;;  %2075 = vst.msk [vmem:[#allocation3 + $0x30] sm:$0xff] %vm2068_vm5, %v2033_v36 }
 0x191   : > { %1753 = vst.msk [vmem:[#allocation3 + $0x70] sm:$0xff] %vm1738_vm0, %v1719_v34 }
 0x193   : > { %v2035_v50 = vpop.permute.xlu0 %2034 }
 0x194   : > { %v1721_v42 = vpop.permute.xlu1 %1720  ;;  %2076 = vst.msk [vmem:[#allocation3 + $0x38] sm:$0xff] %vm2068_vm5, %v2035_v50 }
 0x195   : > { %1754 = vst.msk [vmem:[#allocation3 + $0x78] sm:$0xff] %vm1738_vm0, %v1721_v42 }
 0x197   : > { %v2111_v43 = vpop.permute.xlu0 %2110 }
 0x198   : > { %v2049_v52 = vpop.permute.xlu1 %2048  ;;  %2153 = vst.msk [vmem:[#allocation3 + $0x30] sm:$0xff] %vm2146_vm6, %v2111_v43 }
 0x199   : > { %2083 = vst.msk [vmem:[#allocation3 + $0x70] sm:$0xff] %vm2068_vm5, %v2049_v52 }
 0x19b   : > { %v2113_v25 = vpop.permute.xlu0 %2112 }
 0x19c   : > { %v2051_v2 = vpop.permute.xlu1 %2050  ;;  %2154 = vst.msk [vmem:[#allocation3 + $0x38] sm:$0xff] %vm2146_vm6, %v2113_v25 }
 0x19d   : > { %2084 = vst.msk [vmem:[#allocation3 + $0x78] sm:$0xff] %vm2068_vm5, %v2051_v2 }
 0x19f   : > { %v2189_v58 = vpop.permute.xlu0 %2188 }
 0x1a0   : > { %v2127_v3 = vpop.permute.xlu1 %2126  ;;  %2231 = vst.msk [vmem:[#allocation3 + $0x30] sm:$0xff] %vm2224_vm7, %v2189_v58 }
 0x1a1   : > { %2161 = vst.msk [vmem:[#allocation3 + $0x70] sm:$0xff] %vm2146_vm6, %v2127_v3 }
 0x1a3   : > { %v2191_v15 = vpop.permute.xlu0 %2190 }
 0x1a4   : > { %v2129_v59 = vpop.permute.xlu1 %2128  ;;  %2232 = vst.msk [vmem:[#allocation3 + $0x38] sm:$0xff] %vm2224_vm7, %v2191_v15 }
 0x1a5   : > { %2162 = vst.msk [vmem:[#allocation3 + $0x78] sm:$0xff] %vm2146_vm6, %v2129_v59 }
 0x1a7   : > { %v2247_v5 = vld [vmem:[#allocation3 + $0x30] sm:$0xff] }
 0x1a8   : > { %v2205_v7 = vpop.permute.xlu1 %2204  ;;  %2886 = vmatprep.mubr.msk.bf16.mxu0 %vm2277_vm8, %v2247_v5 }
 0x1a9   : > { %2239 = vst.msk [vmem:[#allocation3 + $0x70] sm:$0xff] %vm2224_vm7, %v2205_v7 }
 0x1ab   : > { %v2248_v9 = vld [vmem:[#allocation3 + $0x38] sm:$0xff] }
 0x1ac   : > { %v2207_v56 = vpop.permute.xlu1 %2206  ;;  %2887 = vmatmul.mubr.msk.bf16.gmra.mrb[12].mxu0 %vm2277_vm8, %v2248_v9 }
 0x1ad   : > { %2240 = vst.msk [vmem:[#allocation3 + $0x78] sm:$0xff] %vm2224_vm7, %v2207_v56 }
 0x1b0   : > { %v2255_v8 = vld [vmem:[#allocation3 + $0x70] sm:$0xff] }
 0x1b1   : > { %2902 = vmatprep.mubr.msk.bf16.mxu1 %vm2277_vm8, %v2255_v8 }
 0x1b4   : > { %v2256_v24 = vld [vmem:[#allocation3 + $0x78] sm:$0xff] }
 0x1b5   : > { %2903 = vmatmul.mubr.msk.bf16.gmra.mrb[12].mxu1 %vm2277_vm8, %v2256_v24 }
 0x1c3   : > { %v2876_v11 = vpop.f32.mrb[0].mxu0 }
 0x1c4   : > { %v2500_v14 = vmul.f32 %v2876_v11, %v3963_v60  ;;  %v2364_v10 = vpop.f32.mrb[1].mxu0 }
 0x1c5   : > { %v2498_v19 = vmul.f32 %v3963_v60, %v2364_v10  ;;  %v2877_v21 = vpop.f32.mrb[2].mxu0 }
 0x1c6   : > { %v2539_v23 = vadd.f32 %v3968_v12, %v2500_v14  ;;  %v2501_v61 = vmul.f32 %v2877_v21, %v3963_v60  ;;  %v2367_v39 = vpop.f32.mrb[3].mxu0 }
 0x1c7   : > { %v2537_v16 = vadd.f32 %v3968_v12, %v2498_v19  ;;  %v2499_v51 = vmul.f32 %v3963_v60, %v2367_v39 }
 0x1c8   : > { %v2571_v38 = vmax.f32 %v2539_v23, 0.0  ;;  %v2540_v46 = vadd.f32 %v3968_v12, %v2501_v61 }
 0x1c9   : > { %v2569_v37 = vmax.f32 %v2537_v16, 0.0  ;;  %v2538_v0 = vadd.f32 %v3968_v12, %v2499_v51 }
 0x1ca   : > { %v2572_v30 = vmax.f32 %v2540_v46, 0.0 }
 0x1cb   : > { %v2601_v31 = vadd.f32 %v2571_v38, %v2569_v37  ;;  %v2570_v35 = vmax.f32 %v2538_v0, 0.0 }
 0x1cc   : > { %v2892_v40 = vpop.f32.mrb[0].mxu1 }
 0x1cd   : > { %2617 = vst [vmem:[#allocation4] sm:$0xff] %v2601_v31  ;;  %v2602_v33 = vadd.f32 %v2572_v30, %v2570_v35  ;;  %v2516_v41 = vmul.f32 %v2892_v40, %v3963_v60  ;;  %v2428_v6 = vpop.f32.mrb[1].mxu1 }
 0x1ce   : > { %v2514_v53 = vmul.f32 %v3963_v60, %v2428_v6  ;;  %v2893_v13 = vpop.f32.mrb[2].mxu1 }
 0x1cf   : > { %2618 = vst [vmem:[#allocation4 + $0x8] sm:$0xff] %v2602_v33  ;;  %v2555_v44 = vadd.f32 %v3968_v12, %v2516_v41  ;;  %v2517_v47 = vmul.f32 %v2893_v13, %v3963_v60  ;;  %v2431_v63 = vpop.f32.mrb[3].mxu1 }
 0x1d0   : > { %v2553_v27 = vadd.f32 %v3968_v12, %v2514_v53  ;;  %v2515_v32 = vmul.f32 %v3963_v60, %v2431_v63 }
 0x1d1   : > { %v2587_v20 = vmax.f32 %v2555_v44, 0.0  ;;  %v2556_v17 = vadd.f32 %v3968_v12, %v2517_v47 }
 0x1d2   : > { %v2585_v18 = vmax.f32 %v2553_v27, 0.0  ;;  %v2554_v29 = vadd.f32 %v3968_v12, %v2515_v32 }
 0x1d3   : > { %v2588_v49 = vmax.f32 %v2556_v17, 0.0 }
 0x1d4   : > { %v2609_v4 = vadd.f32 %v2587_v20, %v2585_v18  ;;  %v2586_v54 = vmax.f32 %v2554_v29, 0.0 }
 0x1d6   : > { %v2633_v55 = vld [vmem:[#allocation4] ss:$2 sm:$0xff]  ;;  %v2649_v45 = vld [vmem:[#allocation4 + $0x1] ss:$2 sm:$0xff]  ;;  %2625 = vst [vmem:[#allocation4 + $0x40] sm:$0xff] %v2609_v4  ;;  %v2610_v26 = vadd.f32 %v2588_v49, %v2586_v54 }
 0x1d7   : > { %v2664_v57 = vadd.f32 %v2649_v45, %v2633_v55 }
 0x1d8   : > { %2626 = vst [vmem:[#allocation4 + $0x48] sm:$0xff] %v2610_v26 }
 0x1d9   : > { %v2672_v1 = vmul.f32 0.25, %v2664_v57 }
 0x1db   : > { %2680 = vst [vmem:[%s3990_s18] sm:$0xff] %v2672_v1 }
 0x1df   : > { %v2641_v22 = vld [vmem:[#allocation4 + $0x40] ss:$2 sm:$0xff]  ;;  %v2657_v48 = vld [vmem:[#allocation4 + $0x41] ss:$2 sm:$0xff] }
 0x1e0   : > { %v2668_v62 = vadd.f32 %v2657_v48, %v2641_v22 }
 0x1e2   : > { %v2676_v28 = vmul.f32 0.25, %v2668_v62 }
 0x1e4   : > { %2684 = vst [vmem:[%s3990_s18 + $0x20] sm:$0xff] %v2676_v28 }
 0x203   : > { %v2880_v36 = vpop.f32.mrb[4].mxu0 }
 0x204   : > { %v2504_v34 = vmul.f32 %v2880_v36, %v3963_v60  ;;  %v2380_v50 = vpop.f32.mrb[5].mxu0 }
 0x205   : > { %v2502_v42 = vmul.f32 %v3963_v60, %v2380_v50  ;;  %v2881_v43 = vpop.f32.mrb[6].mxu0 }
 0x206   : > { %v2543_v52 = vadd.f32 %v3968_v12, %v2504_v34  ;;  %v2505_v25 = vmul.f32 %v2881_v43, %v3963_v60  ;;  %v2383_v2 = vpop.f32.mrb[7].mxu0 }
 0x207   : > { %v2541_v58 = vadd.f32 %v3968_v12, %v2502_v42  ;;  %v2503_v3 = vmul.f32 %v3963_v60, %v2383_v2 }
 0x208   : > { %v2575_v15 = vmax.f32 %v2543_v52, 0.0  ;;  %v2544_v59 = vadd.f32 %v3968_v12, %v2505_v25 }
 0x209   : > { %v2573_v5 = vmax.f32 %v2541_v58, 0.0  ;;  %v2542_v7 = vadd.f32 %v3968_v12, %v2503_v3 }
 0x20a   : > { %v2576_v9 = vmax.f32 %v2544_v59, 0.0 }
 0x20b   : > { %v2603_v56 = vadd.f32 %v2575_v15, %v2573_v5  ;;  %v2574_v8 = vmax.f32 %v2542_v7, 0.0 }
 0x20c   : > { %v2896_v24 = vpop.f32.mrb[4].mxu1 }
 0x20d   : > { %2619 = vst [vmem:[#allocation4 + $0x10] sm:$0xff] %v2603_v56  ;;  %v2604_v11 = vadd.f32 %v2576_v9, %v2574_v8  ;;  %v2520_v14 = vmul.f32 %v2896_v24, %v3963_v60  ;;  %v2444_v10 = vpop.f32.mrb[5].mxu1 }
 0x20e   : > { %v2518_v19 = vmul.f32 %v3963_v60, %v2444_v10  ;;  %v2897_v21 = vpop.f32.mrb[6].mxu1 }
 0x20f   : > { %2620 = vst [vmem:[#allocation4 + $0x18] sm:$0xff] %v2604_v11  ;;  %v2559_v23 = vadd.f32 %v3968_v12, %v2520_v14  ;;  %v2521_v61 = vmul.f32 %v2897_v21, %v3963_v60  ;;  %v2447_v39 = vpop.f32.mrb[7].mxu1 }
 0x210   : > { %v2557_v16 = vadd.f32 %v3968_v12, %v2518_v19  ;;  %v2519_v51 = vmul.f32 %v3963_v60, %v2447_v39 }
 0x211   : > { %v2591_v38 = vmax.f32 %v2559_v23, 0.0  ;;  %v2560_v46 = vadd.f32 %v3968_v12, %v2521_v61 }
 0x212   : > { %v2589_v37 = vmax.f32 %v2557_v16, 0.0  ;;  %v2558_v0 = vadd.f32 %v3968_v12, %v2519_v51 }
 0x213   : > { %v2592_v30 = vmax.f32 %v2560_v46, 0.0 }
 0x214   : > { %v2611_v31 = vadd.f32 %v2591_v38, %v2589_v37  ;;  %v2590_v35 = vmax.f32 %v2558_v0, 0.0 }
 0x216   : > { %v2635_v40 = vld [vmem:[#allocation4 + $0x10] ss:$2 sm:$0xff]  ;;  %v2651_v33 = vld [vmem:[#allocation4 + $0x11] ss:$2 sm:$0xff]  ;;  %2627 = vst [vmem:[#allocation4 + $0x50] sm:$0xff] %v2611_v31  ;;  %v2612_v41 = vadd.f32 %v2592_v30, %v2590_v35 }
 0x217   : > { %v2665_v6 = vadd.f32 %v2651_v33, %v2635_v40 }
 0x218   : > { %2628 = vst [vmem:[#allocation4 + $0x58] sm:$0xff] %v2612_v41 }
 0x219   : > { %v2673_v53 = vmul.f32 0.25, %v2665_v6 }
 0x21b   : > { %2681 = vst [vmem:[%s3990_s18 + $0x8] sm:$0xff] %v2673_v53 }
 0x21f   : > { %v2643_v13 = vld [vmem:[#allocation4 + $0x50] ss:$2 sm:$0xff]  ;;  %v2659_v44 = vld [vmem:[#allocation4 + $0x51] ss:$2 sm:$0xff] }
 0x220   : > { %v2669_v47 = vadd.f32 %v2659_v44, %v2643_v13 }
 0x222   : > { %v2677_v63 = vmul.f32 0.25, %v2669_v47 }
 0x224   : > { %2685 = vst [vmem:[%s3990_s18 + $0x28] sm:$0xff] %v2677_v63 }
 0x243   : > { %v2884_v27 = vpop.f32.mrb[8].mxu0 }
 0x244   : > { %v2508_v32 = vmul.f32 %v2884_v27, %v3963_v60  ;;  %v2396_v20 = vpop.f32.mrb[9].mxu0 }
 0x245   : > { %v2506_v17 = vmul.f32 %v3963_v60, %v2396_v20  ;;  %v2885_v18 = vpop.f32.mrb[10].mxu0 }
 0x246   : > { %v2547_v29 = vadd.f32 %v3968_v12, %v2508_v32  ;;  %v2509_v49 = vmul.f32 %v2885_v18, %v3963_v60  ;;  %v2399_v4 = vpop.f32.mrb[11].mxu0 }
 0x247   : > { %v2545_v54 = vadd.f32 %v3968_v12, %v2506_v17  ;;  %v2507_v55 = vmul.f32 %v3963_v60, %v2399_v4 }
 0x248   : > { %v2579_v45 = vmax.f32 %v2547_v29, 0.0  ;;  %v2548_v26 = vadd.f32 %v3968_v12, %v2509_v49 }
 0x249   : > { %v2577_v57 = vmax.f32 %v2545_v54, 0.0  ;;  %v2546_v1 = vadd.f32 %v3968_v12, %v2507_v55 }
 0x24a   : > { %v2580_v22 = vmax.f32 %v2548_v26, 0.0 }
 0x24b   : > { %v2605_v48 = vadd.f32 %v2579_v45, %v2577_v57  ;;  %v2578_v62 = vmax.f32 %v2546_v1, 0.0 }
 0x24c   : > { %v2900_v28 = vpop.f32.mrb[8].mxu1 }
 0x24d   : > { %2621 = vst [vmem:[#allocation4 + $0x20] sm:$0xff] %v2605_v48  ;;  %v2606_v36 = vadd.f32 %v2580_v22, %v2578_v62  ;;  %v2524_v34 = vmul.f32 %v2900_v28, %v3963_v60  ;;  %v2460_v50 = vpop.f32.mrb[9].mxu1 }
 0x24e   : > { %v2522_v42 = vmul.f32 %v3963_v60, %v2460_v50  ;;  %v2901_v43 = vpop.f32.mrb[10].mxu1 }
 0x24f   : > { %2622 = vst [vmem:[#allocation4 + $0x28] sm:$0xff] %v2606_v36  ;;  %v2563_v52 = vadd.f32 %v3968_v12, %v2524_v34  ;;  %v2525_v25 = vmul.f32 %v2901_v43, %v3963_v60  ;;  %v2463_v2 = vpop.f32.mrb[11].mxu1 }
 0x250   : > { %v2561_v58 = vadd.f32 %v3968_v12, %v2522_v42  ;;  %v2523_v3 = vmul.f32 %v3963_v60, %v2463_v2 }
 0x251   : > { %v2595_v15 = vmax.f32 %v2563_v52, 0.0  ;;  %v2564_v59 = vadd.f32 %v3968_v12, %v2525_v25 }
 0x252   : > { %v2593_v5 = vmax.f32 %v2561_v58, 0.0  ;;  %v2562_v7 = vadd.f32 %v3968_v12, %v2523_v3 }
 0x253   : > { %v2596_v9 = vmax.f32 %v2564_v59, 0.0 }
 0x254   : > { %v2613_v56 = vadd.f32 %v2595_v15, %v2593_v5  ;;  %v2594_v8 = vmax.f32 %v2562_v7, 0.0 }
 0x256   : > { %v2637_v24 = vld [vmem:[#allocation4 + $0x20] ss:$2 sm:$0xff]  ;;  %v2653_v11 = vld [vmem:[#allocation4 + $0x21] ss:$2 sm:$0xff]  ;;  %2629 = vst [vmem:[#allocation4 + $0x60] sm:$0xff] %v2613_v56  ;;  %v2614_v14 = vadd.f32 %v2596_v9, %v2594_v8 }
 0x257   : > { %v2666_v10 = vadd.f32 %v2653_v11, %v2637_v24 }
 0x258   : > { %2630 = vst [vmem:[#allocation4 + $0x68] sm:$0xff] %v2614_v14 }
 0x259   : > { %v2674_v19 = vmul.f32 0.25, %v2666_v10 }
 0x25b   : > { %2682 = vst [vmem:[%s3990_s18 + $0x10] sm:$0xff] %v2674_v19 }
 0x25f   : > { %v2645_v21 = vld [vmem:[#allocation4 + $0x60] ss:$2 sm:$0xff]  ;;  %v2661_v23 = vld [vmem:[#allocation4 + $0x61] ss:$2 sm:$0xff] }
 0x260   : > { %v2670_v61 = vadd.f32 %v2661_v23, %v2645_v21 }
 0x262   : > { %v2678_v39 = vmul.f32 0.25, %v2670_v61 }
 0x264   : > { %2686 = vst [vmem:[%s3990_s18 + $0x30] sm:$0xff] %v2678_v39 }
 0x27f   : > { %v2888_v16 = vpop.f32.mrb[12].mxu0 }
 0x280   : > { %v2512_v51 = vmul.f32 %v2888_v16, %v3963_v60  ;;  %v2412_v38 = vpop.f32.mrb[13].mxu0 }
 0x281   : > { %v2510_v46 = vmul.f32 %v3963_v60, %v2412_v38  ;;  %v2889_v37 = vpop.f32.mrb[14].mxu0 }
 0x282   : > { %v2551_v0 = vadd.f32 %v3968_v12, %v2512_v51  ;;  %v2513_v30 = vmul.f32 %v2889_v37, %v3963_v60  ;;  %v2415_v31 = vpop.f32.mrb[15].mxu0 }
 0x283   : > { %v2549_v35 = vadd.f32 %v3968_v12, %v2510_v46  ;;  %v2511_v40 = vmul.f32 %v3963_v60, %v2415_v31 }
 0x284   : > { %v2583_v33 = vmax.f32 %v2551_v0, 0.0  ;;  %v2552_v41 = vadd.f32 %v3968_v12, %v2513_v30 }
 0x285   : > { %v2581_v6 = vmax.f32 %v2549_v35, 0.0  ;;  %v2550_v53 = vadd.f32 %v3968_v12, %v2511_v40 }
 0x286   : > { %v2584_v13 = vmax.f32 %v2552_v41, 0.0 }
 0x287   : > { %v2607_v44 = vadd.f32 %v2583_v33, %v2581_v6  ;;  %v2582_v47 = vmax.f32 %v2550_v53, 0.0 }
 0x288   : > { %v2904_v63 = vpop.f32.mrb[12].mxu1 }
 0x289   : > { %2623 = vst [vmem:[#allocation4 + $0x30] sm:$0xff] %v2607_v44  ;;  %v2608_v27 = vadd.f32 %v2584_v13, %v2582_v47  ;;  %v2528_v32 = vmul.f32 %v2904_v63, %v3963_v60  ;;  %v2476_v20 = vpop.f32.mrb[13].mxu1 }
 0x28a   : > { %v2526_v17 = vmul.f32 %v3963_v60, %v2476_v20  ;;  %v2905_v18 = vpop.f32.mrb[14].mxu1 }
 0x28b   : > { %2624 = vst [vmem:[#allocation4 + $0x38] sm:$0xff] %v2608_v27  ;;  %v2567_v29 = vadd.f32 %v3968_v12, %v2528_v32  ;;  %v2529_v49 = vmul.f32 %v2905_v18, %v3963_v60  ;;  %v2479_v4 = vpop.f32.mrb[15].mxu1 }
 0x28c   : > { %v2565_v54 = vadd.f32 %v3968_v12, %v2526_v17  ;;  %v2527_v55 = vmul.f32 %v3963_v60, %v2479_v4 }
 0x28d   : > { %v2599_v45 = vmax.f32 %v2567_v29, 0.0  ;;  %v2568_v26 = vadd.f32 %v3968_v12, %v2529_v49 }
 0x28e   : > { %v2597_v57 = vmax.f32 %v2565_v54, 0.0  ;;  %v2566_v1 = vadd.f32 %v3968_v12, %v2527_v55 }
 0x28f   : > { %v2600_v22 = vmax.f32 %v2568_v26, 0.0 }
 0x290   : > { %v2615_v48 = vadd.f32 %v2599_v45, %v2597_v57  ;;  %v2598_v62 = vmax.f32 %v2566_v1, 0.0 }
 0x292   : > { %v2639_v28 = vld [vmem:[#allocation4 + $0x30] ss:$2 sm:$0xff]  ;;  %v2655_v36 = vld [vmem:[#allocation4 + $0x31] ss:$2 sm:$0xff]  ;;  %2631 = vst [vmem:[#allocation4 + $0x70] sm:$0xff] %v2615_v48  ;;  %v2616_v34 = vadd.f32 %v2600_v22, %v2598_v62 }
 0x293   : > { %v2667_v50 = vadd.f32 %v2655_v36, %v2639_v28 }
 0x294   : > { %2632 = vst [vmem:[#allocation4 + $0x78] sm:$0xff] %v2616_v34 }
 0x295   : > { %v2675_v42 = vmul.f32 0.25, %v2667_v50 }
 0x297   : > { %2683 = vst [vmem:[%s3990_s18 + $0x18] sm:$0xff] %v2675_v42 }
 0x29b   : > { %v2647_v43 = vld [vmem:[#allocation4 + $0x70] ss:$2 sm:$0xff]  ;;  %v2663_v60 = vld [vmem:[#allocation4 + $0x71] ss:$2 sm:$0xff] }
 0x29c   : > { %v2671_v52 = vadd.f32 %v2663_v60, %v2647_v43 }
 0x29e   : > { %v2679_v25 = vmul.f32 0.25, %v2671_v52 }
 0x2a0   : > { %2687 = vst [vmem:[%s3990_s18 + $0x38] sm:$0xff] %v2679_v25 }
 0x2a1 PF: > { %s14_s15 = sadd.s32 1, %s2958_s15  }
 0x2a2   : > { %p11_p4 = scmp.ge.s32.totalorder %s14_s15, 4  }
 0x2a4   :  { %13 = sbr.rel (!%p11_p4) target bundleno = 1 (0x1), region = 82 }

// kernel: conv_block_forward.2
= control target key start
LH: loop header
LB: loop body
LE: loop exit
PB: predicated region body
PF: predicated region fallthrough
CT: control target
= control target key end

     0   :  { %s2890_s12 = smov 0   ;;  %s3886_s0 = inlined_call_operand.vmem [shape: bf16[2,16,16,4], index: 0, kind: input, shape index: {}]   ;;  %s3887_s1 = inlined_call_operand.vmem [shape: bf16[36,128], index: 1, kind: input, shape index: {}]   ;;  %s3888_s2 = inlined_call_operand.vmem [shape: f32[2,1,128], index: 2, kind: output, shape index: {0}]   ;;  %s3889_s3 = inlined_call_operand.vmem [shape: f32[2,1,128], index: 3, kind: output, shape index: {1}]  }
   0x1 LB: > { %s2649_s13 = sadd.s32 4294967295, %s2859_s12   ;;  %p2653_p0 = scmp.ge.s32.totalorder %s2859_s12, 1  ;;  %s2859_s12 = sphi %s2890_s12, %s14_s12  }
   0x2   : > { %p140_p1 = scmp.lt.s32.totalorder %s2859_s12, 3 }
   0x4   : > { %p141_p2 = pnand %p2653_p0, %p140_p1 }
   0x5   : > { %vm209_vm0 = vcmask (!%p141_p2), 27648   ;;  %vm212_vm1 = vcmask (!%p141_p2), 24576   ;;  %v2861_v0 = vmov (!%p141_p2), 0   ;;  %p165_p3 = scmp.lt.s32.totalorder (!%p141_p2), %s2649_s13, 1  ;;  %vm1835_vm2 = vcmask (!%p141_p2), 1042432   ;;  %s2862_s18 = smov (!%p141_p2), 8  }
   0x6   : > { %144 = sbr.rel (%p141_p2) target bundleno = 663 (0x297), region = 28  ;;  %210 = vst.msk [vmem:[#allocation2] sm:$0xf] (!%p141_p2), %vm209_vm0, %v2861_v0  ;;  %211 = vst.msk [vmem:[#allocation2 + $0x4] sm:$0xf] (!%p141_p2), %vm209_vm0, %v2861_v0  ;;  %vm1836_vm3 = vcmask (!%p141_p2), 1046532  }
   0x7   : > { %213 = vst.msk [vmem:[#allocation2 + $0x8] sm:$0x1] (!%p141_p2), %vm212_vm1, %v2861_v0  ;;  %216 = vst.msk [vmem:[#allocation2 + $0x14] sm:$0x1] (!%p141_p2), %vm212_vm1, %v2861_v0  ;;  %vm1049_vm4 = vsmask.f32 (!%p141_p2), 3328 }
   0x8   : > { %214 = vst.msk [vmem:[#allocation2 + $0xc] sm:$0xf] (!%p141_p2), %vm209_vm0, %v2861_v0  ;;  %215 = vst.msk [vmem:[#allocation2 + $0x10] sm:$0xf] (!%p141_p2), %vm209_vm0, %v2861_v0  ;;  %vm1050_vm5 = vsmask.f32 (!%p141_p2), 7440 }
   0x9   : > { %217 = vst.msk [vmem:[#allocation2 + $0x18] sm:$0xf] (!%p141_p2), %vm209_vm0, %v2861_v0  ;;  %218 = vst.msk [vmem:[#allocation2 + $0x1c] sm:$0xf] (!%p141_p2), %vm209_vm0, %v2861_v0  ;;  %vm265_vm7 = vsmask.f32 (!%p141_p2), 256 }
   0xa   : > { %219 = vst.msk [vmem:[#allocation2 + $0x20] sm:$0x1] (!%p141_p2), %vm212_vm1, %v2861_v0  ;;  %222 = vst.msk [vmem:[#allocation2 + $0x2c] sm:$0x1] (!%p141_p2), %vm212_vm1, %v2861_v0  ;;  %vm266_vm8 = vsmask.f32 (!%p141_p2), 4368 }
   0xb   : > { %220 = vst.msk [vmem:[#allocation2 + $0x24] sm:$0xf] (!%p141_p2), %vm209_vm0, %v2861_v0  ;;  %221 = vst.msk [vmem:[#allocation2 + $0x28] sm:$0xf] (!%p141_p2), %vm209_vm0, %v2861_v0  ;;  %vm590_vm9 = vsmask.f32 (!%p141_p2), 7938 }
   0xc   : > { %223 = vst.msk [vmem:[#allocation2 + $0x30] sm:$0xf] (!%p141_p2), %vm209_vm0, %v2861_v0  ;;  %224 = vst.msk [vmem:[#allocation2 + $0x34] sm:$0xf] (!%p141_p2), %vm209_vm0, %v2861_v0  ;;  %s2863_s19 = smov (!%p141_p2), 4   ;;  %s2864_s20 = smov (!%p141_p2), 24  }
   0xd   : > { %225 = vst.msk [vmem:[#allocation2 + $0x38] sm:$0x1] %vm212_vm1, %v2861_v0  ;;  %228 = vst.msk [vmem:[#allocation2 + $0x44] sm:$0x1] %vm212_vm1, %v2861_v0  ;;  %s3901_s13 = smov (!%p165_p3, %s2649_s13), 1  ;;  %s2865_s21 = smov 12  }
   0xe   : > { %226 = vst.msk [vmem:[#allocation2 + $0x3c] sm:$0xf] %vm209_vm0, %v2861_v0  ;;  %227 = vst.msk [vmem:[#allocation2 + $0x40] sm:$0xf] %vm209_vm0, %v2861_v0  ;;  %s2749_s14 = sshll.u32 %s3901_s13, 7  ;;  %s2866_s22 = smov 20  }
   0xf   : > { %229 = vst.msk [vmem:[#allocation2 + $0x48] sm:$0xf] %vm209_vm0, %v2861_v0  ;;  %230 = vst.msk [vmem:[#allocation2 + $0x4c] sm:$0xf] %vm209_vm0, %v2861_v0  ;;  %s2962_s17 = scalar_lea.vmem %s3886_s0, %s2749_s14  ;;  %v1733_v3 = vld [vmem:[#allocation2] sm:$0xe]  ;;  %s172_s7 = scalar_lea.vmem %s3888_s2, %s3901_s13 }
  0x10   : > { %231 = vst.msk [vmem:[#allocation2 + $0x50] sm:$0x1] %vm212_vm1, %v2861_v0  ;;  %234 = vst.msk [vmem:[#allocation2 + $0x5c] sm:$0x1] %vm212_vm1, %v2861_v0  ;;  %v179_v2 = vld [vmem:[%s2962_s17 + $0x8] sm:$0xf]  ;;  %s175_s10 = scalar_lea.vmem %s3889_s3, %s3901_s13 }
  0x11   : > { %232 = vst.msk [vmem:[#allocation2 + $0x54] sm:$0xf] %vm209_vm0, %v2861_v0  ;;  %233 = vst.msk [vmem:[#allocation2 + $0x58] sm:$0xf] %vm209_vm0, %v2861_v0  ;;  %v1734_v4 = vld [vmem:[#allocation2 + $0x4] sm:$0xf] }
  0x12   : > { %235 = vst.msk [vmem:[#allocation2 + $0x60] sm:$0xf] %vm209_vm0, %v2861_v0  ;;  %236 = vst.msk [vmem:[#allocation2 + $0x64] sm:$0xf] %vm209_vm0, %v2861_v0  ;;  %v1735_v5 = vld [vmem:[#allocation2 + $0x8] sm:$0x1] }
  0x13   : > { %237 = vst.msk [vmem:[#allocation2 + $0x68] sm:$0x1] %vm212_vm1, %v2861_v0  ;;  %240 = vst.msk [vmem:[#allocation2 + $0x74] sm:$0x1] %vm212_vm1, %v2861_v0  ;;  %v2692_v6 = vrot.slane %v1733_v3, 9  ;;  %v1840_v7 = vrot.slane %v1734_v4, 5 }
  0x14   : > { %238 = vst.msk [vmem:[#allocation2 + $0x6c] sm:$0xf] %vm209_vm0, %v2861_v0  ;;  %239 = vst.msk [vmem:[#allocation2 + $0x70] sm:$0xf] %vm209_vm0, %v2861_v0  ;;  %v1843_v8 = vrot.slane %v1735_v5, 5  ;;  %v286_v10 = vshrl.u32 %v179_v2, 16 }
  0x15   : > { %241 = vst.msk [vmem:[#allocation2 + $0x78] sm:$0xf] %vm209_vm0, %v2861_v0  ;;  %242 = vst.msk [vmem:[#allocation2 + $0x7c] sm:$0xf] %vm209_vm0, %v2861_v0  ;;  %v995_v9 = vld [vmem:[#allocation2] sm:$0xf] }
  0x16   : > { %243 = vst.msk [vmem:[#allocation2 + $0x80] sm:$0x1] %vm212_vm1, %v2861_v0  ;;  %246 = vst.msk [vmem:[#allocation2 + $0x8c] sm:$0x1] %vm212_vm1, %v2861_v0  ;;  %v996_v11 = vld [vmem:[#allocation2 + $0x4] sm:$0xf] }
  0x17   : > { %244 = vst.msk [vmem:[#allocation2 + $0x84] sm:$0xf] %vm209_vm0, %v2861_v0  ;;  %245 = vst.msk [vmem:[#allocation2 + $0x88] sm:$0xf] %vm209_vm0, %v2861_v0  ;;  %v997_v12 = vld [vmem:[#allocation2 + $0x8] sm:$0x1] }
  0x18   : > { %247 = vst.msk [vmem:[#allocation2 + $0x90] sm:$0xf] %vm209_vm0, %v2861_v0  ;;  %248 = vst.msk [vmem:[#allocation2 + $0x94] sm:$0xf] %vm209_vm0, %v2861_v0  ;;  %v1053_v13 = vshrl.u32 %v995_v9, 16  ;;  %v1056_v14 = vshll.u32 %v995_v9, 16 }
  0x19   : > { %249 = vst.msk [vmem:[#allocation2 + $0x98] sm:$0x1] %vm212_vm1, %v2861_v0  ;;  %252 = vst.msk [vmem:[#allocation2 + $0xa4] sm:$0x1] %vm212_vm1, %v2861_v0  ;;  %v1842_v16 = vrot.slane %v1840_v7, 4  ;;  %v1062_v17 = vshll.u32 %v996_v11, 16 }
  0x1a   : > { %250 = vst.msk [vmem:[#allocation2 + $0x9c] sm:$0xf] %vm209_vm0, %v2861_v0  ;;  %251 = vst.msk [vmem:[#allocation2 + $0xa0] sm:$0xf] %vm209_vm0, %v2861_v0  ;;  %v1066_v18 = vshrl.u32 %v996_v11, 16  ;;  %v1055_v20 = vrot.slane %v1053_v13, 4 }
  0x1b   : > { %253 = vst.msk [vmem:[#allocation2 + $0xa8] sm:$0xf] %vm209_vm0, %v2861_v0  ;;  %254 = vst.msk [vmem:[#allocation2 + $0xac] sm:$0xf] %vm209_vm0, %v2861_v0  ;;  %v180_v19 = vld [vmem:[%s2962_s17 + $0xc] sm:$0xf] }
  0x1c   : > { %255 = vst.msk [vmem:[#allocation2 + $0xb0] sm:$0x1] %vm212_vm1, %v2861_v0  ;;  %258 = vst.msk [vmem:[#allocation2 + $0xbc] sm:$0x1] %vm212_vm1, %v2861_v0  ;;  %v1058_v21 = vrot.slane %v1056_v14, 5  ;;  %v1072_v22 = vshll.u32 %v997_v12, 16 }
  0x1d   : > { %256 = vst.msk [vmem:[#allocation2 + $0xb4] sm:$0xf] %vm209_vm0, %v2861_v0  ;;  %257 = vst.msk [vmem:[#allocation2 + $0xb8] sm:$0xf] %vm209_vm0, %v2861_v0  ;;  %v288_v23 = vrot.slane %v286_v10, 7  ;;  %v1064_v26 = vrot.slane %v1062_v17, 5 }
  0x1e   : > { %259 = vst.msk [vmem:[#allocation2 + $0xc0] sm:$0xf] %vm209_vm0, %v2861_v0  ;;  %260 = vst.msk [vmem:[#allocation2 + $0xc4] sm:$0xf] %vm209_vm0, %v2861_v0  ;;  %v177_v24 = vld [vmem:[%s2962_s17] sm:$0xf]  ;;  %v1059_v31 = vor.u32 %v1058_v21, %v1055_v20 }
  0x1f   : > { %261 = vst.msk [vmem:[#allocation2 + $0xc8] sm:$0x1] %vm212_vm1, %v2861_v0  ;;  %264 = vst.msk [vmem:[#allocation2 + $0xd4] sm:$0x1] %vm212_vm1, %v2861_v0  ;;  %v1068_v27 = vrot.slane %v1066_v18, 4  ;;  %v289_v28 = vshll.u32 %v179_v2, 16 }
  0x20   : > { %262 = vst.msk [vmem:[#allocation2 + $0xcc] sm:$0xf] %vm209_vm0, %v2861_v0  ;;  %263 = vst.msk [vmem:[#allocation2 + $0xd0] sm:$0xf] %vm209_vm0, %v2861_v0  ;;  %v178_v29 = vld [vmem:[%s2962_s17 + $0x4] sm:$0xf] }
  0x21   : > { %vm2964_vm6 = vmor %vm1835_vm2, %vm1836_vm3  ;;  %v1074_v32 = vrot.slane %v1072_v22, 5  ;;  %v292_v33 = vrot.slane %v288_v23, 4  ;;  %v601_v35 = vld [vmem:[#allocation2 + $0x18] sm:$0xf]  ;;  %v1069_v37 = vor.u32 %v1068_v27, %v1064_v26  ;;  %v291_v38 = vor.u32 %v289_v28, %v288_v23  ;;  %v181_v41 = vld [vmem:[%s2962_s17 + $0x10] sm:$0xf] }
  0x22   : > { %v1841_v15 = vsel %vm2964_vm6, %v2692_v6, %v1840_v7  ;;  %v1844_v25 = vsel %vm2964_vm6, %v1842_v16, %v1843_v8  ;;  %vm2978_vm10 = vmand %vm209_vm0, %vm590_vm9  ;;  %v294_v39 = vshrl.u32 %v180_v19, 16  ;;  %v297_v40 = vshll.u32 %v180_v19, 16  ;;  %v182_v54 = vld [vmem:[%s2962_s17 + $0x14] sm:$0xf]  ;;  %v592_v59 = vld [vmem:[#allocation2 + $0xc] sm:$0xf] }
  0x23   : > { %v2708_v30 = vcombine.low %v1841_v15, %v1844_v25  ;;  %vm2984_vm11 = vmor %vm1049_vm4, %vm1050_vm5  ;;  %v1060_v42 = vrot.slane %v1059_v31, 4  ;;  %v269_v43 = vshrl.u32 %v177_v24, 16  ;;  %v272_v44 = vshll.u32 %v177_v24, 16  ;;  %v183_v61 = vld [vmem:[%s2962_s17 + $0x18] sm:$0xf]  ;;  %s2867_s23 = smov 32  }
  0x24   : > { %v277_v45 = vshrl.u32 %v178_v29, 16  ;;  %v1070_v46 = vrot.slane %v1069_v37, 4  ;;  %v296_v47 = vrot.slane %v294_v39, 7  ;;  %v602_v48 = vsel %vm2978_vm10, %v291_v38, %v601_v35  ;;  %vm2996_vm12 = vmor %vm265_vm7, %vm266_vm8  ;;  %v598_v4 = vld [vmem:[#allocation2 + $0x14] sm:$0x1]  ;;  %s2868_s26 = smov 16  }
  0x25   : > { %1998 = vrot.lane.b32.xlu0 %v2708_v30, %s2862_s18  ;;  %v280_v49 = vshll.u32 %v178_v29, 16  ;;  %v1065_v50 = vsel %vm2984_vm11, %v1060_v42, %v1064_v26  ;;  %603 = vst [vmem:[#allocation2 + $0x18] sm:$0xf] %v602_v48  ;;  %v271_v52 = vrot.slane %v269_v43, 7  ;;  %v303_v55 = vshrl.u32 %v181_v41, 16  ;;  %vm3006_vm13 = vmand %vm212_vm1, %vm265_vm7  ;;  %s2869_s29 = smov 28  }
  0x26   : > { %v279_v53 = vrot.slane %v277_v45, 7  ;;  %v1075_v56 = vsel %vm2984_vm11, %v1070_v46, %v1074_v32  ;;  %v299_v57 = vor.u32 %v297_v40, %v296_v47  ;;  %v301_v58 = vrot.slane %v296_v47, 4  ;;  %v184_v9 = vld [vmem:[%s2962_s17 + $0x1c] sm:$0xf]  ;;  %v608_v13 = vld [vmem:[#allocation2 + $0x24] sm:$0xf] }
  0x27   : > { %v306_v60 = vshll.u32 %v181_v41, 16  ;;  %v2674_v62 = vcombine.low %v1065_v50, %v1075_v56  ;;  %v274_v0 = vor.u32 %v272_v44, %v271_v52  ;;  %v275_v2 = vrot.slane %v271_v52, 4  ;;  %v605_v15 = vld [vmem:[#allocation2 + $0x20] sm:$0x1]  ;;  %v615_v20 = vld [vmem:[#allocation2 + $0x30] sm:$0xf] }
  0x28   : > { %v282_v3 = vor.u32 %v280_v49, %v279_v53  ;;  %v300_v5 = vsel %vm2996_vm12, %v292_v33, %v299_v57  ;;  %v284_v6 = vrot.slane %v279_v53, 4  ;;  %v305_v7 = vrot.slane %v303_v55, 7  ;;  %v612_v25 = vld [vmem:[#allocation2 + $0x2c] sm:$0x1]  ;;  %v3029_v37 = vld [vmem:[%s2962_s17 + $0x20] sm:$0xf] }
  0x29   : > { %v311_v8 = vshrl.u32 %v182_v54, 16  ;;  %1484 = vrot.lane.b32.xlu0 %v2674_v62, %s2863_s19  ;;  %604 = vst.msk [vmem:[#allocation2 + $0x1c] sm:$0xf] %vm209_vm0, %v300_v5  ;;  %v593_v11 = vsel %vm2978_vm10, %v274_v0, %v592_v59  ;;  %v314_v12 = vshll.u32 %v182_v54, 16  ;;  %v320_v14 = vshrl.u32 %v183_v61, 16 }
  0x2a   : > { %v283_v10 = vsel %vm2996_vm12, %v275_v2, %v282_v3  ;;  %594 = vst [vmem:[#allocation2 + $0xc] sm:$0xf] %v593_v11  ;;  %v308_v16 = vor.u32 %v306_v60, %v305_v7  ;;  %v309_v17 = vrot.slane %v305_v7, 4  ;;  %v599_v19 = vsel %vm3006_vm13, %v284_v6, %v598_v4  ;;  %v619_v42 = vld [vmem:[#allocation2 + $0x38] sm:$0x1] }
  0x2b   : > { %595 = vst.msk [vmem:[#allocation2 + $0x10] sm:$0xf] %vm209_vm0, %v283_v10  ;;  %v313_v18 = vrot.slane %v311_v8, 7  ;;  %600 = vst [vmem:[#allocation2 + $0x14] sm:$0x1] %v599_v19  ;;  %v322_v21 = vrot.slane %v320_v14, 7  ;;  %v606_v29 = vsel %vm3006_vm13, %v301_v58, %v605_v15 }
  0x2c   : > { %v323_v22 = vshll.u32 %v183_v61, 16  ;;  %v328_v23 = vshrl.u32 %v184_v9, 16  ;;  %v331_v24 = vshll.u32 %v184_v9, 16  ;;  %v609_v28 = vsel %vm2978_vm10, %v308_v16, %v608_v13  ;;  %v1739_v30 = vld [vmem:[#allocation2 + $0x18] sm:$0xe] }
  0x2d   : > { %v316_v26 = vor.u32 %v314_v12, %v313_v18  ;;  %v318_v27 = vrot.slane %v313_v18, 4  ;;  %610 = vst [vmem:[#allocation2 + $0x24] sm:$0xf] %v609_v28  ;;  %v326_v32 = vrot.slane %v322_v21, 4  ;;  %607 = vst [vmem:[#allocation2 + $0x20] sm:$0x1] %v606_v29 }
  0x2e   : > { %v325_v31 = vor.u32 %v323_v22, %v322_v21  ;;  %v330_v33 = vrot.slane %v328_v23, 7  ;;  %v3026_v35 = vld [vmem:[#allocation2 + $0x18] sm:$0xf]  ;;  %v2694_v39 = vrot.slane %v1739_v30, 9  ;;  %v337_v49 = vshrl.u32 %v3029_v37, 16 }
  0x2f   : > { %v317_v38 = vsel %vm2996_vm12, %v309_v17, %v316_v26  ;;  %v613_v40 = vsel %vm3006_vm13, %v318_v27, %v612_v25  ;;  %v1101_v41 = vshrl.u32 %v3026_v35, 16  ;;  %v1104_v46 = vshll.u32 %v3026_v35, 16 }
  0x30   : > { %611 = vst.msk [vmem:[#allocation2 + $0x28] sm:$0xf] %vm209_vm0, %v317_v38  ;;  %v333_v43 = vor.u32 %v331_v24, %v330_v33  ;;  %v335_v44 = vrot.slane %v330_v33, 4  ;;  %v616_v45 = vsel %vm2978_vm10, %v325_v31, %v615_v20  ;;  %614 = vst [vmem:[#allocation2 + $0x2c] sm:$0x1] %v613_v40  ;;  %v3040_v47 = vld [vmem:[#allocation2 + $0x18] sm:$0xff]  }
  0x31   : > { %617 = vst [vmem:[#allocation2 + $0x30] sm:$0xf] %v616_v45  ;;  %v1740_v48 = vld [vmem:[#allocation2 + $0x1c] sm:$0xf]  ;;  %930 = vrot.lane.b32.xlu1 %v3040_v47, %s2864_s20  ;;  %v1736_v55 = vld [vmem:[#allocation2 + $0xc] sm:$0xe] }
  0x32   : > { %v3043_v50 = vld [vmem:[#allocation2 + $0xc] sm:$0xff]   ;;  %v334_v52 = vsel %vm2996_vm12, %v326_v32, %v333_v43  ;;  %v1854_v53 = vrot.slane %v1740_v48, 5  ;;  %v620_v54 = vsel %vm3006_vm13, %v335_v44, %v619_v42  ;;  %v1738_v57 = vld [vmem:[#allocation2 + $0x14] sm:$0x1]  ;;  %v2693_v58 = vrot.slane %v1736_v55, 9 }
  0x33   : > { %v1737_v56 = vld [vmem:[#allocation2 + $0x10] sm:$0xf]  ;;  %618 = vst.msk [vmem:[#allocation2 + $0x34] sm:$0xf] %vm209_vm0, %v334_v52  ;;  %621 = vst [vmem:[#allocation2 + $0x38] sm:$0x1] %v620_v54  ;;  %860 = vrot.lane.b32.xlu0 %v3043_v50, %s2865_s21 }
  0x34   : > { %v1847_v59 = vrot.slane %v1737_v56, 5  ;;  %v1850_v60 = vrot.slane %v1738_v57, 5  ;;  %v998_v61 = vld [vmem:[#allocation2 + $0xc] sm:$0xf]  ;;  %v1103_v62 = vrot.slane %v1101_v41, 4  ;;  %v1856_v2 = vrot.slane %v1854_v53, 4 }
  0x35   : > { %v1741_v0 = vld [vmem:[#allocation2 + $0x20] sm:$0x1]  ;;  %v1077_v3 = vshrl.u32 %v998_v61, 16  ;;  %v1855_v6 = vsel %vm2964_vm6, %v2694_v39, %v1854_v53  ;;  %v1742_v8 = vld [vmem:[#allocation2 + $0x24] sm:$0xe]  ;;  %v1080_v22 = vshll.u32 %v998_v61, 16 }
  0x36   : > { %v1848_v4 = vsel %vm2964_vm6, %v2693_v58, %v1847_v59  ;;  %v1849_v5 = vrot.slane %v1847_v59, 4  ;;  %v1857_v7 = vrot.slane %v1741_v0, 5  ;;  %v999_v9 = vld [vmem:[#allocation2 + $0x10] sm:$0xf]  ;;  %v2695_v12 = vrot.slane %v1742_v8, 9 }
  0x37   : > { %v3058_v10 = vld [vmem:[#allocation2 + $0x24] sm:$0xff]   ;;  %862 = vrot.lane.b32.xlu0 %v3040_v47, %s2865_s21  ;;  %v1744_v15 = vld [vmem:[#allocation2 + $0x2c] sm:$0x1]  ;;  %v1079_v17 = vrot.slane %v1077_v3, 4  ;;  %v1000_v21 = vld [vmem:[#allocation2 + $0x14] sm:$0x1] }
  0x38   : > { %v1743_v11 = vld [vmem:[#allocation2 + $0x28] sm:$0xf]  ;;  %v1851_v13 = vsel %vm2964_vm6, %v1849_v5, %v1850_v60  ;;  %v1858_v14 = vsel %vm2964_vm6, %v1856_v2, %v1857_v7  ;;  %932 = vrot.lane.b32.xlu1 %v3058_v10, %s2864_s20  ;;  %v1864_v20 = vrot.slane %v1744_v15, 5  ;;  %v1002_v23 = vld [vmem:[#allocation2 + $0x1c] sm:$0xf]  ;;  %v1086_v26 = vshll.u32 %v999_v9, 16 }
  0x39   : > { %v1861_v16 = vrot.slane %v1743_v11, 5  ;;  %v3068_v18 = vcombine.low %v1848_v4, %v1851_v13  ;;  %v3070_v19 = vcombine.low %v1855_v6, %v1858_v14  ;;  %v1090_v27 = vshrl.u32 %v999_v9, 16  ;;  %v1003_v30 = vld [vmem:[#allocation2 + $0x20] sm:$0x1]  ;;  %v1004_v40 = vld [vmem:[#allocation2 + $0x24] sm:$0xf] }
  0x3a   : > { %v1082_v28 = vrot.slane %v1080_v22, 5  ;;  %v1096_v29 = vshll.u32 %v1000_v21, 16  ;;  %v1106_v31 = vrot.slane %v1104_v46, 5  ;;  %v1110_v32 = vshll.u32 %v1002_v23, 16  ;;  %v3080_v41 = vld [vmem:[#allocation2 + $0x30] sm:$0xff]  }
  0x3b   : > { %v1862_v24 = vsel %vm2964_vm6, %v2695_v12, %v1861_v16  ;;  %v1863_v25 = vrot.slane %v1861_v16, 4  ;;  %2076 = vrot.lane.b32.xlu0 %v3068_v18, %s2866_s22  ;;  %v1088_v35 = vrot.slane %v1086_v26, 5  ;;  %v1092_v38 = vrot.slane %v1090_v27, 4  ;;  %v1005_v46 = vld [vmem:[#allocation2 + $0x28] sm:$0xf] }
  0x3c   : > { %v1114_v39 = vshrl.u32 %v1002_v23, 16  ;;  %864 = vrot.lane.b32.xlu1 %v3058_v10, %s2865_s21  ;;  %v1083_v43 = vor.u32 %v1082_v28, %v1079_v17  ;;  %v1098_v44 = vrot.slane %v1096_v29, 5  ;;  %v1107_v45 = vor.u32 %v1106_v31, %v1103_v62  ;;  %v186_v4 = vld [vmem:[%s2962_s17 + $0x24] sm:$0xf]  ;;  %v1006_v7 = vld [vmem:[#allocation2 + $0x2c] sm:$0x1] }
  0x3d   : > { %v1865_v33 = vsel %vm2964_vm6, %v1863_v25, %v1864_v20  ;;  %v1093_v48 = vor.u32 %v1092_v38, %v1088_v35  ;;  %v1112_v52 = vrot.slane %v1110_v32, 5  ;;  %v1120_v54 = vshll.u32 %v1003_v30, 16  ;;  %v1007_v15 = vld [vmem:[#allocation2 + $0x30] sm:$0xf]  ;;  %v1008_v22 = vld [vmem:[#allocation2 + $0x34] sm:$0xf] }
  0x3e   : > { %v3082_v42 = vcombine.low %v1862_v24, %v1865_v33  ;;  %v1116_v53 = vrot.slane %v1114_v39, 4  ;;  %v1084_v55 = vrot.slane %v1083_v43, 4  ;;  %v1108_v56 = vrot.slane %v1107_v45, 4  ;;  %v622_v25 = vld [vmem:[#allocation2 + $0x3c] sm:$0xf] }
  0x3f   : > { %v1125_v57 = vshrl.u32 %v1004_v40, 16  ;;  %v1128_v58 = vshll.u32 %v1004_v40, 16  ;;  %2154 = vrot.lane.b32.xlu0 %v3070_v19, %s2867_s23  ;;  %v1094_v59 = vrot.slane %v1093_v48, 4  ;;  %v1122_v61 = vrot.slane %v1120_v54, 5  ;;  %v1009_v43 = vld [vmem:[#allocation2 + $0x38] sm:$0x1] }
  0x40   : > { %v1117_v60 = vor.u32 %v1116_v53, %v1112_v52  ;;  %v1134_v0 = vshll.u32 %v1005_v46, 16  ;;  %866 = vrot.lane.b32.xlu1 %v3080_v41, %s2865_s21  ;;  %v1089_v62 = vsel %vm2984_vm11, %v1084_v55, %v1088_v35  ;;  %v1138_v9 = vshrl.u32 %v1005_v46, 16 }
  0x41   : > { %v1127_v2 = vrot.slane %v1125_v57, 4  ;;  %v1130_v3 = vrot.slane %v1128_v58, 5  ;;  %v1099_v5 = vsel %vm2984_vm11, %v1094_v59, %v1098_v44  ;;  %v1113_v12 = vsel %vm2984_vm11, %v1108_v56, %v1112_v52  ;;  %v188_v44 = vld [vmem:[%s2962_s17 + $0x2c] sm:$0xf] }
  0x42   : > { %v1118_v6 = vrot.slane %v1117_v60, 4  ;;  %v3093_v8 = vrot.slane %v1134_v0, 5  ;;  %v2675_v11 = vcombine.low %v1089_v62, %v1099_v5  ;;  %v339_v14 = vrot.slane %v337_v49, 7  ;;  %v2844_v49 = vld [vmem:[%s3887_s1] sm:$0xff]   ;;  %v2845_v57 = vld [vmem:[%s3887_s1 + $0x8] sm:$0xff]  }
  0x43   : > { %v1131_v13 = vor.u32 %v1130_v3, %v1127_v2  ;;  %2156 = vrot.lane.b32.xlu0 %v3082_v42, %s2867_s23  ;;  %v1140_v17 = vrot.slane %v1138_v9, 4  ;;  %v340_v20 = vshll.u32 %v3029_v37, 16  ;;  %v345_v21 = vshrl.u32 %v186_v4, 16  ;;  %v626_v37 = vld [vmem:[#allocation2 + $0x44] sm:$0x1]  ;;  %2769 = vmatprep.subr.bf16.mxu0 %v2844_v49 }
  0x44   : > { %v1123_v16 = vsel %vm2984_vm11, %v1118_v6, %v1122_v61  ;;  %2000 = vrot.lane.b32.xlu1 %v3068_v18, %s2862_s18  ;;  %v1144_v23 = vshll.u32 %v1006_v7, 16  ;;  %v343_v24 = vrot.slane %v339_v14, 4  ;;  %v348_v29 = vshll.u32 %v186_v4, 16  ;;  %v187_v18 = vld [vmem:[%s2962_s17 + $0x28] sm:$0xf]  ;;  %2807 = vmatprep.subr.bf16.mxu1 %v2844_v49 }
  0x45   : > { %v1141_v26 = vor.u32 %v1140_v17, %v3093_v8  ;;  %v342_v27 = vor.u32 %v340_v20, %v339_v14  ;;  %v347_v28 = vrot.slane %v345_v21, 7  ;;  %v3110_v30 = vcombine.low %v1113_v12, %v1123_v16  ;;  %2770 = vmatpush3.bf16.msra.mxu0 %v2844_v49  ;;  %2810 = vmatpush3.bf16.msra.mxu1 %v2844_v49  ;;  %v629_v12 = vld [vmem:[#allocation2 + $0x48] sm:$0xf]  ;;  %v189_v20 = vld [vmem:[%s2962_s17 + $0x30] sm:$0xf] }
  0x46   : > { %v1149_v31 = vshrl.u32 %v1007_v15, 16  ;;  %v1152_v32 = vshll.u32 %v1007_v15, 16  ;;  %v1158_v33 = vshll.u32 %v1008_v22, 16  ;;  %v1132_v35 = vrot.slane %v1131_v13, 4  ;;  %2771 = vmatprep.subr.bf16.mxu0 %v2845_v57  ;;  %2808 = vmatprep.subr.bf16.mxu1 %v2845_v57 }
  0x47   : > { %1576 = vrot.lane.b32.xlu0 %v2675_v11, %s2868_s26  ;;  %v350_v38 = vor.u32 %v348_v29, %v347_v28  ;;  %v352_v39 = vrot.slane %v347_v28, 4  ;;  %v623_v40 = vsel %vm2978_vm10, %v342_v27, %v622_v25  ;;  %v1162_v52 = vshrl.u32 %v1008_v22, 16 }
  0x48   : > { %2078 = vrot.lane.b32.xlu1 %v3070_v19, %s2866_s22  ;;  %624 = vst [vmem:[#allocation2 + $0x3c] sm:$0xf] %v623_v40  ;;  %v1151_v45 = vrot.slane %v1149_v31, 4  ;;  %v1154_v46 = vrot.slane %v1152_v32, 5  ;;  %v3119_v48 = vrot.slane %v1158_v33, 5  ;;  %v1142_v53 = vrot.slane %v1141_v26, 4 }
  0x49   : > { %v1146_v54 = vrot.slane %v1144_v23, 5  ;;  %v351_v55 = vsel %vm2996_vm12, %v343_v24, %v350_v38  ;;  %v627_v56 = vsel %vm3006_vm13, %v352_v39, %v626_v37  ;;  %v1164_v58 = vrot.slane %v1162_v52, 4  ;;  %2772 = vmatpush3.bf16.msra.mxu0 %v2845_v57  ;;  %2811 = vmatpush3.bf16.msra.mxu1 %v2845_v57  ;;  %v1746_v37 = vld [vmem:[#allocation2 + $0x34] sm:$0xf]  ;;  %v1747_v52 = vld [vmem:[#allocation2 + $0x38] sm:$0x1] }
  0x4a   : > { %625 = vst.msk [vmem:[#allocation2 + $0x40] sm:$0xf] %vm209_vm0, %v351_v55  ;;  %v1168_v59 = vshll.u32 %v1009_v43, 16  ;;  %628 = vst [vmem:[#allocation2 + $0x44] sm:$0x1] %v627_v56  ;;  %v1155_v60 = vor.u32 %v1154_v46, %v1151_v45  ;;  %v354_v61 = vshrl.u32 %v187_v18, 16  ;;  %v1137_v3 = vsel %vm2984_vm11, %v1132_v35, %v3093_v8 }
  0x4b   : > { %1668 = vrot.lane.b32.xlu0 %v3110_v30, %s2869_s29  ;;  %v1165_v0 = vor.u32 %v1164_v58, %v3119_v48  ;;  %v357_v62 = vshll.u32 %v187_v18, 16  ;;  %v362_v2 = vshrl.u32 %v188_v44, 16  ;;  %v1147_v4 = vsel %vm2984_vm11, %v1142_v53, %v1146_v54  ;;  %v191_v58 = vld [vmem:[%s2962_s17 + $0x38] sm:$0xf] }
  0x4c   : > { %1486 = vrot.lane.b32.xlu1 %v2675_v11, %s2863_s19  ;;  %v356_v5 = vrot.slane %v354_v61, 7  ;;  %v365_v6 = vshll.u32 %v188_v44, 16  ;;  %v1170_v7 = vrot.slane %v1168_v59, 5  ;;  %v1156_v11 = vrot.slane %v1155_v60, 4  ;;  %v633_v44 = vld [vmem:[#allocation2 + $0x50] sm:$0x1] }
  0x4d   : > { %v364_v9 = vrot.slane %v362_v2, 7  ;;  %v1166_v13 = vrot.slane %v1165_v0, 4  ;;  %v2677_v8 = vcombine.low %v1137_v3, %v1147_v4  ;;  %v371_v32 = vshrl.u32 %v189_v20, 16  ;;  %v636_v0 = vld [vmem:[#allocation2 + $0x54] sm:$0xf] }
  0x4e   : > { %v359_v15 = vor.u32 %v357_v62, %v356_v5  ;;  %v1161_v28 = vsel %vm2984_vm11, %v1156_v11, %v3119_v48  ;;  %v360_v31 = vrot.slane %v356_v5, 4  ;;  %v1745_v48 = vld [vmem:[#allocation2 + $0x30] sm:$0xe]  ;;  %v1868_v53 = vrot.slane %v1746_v37, 5 }
  0x4f   : > { %934 = vrot.lane.b32.xlu0 %v3080_v41, %s2864_s20  ;;  %v1010_v14 = vld [vmem:[#allocation2 + $0x3c] sm:$0xf]  ;;  %v367_v22 = vor.u32 %v365_v6, %v364_v9  ;;  %v1171_v29 = vsel %vm2984_vm11, %v1166_v13, %v1170_v7  ;;  %v369_v43 = vrot.slane %v364_v9, 4  ;;  %v373_v54 = vrot.slane %v371_v32, 7 }
  0x50   : > { %1578 = vrot.lane.b32.xlu1 %v3110_v30, %s2868_s26  ;;  %v1173_v16 = vshrl.u32 %v1010_v14, 16  ;;  %v1176_v17 = vshll.u32 %v1010_v14, 16  ;;  %v630_v23 = vsel %vm2978_vm10, %v359_v15, %v629_v12  ;;  %v3158_v45 = vcombine.low %v1161_v28, %v1171_v29  ;;  %v640_v9 = vld [vmem:[#allocation2 + $0x5c] sm:$0x1] }
  0x51   : > { %v1011_v21 = vld [vmem:[#allocation2 + $0x40] sm:$0xf]  ;;  %v1012_v24 = vld [vmem:[#allocation2 + $0x44] sm:$0x1]  ;;  %631 = vst [vmem:[#allocation2 + $0x48] sm:$0xf] %v630_v23  ;;  %v368_v40 = vsel %vm2996_vm12, %v360_v31, %v367_v22  ;;  %v634_v62 = vsel %vm3006_vm13, %v369_v43, %v633_v44 }
  0x52   : > { %v1175_v25 = vrot.slane %v1173_v16, 4  ;;  %v1178_v49 = vrot.slane %v1176_v17, 5  ;;  %v1182_v26 = vshll.u32 %v1011_v21, 16  ;;  %v1186_v27 = vshrl.u32 %v1011_v21, 16  ;;  %v3153_v33 = vld [vmem:[#allocation2 + $0x3c] sm:$0xff]  }
  0x53   : > { %1488 = vrot.lane.b32.xlu0 %v3110_v30, %s2863_s19  ;;  %v1192_v39 = vshll.u32 %v1012_v24, 16  ;;  %v190_v30 = vld [vmem:[%s2962_s17 + $0x34] sm:$0xf]  ;;  %632 = vst.msk [vmem:[#allocation2 + $0x4c] sm:$0xf] %vm209_vm0, %v368_v40  ;;  %v374_v55 = vshll.u32 %v189_v20, 16 }
  0x54   : > { %1670 = vrot.lane.b32.xlu1 %v2677_v8, %s2869_s29  ;;  %v1179_v18 = vor.u32 %v1178_v49, %v1175_v25  ;;  %v1184_v35 = vrot.slane %v1182_v26, 5  ;;  %v1188_v38 = vrot.slane %v1186_v27, 4  ;;  %v379_v56 = vshrl.u32 %v190_v30, 16  ;;  %v1749_v61 = vld [vmem:[#allocation2 + $0x40] sm:$0xf] }
  0x55   : > { %v382_v57 = vshll.u32 %v190_v30, 16  ;;  %v1194_v60 = vrot.slane %v1192_v39, 5  ;;  %v376_v3 = vor.u32 %v374_v55, %v373_v54  ;;  %v377_v4 = vrot.slane %v373_v54, 4  ;;  %635 = vst [vmem:[#allocation2 + $0x50] sm:$0x1] %v634_v62 }
  0x56   : > { %v1189_v46 = vor.u32 %v1188_v38, %v1184_v35  ;;  %v1180_v59 = vrot.slane %v1179_v18, 4  ;;  %v381_v5 = vrot.slane %v379_v56, 7  ;;  %v2696_v6 = vrot.slane %v1745_v48, 9  ;;  %v192_v16 = vld [vmem:[%s2962_s17 + $0x3c] sm:$0xf] }
  0x57   : > { %1580 = vrot.lane.b32.xlu0 %v2677_v8, %s2868_s26  ;;  %v1871_v7 = vrot.slane %v1747_v52, 5  ;;  %v388_v12 = vshrl.u32 %v191_v58, 16  ;;  %v1870_v11 = vrot.slane %v1868_v53, 4  ;;  %v637_v15 = vsel %vm2978_vm10, %v376_v3, %v636_v0  ;;  %v1748_v20 = vld [vmem:[#allocation2 + $0x3c] sm:$0xe] }
  0x58   : > { %936 = vrot.lane.b32.xlu1 %v3153_v33, %s2864_s20  ;;  %v1190_v2 = vrot.slane %v1189_v46, 4  ;;  %v384_v13 = vor.u32 %v382_v57, %v381_v5  ;;  %v386_v14 = vrot.slane %v381_v5, 4  ;;  %v1185_v17 = vsel %vm2984_vm11, %v1180_v59, %v1184_v35  ;;  %638 = vst [vmem:[#allocation2 + $0x54] sm:$0xf] %v637_v15  ;;  %v1750_v24 = vld [vmem:[#allocation2 + $0x44] sm:$0x1] }
  0x59   : > { %v1875_v21 = vrot.slane %v1749_v61, 5  ;;  %v390_v22 = vrot.slane %v388_v12, 7  ;;  %v391_v26 = vshll.u32 %v191_v58, 16  ;;  %v1872_v27 = vsel %vm2964_vm6, %v1870_v11, %v1871_v7  ;;  %v643_v31 = vld [vmem:[#allocation2 + $0x60] sm:$0xf] }
  0x5a   : > { %v1195_v23 = vsel %vm2984_vm11, %v1190_v2, %v1194_v60  ;;  %v385_v25 = vsel %vm2996_vm12, %v377_v4, %v384_v13  ;;  %v641_v49 = vsel %vm3006_vm13, %v386_v14, %v640_v9  ;;  %v396_v29 = vshrl.u32 %v192_v16, 16  ;;  %v1013_v39 = vld [vmem:[#allocation2 + $0x48] sm:$0xf]  ;;  %v1014_v30 = vld [vmem:[#allocation2 + $0x4c] sm:$0xf] }
  0x5b   : > { %1672 = vrot.lane.b32.xlu0 %v3158_v45, %s2869_s29  ;;  %639 = vst.msk [vmem:[#allocation2 + $0x58] sm:$0xf] %vm209_vm0, %v385_v25  ;;  %642 = vst [vmem:[#allocation2 + $0x5c] sm:$0x1] %v641_v49  ;;  %v393_v28 = vor.u32 %v391_v26, %v390_v22  ;;  %v399_v37 = vshll.u32 %v192_v16, 16  ;;  %v3190_v32 = vcombine.low %v1185_v17, %v1195_v23  ;;  %v2697_v18 = vrot.slane %v1748_v20, 9 }
  0x5c   : > { %1490 = vrot.lane.b32.xlu1 %v2677_v8, %s2863_s19  ;;  %v1869_v8 = vsel %vm2964_vm6, %v2696_v6, %v1868_v53  ;;  %v1877_v35 = vrot.slane %v1875_v21, 4  ;;  %v1878_v38 = vrot.slane %v1750_v24, 5  ;;  %v394_v40 = vrot.slane %v390_v22, 4  ;;  %v193_v46 = vld [vmem:[%s2962_s17 + $0x40] sm:$0xf]  ;;  %v2837_v16 = vld [vmem:[#allocation2 + $0x48] sm:$0xff]  }
  0x5d   : > { %v3192_v43 = vcombine.low %v1869_v8, %v1872_v27  ;;  %v644_v44 = vsel %vm2978_vm10, %v393_v28, %v643_v31  ;;  %v647_v48 = vld [vmem:[#allocation2 + $0x68] sm:$0x1]  ;;  %v1197_v52 = vshrl.u32 %v1013_v39, 16  ;;  %v1200_v53 = vshll.u32 %v1013_v39, 16  ;;  %v194_v4 = vld [vmem:[%s2962_s17 + $0x44] sm:$0xf] }
  0x5e   : > { %645 = vst [vmem:[#allocation2 + $0x60] sm:$0xf] %v644_v44  ;;  %v1876_v56 = vsel %vm2964_vm6, %v2697_v18, %v1875_v21  ;;  %v1879_v57 = vsel %vm2964_vm6, %v1877_v35, %v1878_v38  ;;  %v1206_v58 = vshll.u32 %v1014_v30, 16  ;;  %v1210_v59 = vshrl.u32 %v1014_v30, 16  ;;  %v1015_v5 = vld [vmem:[#allocation2 + $0x50] sm:$0x1] }
  0x5f   : > { %2002 = vrot.lane.b32.xlu0 %v3070_v19, %s2862_s18  ;;  %v398_v19 = vrot.slane %v396_v29, 7  ;;  %v405_v61 = vshrl.u32 %v193_v46, 16  ;;  %v3212_v62 = vcombine.low %v1876_v56, %v1879_v57  ;;  %v1199_v2 = vrot.slane %v1197_v52, 4  ;;  %v1016_v9 = vld [vmem:[#allocation2 + $0x54] sm:$0xf]  ;;  %v2841_v31 = vld [vmem:[#allocation2] sm:$0xff]  }
  0x60   : > { %1582 = vrot.lane.b32.xlu1 %v3158_v45, %s2868_s26  ;;  %v1202_v3 = vrot.slane %v1200_v53, 5  ;;  %v3217_v6 = vrot.slane %v1206_v58, 5  ;;  %v1212_v7 = vrot.slane %v1210_v59, 4  ;;  %v408_v11 = vshll.u32 %v193_v46, 16  ;;  %v650_v13 = vld [vmem:[#allocation2 + $0x6c] sm:$0xf] }
  0x61   : > { %v401_v54 = vor.u32 %v399_v37, %v398_v19  ;;  %v403_v55 = vrot.slane %v398_v19, 4  ;;  %v407_v12 = vrot.slane %v405_v61, 7  ;;  %v413_v15 = vshrl.u32 %v194_v4, 16  ;;  %v654_v49 = vld [vmem:[#allocation2 + $0x74] sm:$0x1] }
  0x62   : > { %v1017_v14 = vld [vmem:[#allocation2 + $0x58] sm:$0xf]  ;;  %v1203_v17 = vor.u32 %v1202_v3, %v1199_v2  ;;  %v1216_v20 = vshll.u32 %v1015_v5, 16  ;;  %v416_v22 = vshll.u32 %v194_v4, 16  ;;  %v1221_v23 = vshrl.u32 %v1016_v9, 16 }
  0x63   : > { %2080 = vrot.lane.b32.xlu0 %v3082_v42, %s2866_s22  ;;  %v402_v60 = vsel %vm2996_vm12, %v394_v40, %v401_v54  ;;  %v648_v0 = vsel %vm3006_vm13, %v403_v55, %v647_v48  ;;  %v410_v21 = vor.u32 %v408_v11, %v407_v12  ;;  %v411_v24 = vrot.slane %v407_v12, 4  ;;  %v195_v38 = vld [vmem:[%s2962_s17 + $0x48] sm:$0xf]  ;;  %v3230_v39 = vld [vmem:[#allocation2 + $0x54] sm:$0xff]   ;;  %v1752_v19 = vld [vmem:[#allocation2 + $0x4c] sm:$0xf] }
  0x64   : > { %1674 = vrot.lane.b32.xlu1 %v3190_v32, %s2869_s29  ;;  %646 = vst.msk [vmem:[#allocation2 + $0x64] sm:$0xf] %vm209_vm0, %v402_v60  ;;  %649 = vst [vmem:[#allocation2 + $0x68] sm:$0x1] %v648_v0  ;;  %v415_v25 = vrot.slane %v413_v15, 7  ;;  %v1224_v26 = vshll.u32 %v1016_v9, 16 }
  0x65   : > { %v1230_v8 = vshll.u32 %v1017_v14, 16  ;;  %v1234_v27 = vshrl.u32 %v1017_v14, 16  ;;  %v651_v28 = vsel %vm2978_vm10, %v410_v21, %v650_v13  ;;  %v1204_v18 = vrot.slane %v1203_v17, 4  ;;  %v196_v55 = vld [vmem:[%s2962_s17 + $0x4c] sm:$0xf] }
  0x66   : > { %v418_v29 = vor.u32 %v416_v22, %v415_v25  ;;  %v420_v37 = vrot.slane %v415_v25, 4  ;;  %652 = vst [vmem:[#allocation2 + $0x6c] sm:$0xf] %v651_v28  ;;  %v1218_v35 = vrot.slane %v1216_v20, 5  ;;  %v1223_v40 = vrot.slane %v1221_v23, 4 }
  0x67   : > { %2158 = vrot.lane.b32.xlu0 %v3192_v43, %s2867_s23  ;;  %v1226_v52 = vrot.slane %v1224_v26, 5  ;;  %v3238_v53 = vrot.slane %v1230_v8, 5  ;;  %v1236_v54 = vrot.slane %v1234_v27, 4  ;;  %vm838_vm14 = vcmask 31744   ;;  %v1018_v56 = vld [vmem:[#allocation2 + $0x5c] sm:$0x1] }
  0x68   : > { %2004 = vrot.lane.b32.xlu1 %v3082_v42, %s2862_s18  ;;  %v1213_v42 = vor.u32 %v1212_v7, %v3217_v6  ;;  %v419_v46 = vsel %vm2996_vm12, %v411_v24, %v418_v29  ;;  %v655_v48 = vsel %vm3006_vm13, %v420_v37, %v654_v49  ;;  %839 = vst.msk [vmem:[#allocation3] sm:$0xff] %vm838_vm14, %v2841_v31  ;;  %840 = vst.msk [vmem:[#allocation3 + $0x8] sm:$0xff] %vm838_vm14, %v3043_v50  ;;  %v1753_v57 = vld [vmem:[#allocation2 + $0x50] sm:$0x1]  ;;  %v3267_v0 = vld [vmem:[#allocation2 + $0x58] sm:$0xf] }
  0x69   : > { %653 = vst.msk [vmem:[#allocation2 + $0x70] sm:$0xf] %vm209_vm0, %v419_v46  ;;  %656 = vst [vmem:[#allocation2 + $0x74] sm:$0x1] %v655_v48  ;;  %v1882_v50 = vrot.slane %v1752_v19, 5  ;;  %v425_v58 = vshll.u32 %v195_v38, 16  ;;  %v1227_v60 = vor.u32 %v1226_v52, %v1223_v40  ;;  %v1237_v61 = vor.u32 %v1236_v54, %v3238_v53 }
  0x6a   : > { %v1214_v30 = vrot.slane %v1213_v42, 4  ;;  %841 = vst.msk [vmem:[#allocation3 + $0x10] sm:$0xff] %vm838_vm14, %v3040_v47  ;;  %842 = vst.msk [vmem:[#allocation3 + $0x18] sm:$0xff] %vm838_vm14, %v3058_v10  ;;  %v1751_v47 = vld [vmem:[#allocation2 + $0x48] sm:$0xe]  ;;  %v422_v10 = vshrl.u32 %v195_v38, 16 }
  0x6b   : > { %2160 = vrot.lane.b32.xlu0 %v3212_v62, %s2867_s23  ;;  %v3232_v44 = vld [vmem:[#allocation2 + $0x60] sm:$0xff]   ;;  %843 = vst.msk [vmem:[#allocation3 + $0x20] sm:$0xff] %vm838_vm14, %v3080_v41  ;;  %844 = vst.msk [vmem:[#allocation3 + $0x28] sm:$0xff] %vm838_vm14, %v3153_v33  ;;  %v1209_v41 = vsel %vm2984_vm11, %v1204_v18, %v3217_v6  ;;  %v430_v59 = vshrl.u32 %v196_v55, 16  ;;  %v2698_v2 = vrot.slane %v1751_v47, 9  ;;  %v433_v4 = vshll.u32 %v196_v55, 16 }
  0x6c   : > { %2082 = vrot.lane.b32.xlu1 %v3192_v43, %s2866_s22  ;;  %845 = vst.msk [vmem:[#allocation3 + $0x30] sm:$0xff] %vm838_vm14, %v2837_v16  ;;  %846 = vst.msk [vmem:[#allocation3 + $0x38] sm:$0xff] %vm838_vm14, %v3230_v39  ;;  %v424_v3 = vrot.slane %v422_v10, 7  ;;  %v657_v5 = vld [vmem:[#allocation2 + $0x78] sm:$0xf]  ;;  %v1884_v7 = vrot.slane %v1882_v50, 4 }
  0x6d   : > { %847 = vst.msk [vmem:[#allocation3 + $0x40] sm:$0xff] %vm838_vm14, %v3232_v44  ;;  %v1885_v9 = vrot.slane %v1753_v57, 5  ;;  %v432_v12 = vrot.slane %v430_v59, 7  ;;  %v197_v11 = vld [vmem:[%s2962_s17 + $0x50] sm:$0xf]  ;;  %v1889_v14 = vrot.slane %v3267_v0, 5  ;;  %v1883_v25 = vsel %vm2964_vm6, %v2698_v2, %v1882_v50 }
  0x6e   : > { %v1754_v13 = vld [vmem:[#allocation2 + $0x54] sm:$0xe]  ;;  %v1228_v17 = vrot.slane %v1227_v60, 4  ;;  %v1238_v20 = vrot.slane %v1237_v61, 4  ;;  %v1756_v22 = vld [vmem:[#allocation2 + $0x5c] sm:$0x1] }
  0x6f   : > { %938 = vrot.lane.b32.xlu0 %v2837_v16, %s2864_s20  ;;  %v428_v42 = vrot.slane %v424_v3, 4  ;;  %v435_v23 = vor.u32 %v433_v4, %v432_v12  ;;  %v2699_v49 = vrot.slane %v1754_v13, 9  ;;  %v198_v26 = vld [vmem:[%s2962_s17 + $0x54] sm:$0xf]  ;;  %v1886_v8 = vsel %vm2964_vm6, %v1884_v7, %v1885_v9  ;;  %v1019_v28 = vld [vmem:[#allocation2 + $0x60] sm:$0xf] }
  0x70   : > { %868 = vrot.lane.b32.xlu1 %v3153_v33, %s2865_s21  ;;  %v1219_v33 = vsel %vm2984_vm11, %v1214_v30, %v1218_v35  ;;  %v3277_v15 = vld [vmem:[#allocation2 + $0x6c] sm:$0xff]   ;;  %v1892_v27 = vrot.slane %v1756_v22, 5  ;;  %v1020_v29 = vld [vmem:[#allocation2 + $0x64] sm:$0xf]  ;;  %v439_v31 = vshrl.u32 %v197_v11, 16  ;;  %v1233_v18 = vsel %vm2984_vm11, %v1228_v17, %v3238_v53 }
  0x71   : > { %v3271_v6 = vcombine.low %v1209_v41, %v1219_v33  ;;  %848 = vst.msk [vmem:[#allocation3 + $0x48] sm:$0xff] %vm838_vm14, %v3277_v15  ;;  %v436_v37 = vsel %vm2996_vm12, %v428_v42, %v435_v23  ;;  %v1891_v38 = vrot.slane %v1889_v14, 4  ;;  %v437_v30 = vrot.slane %v432_v12, 4  ;;  %v661_v48 = vld [vmem:[#allocation2 + $0x80] sm:$0x1] }
  0x72   : > { %660 = vst.msk [vmem:[#allocation2 + $0x7c] sm:$0xf] %vm209_vm0, %v436_v37  ;;  %v442_v40 = vshll.u32 %v197_v11, 16  ;;  %v447_v19 = vshrl.u32 %v198_v26, 16  ;;  %v450_v46 = vshll.u32 %v198_v26, 16  ;;  %v1245_v52 = vshrl.u32 %v1019_v28, 16 }
  0x73   : > { %1492 = vrot.lane.b32.xlu0 %v3158_v45, %s2863_s19  ;;  %v1240_v45 = vshll.u32 %v1018_v56, 16  ;;  %v1248_v54 = vshll.u32 %v1019_v28, 16  ;;  %v1254_v55 = vshll.u32 %v1020_v29, 16  ;;  %v1258_v56 = vshrl.u32 %v1020_v29, 16  ;;  %v664_v53 = vld [vmem:[#allocation2 + $0x84] sm:$0xf] }
  0x74   : > { %870 = vrot.lane.b32.xlu1 %v2837_v16, %s2865_s21  ;;  %v427_v16 = vor.u32 %v425_v58, %v424_v3  ;;  %v449_v41 = vrot.slane %v447_v19, 7  ;;  %v662_v33 = vsel %vm3006_vm13, %v437_v30, %v661_v48  ;;  %v668_v57 = vld [vmem:[#allocation2 + $0x8c] sm:$0x1]  ;;  %v3308_v58 = vcombine.low %v1883_v25, %v1886_v8  ;;  %v2846_v61 = vld [vmem:[%s3887_s1 + $0x10] ss:$0 sps:$4 sm:$0x33]  }
  0x75   : > { %v1242_v21 = vrot.slane %v1240_v45, 5  ;;  %663 = vst [vmem:[#allocation2 + $0x80] sm:$0x1] %v662_v33  ;;  %v1890_v45 = vsel %vm2964_vm6, %v2699_v49, %v1889_v14  ;;  %v1893_v0 = vsel %vm2964_vm6, %v1891_v38, %v1892_v27  ;;  %v1021_v2 = vld [vmem:[#allocation2 + $0x68] sm:$0x1]  ;;  %v1247_v3 = vrot.slane %v1245_v52, 4 }
  0x76   : > { %v658_v24 = vsel %vm2978_vm10, %v427_v16, %v657_v5  ;;  %v454_v59 = vrot.slane %v449_v41, 4  ;;  %v1250_v4 = vrot.slane %v1248_v54, 5  ;;  %v3323_v5 = vrot.slane %v1254_v55, 5  ;;  %v1022_v13 = vld [vmem:[#allocation2 + $0x6c] sm:$0xf] }
  0x77   : > { %1584 = vrot.lane.b32.xlu0 %v3190_v32, %s2868_s26  ;;  %659 = vst [vmem:[#allocation2 + $0x78] sm:$0xf] %v658_v24  ;;  %v1243_v35 = vsel %vm2984_vm11, %v1238_v20, %v1242_v21  ;;  %v1260_v7 = vrot.slane %v1258_v56, 4  ;;  %vm2304_vm15 = vcmask 1041408   ;;  %v3336_v14 = vcombine.low %v1890_v45, %v1893_v0  ;;  %v1023_v17 = vld [vmem:[#allocation2 + $0x70] sm:$0xf] }
  0x78   : > { %940 = vrot.lane.b32.xlu1 %v3230_v39, %s2864_s20  ;;  %v3304_v47 = vcombine.low %v1233_v18, %v1243_v35  ;;  %v669_v11 = vsel %vm3006_vm13, %v454_v59, %v668_v57  ;;  %v1264_v16 = vshll.u32 %v1021_v2, 16  ;;  %2813 = vmatprep.subr.msk.bf16.mxu0 %vm2304_vm15, %v2846_v61  ;;  %v2306_v20 = vsel %vm2304_vm15, %v2846_v61, 0  ;;  %v199_v24 = vld [vmem:[%s2962_s17 + $0x58] sm:$0xf]  ;;  %v200_v26 = vld [vmem:[%s2962_s17 + $0x5c] sm:$0xf] }
  0x79   : > { %670 = vst [vmem:[#allocation2 + $0x8c] sm:$0x1] %v669_v11  ;;  %v1251_v21 = vor.u32 %v1250_v4, %v1247_v3  ;;  %v1261_v22 = vor.u32 %v1260_v7, %v3323_v5  ;;  %2774 = vmatpush3.bf16.msra.mxu0 %v2306_v20  ;;  %v1269_v42 = vshrl.u32 %v1022_v13, 16  ;;  %v1272_v23 = vshll.u32 %v1022_v13, 16  ;;  %2814 = vmatprep.subr.msk.bf16.mxu1 %vm2304_vm15, %v2846_v61  ;;  %v1024_v35 = vld [vmem:[#allocation2 + $0x74] sm:$0x1] }
  0x7a   : > { %v1278_v25 = vshll.u32 %v1023_v17, 16  ;;  %v1282_v49 = vshrl.u32 %v1023_v17, 16  ;;  %2812 = vmatpush3.bf16.msra.mxu1 %v2306_v20  ;;  %v1266_v8 = vrot.slane %v1264_v16, 5  ;;  %v456_v29 = vshrl.u32 %v199_v24, 16  ;;  %v671_v19 = vld [vmem:[#allocation2 + $0x90] sm:$0xf] }
  0x7b   : > { %1676 = vrot.lane.b32.xlu0 %v3271_v6, %s2869_s29  ;;  %v1262_v27 = vrot.slane %v1261_v22, 4  ;;  %v1271_v37 = vrot.slane %v1269_v42, 4  ;;  %v464_v18 = vshrl.u32 %v200_v26, 16  ;;  %v3364_v52 = vld [vmem:[#allocation2 + $0x64] sm:$0xf]  ;;  %vm908_vm1 = vcmask 130144  }
  0x7c   : > { %1494 = vrot.lane.b32.xlu1 %v3190_v32, %s2863_s19  ;;  %v441_v32 = vrot.slane %v439_v31, 7  ;;  %v1274_v31 = vrot.slane %v1272_v23, 5  ;;  %v3349_v38 = vrot.slane %v1278_v25, 5  ;;  %v1284_v30 = vrot.slane %v1282_v49, 4  ;;  %v3366_v54 = vld [vmem:[#allocation2 + $0x68] sm:$0x1] }
  0x7d   : > { %v1267_v48 = vsel %vm2984_vm11, %v1262_v27, %v1266_v8  ;;  %v458_v55 = vrot.slane %v456_v29, 7  ;;  %v202_v59 = vld [vmem:[%s2962_s17 + $0x64] sm:$0xf]  ;;  %v1899_v61 = vrot.slane %v3366_v54, 5  ;;  %v675_v2 = vld [vmem:[#allocation2 + $0x98] sm:$0x1] }
  0x7e   : > { %v444_v50 = vor.u32 %v442_v40, %v441_v32  ;;  %v445_v10 = vrot.slane %v441_v32, 4  ;;  %v3325_v9 = vld [vmem:[#allocation2 + $0x78] sm:$0xff]   ;;  %v459_v32 = vshll.u32 %v199_v24, 16  ;;  %v3355_v40 = vld [vmem:[#allocation2 + $0x60] sm:$0xe]  ;;  %v1275_v56 = vor.u32 %v1274_v31, %v1271_v37 }
  0x7f   : > { %2006 = vrot.lane.b32.xlu0 %v3192_v43, %s2862_s18  ;;  %v452_v43 = vor.u32 %v450_v46, %v449_v41  ;;  %849 = vst.msk [vmem:[#allocation3 + $0x50] sm:$0xff] %vm838_vm14, %v3325_v9  ;;  %v201_v41 = vld [vmem:[%s2962_s17 + $0x60] sm:$0xf]  ;;  %v1285_v33 = vor.u32 %v1284_v30, %v3349_v38  ;;  %v481_v17 = vshrl.u32 %v202_v59, 16  ;;  %v205_v20 = vld [vmem:[%s2962_s17 + $0x70] sm:$0xf] }
  0x80   : > { %1586 = vrot.lane.b32.xlu1 %v3271_v6, %s2868_s26  ;;  %v665_v60 = vsel %vm2978_vm10, %v444_v50, %v664_v53  ;;  %v1288_v53 = vshll.u32 %v1024_v35, 16  ;;  %v466_v50 = vrot.slane %v464_v18, 7  ;;  %v461_v57 = vor.u32 %v459_v32, %v458_v55  ;;  %v678_v24 = vld [vmem:[#allocation2 + $0x9c] sm:$0xf]  ;;  %v682_v27 = vld [vmem:[#allocation2 + $0xa4] sm:$0x1] }
  0x81   : > { %666 = vst [vmem:[#allocation2 + $0x84] sm:$0xf] %v665_v60  ;;  %v453_v12 = vsel %vm2996_vm12, %v445_v10, %v452_v43  ;;  %v467_v10 = vshll.u32 %v200_v26, 16  ;;  %v462_v43 = vrot.slane %v458_v55, 4  ;;  %v1896_v60 = vrot.slane %v3364_v52, 5 }
  0x82   : > { %667 = vst.msk [vmem:[#allocation2 + $0x88] sm:$0xf] %vm209_vm0, %v453_v12  ;;  %v471_v0 = vrot.slane %v466_v50, 4  ;;  %v672_v4 = vsel %vm2978_vm10, %v461_v57, %v671_v19  ;;  %v476_v7 = vshll.u32 %v201_v41, 16  ;;  %v203_v12 = vld [vmem:[%s2962_s17 + $0x68] sm:$0xf] }
  0x83   : > { %2084 = vrot.lane.b32.xlu0 %v3212_v62, %s2866_s22  ;;  %v469_v45 = vor.u32 %v467_v10, %v466_v50  ;;  %v3384_v11 = vrot.slane %v1275_v56, 4  ;;  %v3386_v13 = vrot.slane %v1288_v53, 5  ;;  %673 = vst [vmem:[#allocation2 + $0x90] sm:$0xf] %v672_v4  ;;  %v484_v22 = vshll.u32 %v202_v59, 16 }
  0x84   : > { %1678 = vrot.lane.b32.xlu1 %v3304_v47, %s2869_s29  ;;  %v676_v42 = vsel %vm3006_vm13, %v471_v0, %v675_v2  ;;  %v483_v23 = vrot.slane %v481_v17, 7  ;;  %v490_v25 = vshrl.u32 %v203_v12, 16  ;;  %v493_v49 = vshll.u32 %v203_v12, 16  ;;  %v1761_v18 = vld [vmem:[#allocation2 + $0x70] sm:$0xf] }
  0x85   : > { %v470_v16 = vsel %vm2996_vm12, %v462_v43, %v469_v45  ;;  %677 = vst [vmem:[#allocation2 + $0x98] sm:$0x1] %v676_v42  ;;  %v507_v37 = vshrl.u32 %v205_v20, 16  ;;  %v685_v55 = vld [vmem:[#allocation2 + $0xa8] sm:$0xf]  ;;  %v510_v53 = vshll.u32 %v205_v20, 16  ;;  %v1281_v2 = vsel %vm2984_vm11, %v3384_v11, %v3349_v38 }
  0x86   : > { %674 = vst.msk [vmem:[#allocation2 + $0x94] sm:$0xf] %vm209_vm0, %v470_v16  ;;  %v486_v35 = vor.u32 %v484_v22, %v483_v23  ;;  %v488_v30 = vrot.slane %v483_v23, 4  ;;  %v492_v32 = vrot.slane %v490_v25, 7  ;;  %v692_v57 = vld [vmem:[#allocation2 + $0xb4] sm:$0xf] }
  0x87   : > { %2162 = vrot.lane.b32.xlu0 %v3308_v58, %s2867_s23  ;;  %v3404_v56 = vrot.slane %v507_v37, 7  ;;  %v1760_v43 = vld [vmem:[#allocation2 + $0x6c] sm:$0xe]  ;;  %v1903_v59 = vrot.slane %v1761_v18, 5  ;;  %v1025_v11 = vld [vmem:[#allocation2 + $0x78] sm:$0xf] }
  0x88   : > { %2008 = vrot.lane.b32.xlu1 %v3212_v62, %s2862_s18  ;;  %v1252_v62 = vrot.slane %v1251_v21, 4  ;;  %v683_v10 = vsel %vm3006_vm13, %v488_v30, %v682_v27  ;;  %v2701_v54 = vrot.slane %v1760_v43, 9  ;;  %v1293_v17 = vshrl.u32 %v1025_v11, 16  ;;  %v206_v20 = vld [vmem:[%s2962_s17 + $0x74] sm:$0xf] }
  0x89   : > { %v3347_v28 = vld [vmem:[#allocation2 + $0x84] sm:$0xff]   ;;  %684 = vst [vmem:[#allocation2 + $0xa4] sm:$0x1] %v683_v10  ;;  %v512_v0 = vor.u32 %v510_v53, %v3404_v56  ;;  %vm978_vm2 = vcmask 228544   ;;  %vm1532_vm3 = vcmask 64544   ;;  %v518_v53 = vshll.u32 %v206_v20, 16 }
  0x8a   : > { %850 = vst.msk [vmem:[#allocation3 + $0x58] sm:$0xff] %vm838_vm14, %v3347_v28  ;;  %v1257_v46 = vsel %vm2984_vm11, %v1252_v62, %v3323_v5  ;;  %v473_v5 = vshrl.u32 %v201_v41, 16  ;;  %v495_v41 = vor.u32 %v493_v49, %v492_v32  ;;  %v1904_v25 = vsel %vm2964_vm6, %v2701_v54, %v1903_v59  ;;  %v1029_v10 = vld [vmem:[#allocation2 + $0x88] sm:$0xf]  ;;  %v1030_v54 = vld [vmem:[#allocation2 + $0x8c] sm:$0x1] }
  0x8b   : > { %2164 = vrot.lane.b32.xlu0 %v3336_v14, %s2867_s23  ;;  %v3378_v3 = vcombine.low %v1257_v46, %v1267_v48  ;;  %v1898_v46 = vrot.slane %v1896_v60, 4  ;;  %v693_v52 = vsel %vm2978_vm10, %v512_v0, %v692_v57  ;;  %v1295_v27 = vrot.slane %v1293_v17, 4 }
  0x8c   : > { %2086 = vrot.lane.b32.xlu1 %v3308_v58, %s2866_s22  ;;  %v475_v21 = vrot.slane %v473_v5, 7  ;;  %v1762_v5 = vld [vmem:[#allocation2 + $0x74] sm:$0x1]  ;;  %694 = vst [vmem:[#allocation2 + $0xb4] sm:$0xf] %v693_v52  ;;  %vm1624_vm4 = vcmask 162944  }
  0x8d   : > { %v208_v52 = vld [vmem:[%s2962_s17 + $0x7c] sm:$0xf]  ;;  %vm1716_vm5 = vcmask 261344   ;;  %vm2046_vm7 = vcmask 97344   ;;  %vm2124_vm8 = vcmask 195744   ;;  %vm2202_vm9 = vcmask 294144  }
  0x8e   : > { %v478_v8 = vor.u32 %v476_v7, %v475_v21  ;;  %v479_v62 = vrot.slane %v475_v21, 4  ;;  %v3423_v7 = vld [vmem:[#allocation2 + $0x90] sm:$0xff]   ;;  %v1296_v21 = vshll.u32 %v1025_v11, 16 }
  0x8f   : > { %942 = vrot.lane.b32.xlu0 %v3232_v44, %s2864_s20  ;;  %851 = vst.msk [vmem:[#allocation3 + $0x60] sm:$0xff] %vm838_vm14, %v3423_v7 }
  0x90   : > { %872 = vrot.lane.b32.xlu1 %v3230_v39, %s2865_s21  ;;  %v2700_v39 = vrot.slane %v3355_v40, 9  ;;  %v679_v48 = vsel %vm2978_vm10, %v478_v8, %v678_v24  ;;  %v487_v50 = vsel %vm2996_vm12, %v479_v62, %v486_v35  ;;  %v689_v40 = vld [vmem:[#allocation2 + $0xb0] sm:$0x1]  ;;  %v515_v62 = vshrl.u32 %v206_v20, 16  ;;  %v1027_v35 = vld [vmem:[#allocation2 + $0x80] sm:$0x1] }
  0x91   : > { %680 = vst [vmem:[#allocation2 + $0x9c] sm:$0xf] %v679_v48  ;;  %681 = vst.msk [vmem:[#allocation2 + $0xa0] sm:$0xf] %vm209_vm0, %v487_v50  ;;  %v1298_v37 = vrot.slane %v1296_v21, 5  ;;  %v513_v48 = vrot.slane %v3404_v56, 4 }
  0x92   : > { %v1897_v38 = vsel %vm2964_vm6, %v2700_v39, %v1896_v60  ;;  %v1905_v60 = vrot.slane %v1903_v59, 4  ;;  %v1312_v57 = vshll.u32 %v1027_v35, 16  ;;  %v696_v59 = vld [vmem:[#allocation2 + $0xbc] sm:$0x1] }
  0x93   : > { %1496 = vrot.lane.b32.xlu0 %v3271_v6, %s2863_s19  ;;  %v204_v6 = vld [vmem:[%s2962_s17 + $0x6c] sm:$0xf]  ;;  %v1299_v56 = vor.u32 %v1298_v37, %v1295_v27  ;;  %v535_v27 = vshll.u32 %v208_v52, 16 }
  0x94   : > { %874 = vrot.lane.b32.xlu1 %v3232_v44, %s2865_s21  ;;  %v1286_v44 = vrot.slane %v1285_v33, 4  ;;  %v498_v26 = vshrl.u32 %v204_v6, 16  ;;  %v501_v29 = vshll.u32 %v204_v6, 16  ;;  %v496_v33 = vrot.slane %v492_v32, 4 }
  0x95   : > { %v1900_v6 = vsel %vm2964_vm6, %v1898_v46, %v1899_v61  ;;  %v1906_v61 = vrot.slane %v1762_v5, 5  ;;  %v1028_v46 = vld [vmem:[#allocation2 + $0x84] sm:$0xf] }
  0x96   : > { %v500_v19 = vrot.slane %v498_v26, 7  ;;  %v1291_v4 = vsel %vm2984_vm11, %v1286_v44, %v3386_v13  ;;  %v1026_v13 = vld [vmem:[#allocation2 + $0x7c] sm:$0xf]  ;;  %v3453_v44 = vcombine.low %v1897_v38, %v1900_v6  ;;  %v1317_v43 = vshrl.u32 %v1028_v46, 16  ;;  %v207_v38 = vld [vmem:[%s2962_s17 + $0x78] sm:$0xf] }
  0x97   : > { %1588 = vrot.lane.b32.xlu0 %v3304_v47, %s2868_s26  ;;  %v3398_v31 = vpop.permute.xlu0 %1998  ;;  %v3447_v39 = vcombine.low %v1281_v2, %v1291_v4  ;;  %v1302_v22 = vshll.u32 %v1026_v13, 16  ;;  %v1907_v49 = vsel %vm2964_vm6, %v1905_v60, %v1906_v61  ;;  %v1306_v26 = vshrl.u32 %v1026_v13, 16 }
  0x98   : > { %944 = vrot.lane.b32.xlu1 %v3277_v15, %s2864_s20  ;;  %v503_v45 = vor.u32 %v501_v29, %v500_v19  ;;  %v505_v16 = vrot.slane %v500_v19, 4  ;;  %v3455_v42 = vld [vmem:[#allocation2 + $0x9c] sm:$0xff]   ;;  %v3471_v29 = vcombine.low %v1904_v25, %v1907_v49  ;;  %v1320_v0 = vshll.u32 %v1028_v46, 16  ;;  %v1767_v46 = vld [vmem:[#allocation2 + $0x88] sm:$0xf] }
  0x99   : > { %852 = vst.msk [vmem:[#allocation3 + $0x68] sm:$0xff] %vm838_vm14, %v3455_v42  ;;  %v3473_v18 = vrot.slane %v1302_v22, 5  ;;  %v1308_v30 = vrot.slane %v1306_v26, 4  ;;  %v1326_v2 = vshll.u32 %v1029_v10, 16  ;;  %v1330_v4 = vshrl.u32 %v1029_v10, 16 }
  0x9a   : > { %v690_v23 = vsel %vm3006_vm13, %v505_v16, %v689_v40  ;;  %v1300_v6 = vrot.slane %v1299_v56, 4  ;;  %v1319_v60 = vrot.slane %v1317_v43, 4  ;;  %v1322_v61 = vrot.slane %v1320_v0, 5  ;;  %v1764_v26 = vld [vmem:[#allocation2 + $0x7c] sm:$0xf] }
  0x9b   : > { %1680 = vrot.lane.b32.xlu0 %v3378_v3, %s2869_s29  ;;  %v1485_v12 = vpop.permute.xlu0 %1484  ;;  %691 = vst [vmem:[#allocation2 + $0xb0] sm:$0x1] %v690_v23  ;;  %v3506_v13 = vrot.slane %v1326_v2, 5  ;;  %v1332_v16 = vrot.slane %v1330_v4, 4  ;;  %v1336_v22 = vshll.u32 %v1030_v54, 16  ;;  %v532_v23 = vshrl.u32 %v208_v52, 16 }
  0x9c   : > { %1498 = vrot.lane.b32.xlu1 %v3304_v47, %s2863_s19  ;;  %v686_v47 = vsel %vm2978_vm10, %v495_v41, %v685_v55  ;;  %v517_v55 = vrot.slane %v515_v62, 7  ;;  %v1305_v20 = vsel %vm2984_vm11, %v1300_v6, %v3473_v18  ;;  %v1323_v25 = vor.u32 %v1322_v61, %v1319_v60  ;;  %v1765_v10 = vld [vmem:[#allocation2 + $0x80] sm:$0x1]  ;;  %v1031_v61 = vld [vmem:[#allocation2 + $0x90] sm:$0xf] }
  0x9d   : > { %687 = vst [vmem:[#allocation2 + $0xa8] sm:$0xf] %v686_v47  ;;  %v1333_v49 = vor.u32 %v1332_v16, %v3506_v13  ;;  %v534_v35 = vrot.slane %v532_v23, 7 }
  0x9e   : > { %v522_v41 = vrot.slane %v517_v55, 4 }
  0x9f   : > { %2010 = vrot.lane.b32.xlu0 %v3308_v58, %s2862_s18  ;;  %v504_v58 = vsel %vm2996_vm12, %v496_v33, %v503_v45  ;;  %v1309_v33 = vor.u32 %v1308_v30, %v3473_v18  ;;  %v1763_v18 = vld [vmem:[#allocation2 + $0x78] sm:$0xe]  ;;  %v1338_v30 = vrot.slane %v1336_v22, 5  ;;  %v539_v0 = vrot.slane %v534_v35, 4 }
  0xa0   : > { %1590 = vrot.lane.b32.xlu1 %v3378_v3, %s2868_s26  ;;  %688 = vst.msk [vmem:[#allocation2 + $0xac] sm:$0xf] %vm209_vm0, %v504_v58  ;;  %v1314_v58 = vrot.slane %v1312_v57, 5  ;;  %v703_v57 = vld [vmem:[#allocation2 + $0xc8] sm:$0x1]  ;;  %v2702_v43 = vrot.slane %v1763_v18, 9 }
  0xa1   : > { %v1310_v11 = vrot.slane %v1309_v33, 4  ;;  %v537_v33 = vor.u32 %v535_v27, %v534_v35 }
  0xa3   : > { %2088 = vrot.lane.b32.xlu0 %v3336_v14, %s2866_s22  ;;  %v931_v24 = vpop.permute.xlu1 %930  ;;  %v1315_v21 = vsel %vm2984_vm11, %v1310_v11, %v1314_v58 }
  0xa4   : > { %1682 = vrot.lane.b32.xlu1 %v3447_v39, %s2869_s29  ;;  %v3527_v37 = vcombine.low %v1305_v20, %v1315_v21  ;;  %v1344_v20 = vshll.u32 %v1031_v61, 16 }
  0xa5   : > { %v861_v8 = vpop.permute.xlu0 %860 }
  0xa6   : > { %909 = vst.msk [vmem:[#allocation3] sm:$0xff] %vm908_vm1, %v861_v8  ;;  %v527_v8 = vshll.u32 %v207_v38, 16 }
  0xa7   : > { %979 = vst.msk [vmem:[#allocation3] sm:$0xff] %vm978_vm2, %v931_v24  ;;  %2166 = vrot.lane.b32.xlu0 %v3453_v44, %s2867_s23  ;;  %v3478_v32 = vld [vmem:[#allocation2 + $0xa8] sm:$0xff]  }
  0xa8   : > { %2012 = vrot.lane.b32.xlu1 %v3336_v14, %s2862_s18  ;;  %1533 = vst.msk [vmem:[#allocation3] sm:$0xff] %vm1532_vm3, %v1485_v12  ;;  %v520_v14 = vor.u32 %v518_v53, %v517_v55  ;;  %v697_v12 = vsel %vm3006_vm13, %v522_v41, %v696_v59  ;;  %v1324_v53 = vrot.slane %v1323_v25, 4  ;;  %v1917_v59 = vrot.slane %v1767_v46, 5 }
  0xa9   : > { %v863_v19 = vpop.permute.xlu0 %862  ;;  %853 = vst.msk [vmem:[#allocation3 + $0x70] sm:$0xff] %vm838_vm14, %v3478_v32  ;;  %698 = vst [vmem:[#allocation2 + $0xbc] sm:$0x1] %v697_v12  ;;  %v1768_v12 = vld [vmem:[#allocation2 + $0x8c] sm:$0x1] }
  0xaa   : > { %v933_v50 = vpop.permute.xlu1 %932  ;;  %910 = vst.msk [vmem:[#allocation3 + $0x8] sm:$0xff] %vm908_vm1, %v863_v19  ;;  %v521_v5 = vsel %vm2996_vm12, %v513_v48, %v520_v14  ;;  %v1910_v19 = vrot.slane %v1764_v26, 5  ;;  %v699_v48 = vld [vmem:[#allocation2 + $0xc0] sm:$0xf]  ;;  %v1329_v11 = vsel %vm2984_vm11, %v1324_v53, %v3506_v13  ;;  %v1919_v52 = vrot.slane %v1917_v59, 4 }
  0xab   : > { %980 = vst.msk [vmem:[#allocation3 + $0x8] sm:$0xff] %vm978_vm2, %v933_v50  ;;  %2168 = vrot.lane.b32.xlu0 %v3471_v29, %s2867_s23  ;;  %v1334_v50 = vrot.slane %v1333_v49, 4  ;;  %v1920_v54 = vrot.slane %v1768_v12, 5  ;;  %v1032_v13 = vld [vmem:[#allocation2 + $0x94] sm:$0xf] }
  0xac   : > { %2090 = vrot.lane.b32.xlu1 %v3453_v44, %s2866_s22  ;;  %695 = vst.msk [vmem:[#allocation2 + $0xb8] sm:$0xf] %vm209_vm0, %v521_v5  ;;  %v1912_v4 = vrot.slane %v1910_v19, 4  ;;  %v1913_v5 = vrot.slane %v1765_v10, 5  ;;  %v1911_v60 = vsel %vm2964_vm6, %v2702_v43, %v1910_v19  ;;  %v1350_v21 = vshll.u32 %v1032_v13, 16 }
  0xad   : > { %v3490_v45 = vpop.permute.xlu0 %2076  ;;  %v1339_v34 = vsel %vm2984_vm11, %v1334_v50, %v1338_v30  ;;  %v1354_v22 = vshrl.u32 %v1032_v13, 16  ;;  %v1033_v30 = vld [vmem:[#allocation2 + $0x98] sm:$0x1]  ;;  %v1036_v12 = vld [vmem:[#allocation2 + $0xa4] sm:$0x1] }
  0xae   : > { %v865_v47 = vpop.permute.xlu1 %864  ;;  %v3562_v63 = vcombine.low %v1329_v11, %v1339_v34  ;;  %v1352_v27 = vrot.slane %v1350_v21, 5  ;;  %v1773_v13 = vld [vmem:[#allocation2 + $0xa0] sm:$0xf] }
  0xaf   : > { %911 = vst.msk [vmem:[#allocation3 + $0x10] sm:$0xff] %vm908_vm1, %v865_v47  ;;  %946 = vrot.lane.b32.xlu0 %v3325_v9, %s2864_s20  ;;  %v1766_v47 = vld [vmem:[#allocation2 + $0x84] sm:$0xe]  ;;  %v1356_v18 = vrot.slane %v1354_v22, 4  ;;  %v1931_v21 = vrot.slane %v1773_v13, 5 }
  0xb0   : > { %876 = vrot.lane.b32.xlu1 %v3277_v15, %s2865_s21  ;;  %v524_v15 = vshrl.u32 %v207_v38, 16  ;;  %v2703_v51 = vrot.slane %v1766_v47, 9 }
  0xb1   : > { %v3504_v40 = vpop.permute.xlu0 %2154 }
  0xb2   : > { %v867_v17 = vpop.permute.xlu1 %866 }
  0xb3   : > { %912 = vst.msk [vmem:[#allocation3 + $0x18] sm:$0xff] %vm908_vm1, %v867_v17  ;;  %1500 = vrot.lane.b32.xlu0 %v3378_v3, %s2863_s19  ;;  %v3521_v3 = vld [vmem:[#allocation2 + $0xb4] sm:$0xff]   ;;  %v1918_v17 = vsel %vm2964_vm6, %v2703_v51, %v1917_v59 }
  0xb4   : > { %878 = vrot.lane.b32.xlu1 %v3325_v9, %s2865_s21  ;;  %v526_v9 = vrot.slane %v524_v15, 7  ;;  %854 = vst.msk [vmem:[#allocation3 + $0x78] sm:$0xff] %vm838_vm14, %v3521_v3  ;;  %v1921_v15 = vsel %vm2964_vm6, %v1919_v52, %v1920_v54  ;;  %v1771_v52 = vld [vmem:[#allocation2 + $0x98] sm:$0x1] }
  0xb5   : > { %v3518_v24 = vpop.permute.xlu0 %2156  ;;  %v3586_v49 = vcombine.low %v1918_v17, %v1921_v15 }
  0xb6   : > { %v3523_v62 = vpop.permute.xlu1 %2000  ;;  %v529_v14 = vor.u32 %v527_v8, %v526_v9  ;;  %v530_v41 = vrot.slane %v526_v9, 4  ;;  %v1346_v9 = vrot.slane %v1344_v20, 5  ;;  %v1772_v20 = vld [vmem:[#allocation2 + $0x9c] sm:$0xe] }
  0xb7   : > { %1592 = vrot.lane.b32.xlu0 %v3447_v39, %s2868_s26 }
  0xb8   : > { %948 = vrot.lane.b32.xlu1 %v3347_v28, %s2864_s20  ;;  %v700_v2 = vsel %vm2978_vm10, %v529_v14, %v699_v48  ;;  %v538_v38 = vsel %vm2996_vm12, %v530_v41, %v537_v33  ;;  %v1357_v48 = vor.u32 %v1356_v18, %v1352_v27 }
  0xb9   : > { %v1577_v55 = vpop.permute.xlu0 %1576  ;;  %701 = vst [vmem:[#allocation2 + $0xc0] sm:$0xf] %v700_v2  ;;  %702 = vst.msk [vmem:[#allocation2 + $0xc4] sm:$0xf] %vm209_vm0, %v538_v38  ;;  %vm2255_vm0 = vcmask 293888  }
  0xba   : > { %v3533_v56 = vpop.permute.xlu1 %2078  ;;  %1625 = vst.msk [vmem:[#allocation3] sm:$0xff] %vm1624_vm4, %v1577_v55  ;;  %v1360_v55 = vshll.u32 %v1033_v30, 16  ;;  %v1358_v33 = vrot.slane %v1357_v48, 4 }
  0xbb   : > { %1684 = vrot.lane.b32.xlu0 %v3527_v37, %s2869_s29 }
  0xbc   : > { %1502 = vrot.lane.b32.xlu1 %v3447_v39, %s2863_s19  ;;  %v704_v39 = vsel %vm3006_vm13, %v539_v0, %v703_v57  ;;  %v1362_v57 = vrot.slane %v1360_v55, 5 }
  0xbd   : > { %v1669_v6 = vpop.permute.xlu0 %1668  ;;  %705 = vst [vmem:[#allocation2 + $0xc8] sm:$0x1] %v704_v39  ;;  %v1384_v39 = vshll.u32 %v1036_v12, 16  ;;  %v1040_v12 = vld [vmem:[#allocation2 + $0xb4] sm:$0xf] }
  0xbe   : > { %v1487_v58 = vpop.permute.xlu1 %1486  ;;  %1717 = vst.msk [vmem:[#allocation3] sm:$0xff] %vm1716_vm5, %v1669_v6  ;;  %v1363_v38 = vsel %vm2984_vm11, %v1358_v33, %v1362_v57 }
  0xbf   : > { %1534 = vst.msk [vmem:[#allocation3 + $0x8] sm:$0xff] %vm1532_vm3, %v1487_v58  ;;  %2014 = vrot.lane.b32.xlu0 %v3453_v44, %s2862_s18  ;;  %v1770_v58 = vld [vmem:[#allocation2 + $0x94] sm:$0xf] }
  0xc0   : > { %2047 = vst.msk [vmem:[#allocation3] sm:$0xff] %vm2046_vm7, %v3398_v31  ;;  %1594 = vrot.lane.b32.xlu1 %v3527_v37, %s2868_s26  ;;  %v1914_v31 = vsel %vm2964_vm6, %v1912_v4, %v1913_v5  ;;  %v1924_v54 = vrot.slane %v1770_v58, 5 }
  0xc1   : > { %2125 = vst.msk [vmem:[#allocation3] sm:$0xff] %vm2124_vm8, %v3490_v45  ;;  %v935_v44 = vpop.permute.xlu0 %934  ;;  %v3574_v45 = vcombine.low %v1911_v60, %v1914_v31 }
  0xc2   : > { %2203 = vst.msk [vmem:[#allocation3] sm:$0xff] %vm2202_vm9, %v3504_v40  ;;  %v1579_v16 = vpop.permute.xlu1 %1578  ;;  %v1341_v40 = vshrl.u32 %v1031_v61, 16  ;;  %v1386_v61 = vrot.slane %v1384_v39, 5  ;;  %v1926_v15 = vrot.slane %v1924_v54, 4  ;;  %v1416_v39 = vshll.u32 %v1040_v12, 16 }
  0xc3   : > { %981 = vst.msk [vmem:[#allocation3 + $0x10] sm:$0xff] %vm978_vm2, %v935_v44  ;;  %2092 = vrot.lane.b32.xlu0 %v3471_v29, %s2866_s22 }
  0xc4   : > { %1626 = vst.msk [vmem:[#allocation3 + $0x8] sm:$0xff] %vm1624_vm4, %v1579_v16  ;;  %1686 = vrot.lane.b32.xlu1 %v3562_v63, %s2869_s29  ;;  %v1343_v8 = vrot.slane %v1341_v40, 4  ;;  %v1927_v40 = vrot.slane %v1771_v52, 5 }
  0xc5   : > { %v1489_v23 = vpop.permute.xlu0 %1488 }
  0xc6   : > { %v1671_v25 = vpop.permute.xlu1 %1670  ;;  %1535 = vst.msk [vmem:[#allocation3 + $0x10] sm:$0xff] %vm1532_vm3, %v1489_v23  ;;  %v1347_v46 = vor.u32 %v1346_v9, %v1343_v8  ;;  %v2705_v9 = vrot.slane %v1772_v20, 9  ;;  %v1928_v18 = vsel %vm2964_vm6, %v1926_v15, %v1927_v40  ;;  %v1042_v15 = vld [vmem:[#allocation2 + $0xbc] sm:$0x1] }
  0xc7   : > { %1718 = vst.msk [vmem:[#allocation3 + $0x8] sm:$0xff] %vm1716_vm5, %v1671_v25  ;;  %2170 = vrot.lane.b32.xlu0 %v3574_v45, %s2867_s23 }
  0xc8   : > { %2048 = vst.msk [vmem:[#allocation3 + $0x8] sm:$0xff] %vm2046_vm7, %v3523_v62  ;;  %2016 = vrot.lane.b32.xlu1 %v3471_v29, %s2862_s18  ;;  %v1034_v62 = vld [vmem:[#allocation2 + $0x9c] sm:$0xf]  ;;  %v1035_v29 = vld [vmem:[#allocation2 + $0xa0] sm:$0xf]  ;;  %v1932_v55 = vsel %vm2964_vm6, %v2705_v9, %v1931_v21 }
  0xc9   : > { %v2219_v26 = vld [vmem:[#allocation3] sm:$0xff]  ;;  %2126 = vst.msk [vmem:[#allocation3 + $0x8] sm:$0xff] %vm2124_vm8, %v3533_v56  ;;  %v1581_v35 = vpop.permute.xlu0 %1580  ;;  %v1365_v50 = vshrl.u32 %v1034_v62, 16  ;;  %v1368_v10 = vshll.u32 %v1034_v62, 16  ;;  %v1378_v14 = vshrl.u32 %v1035_v29, 16  ;;  %v1348_v56 = vrot.slane %v1347_v46, 4 }
  0xca   : > { %2775 = vmatprep.mubr.msk.bf16.mxu0 %vm2255_vm0, %v2219_v26  ;;  %2204 = vst.msk [vmem:[#allocation3 + $0x8] sm:$0xff] %vm2202_vm9, %v3518_v24  ;;  %v937_v19 = vpop.permute.xlu1 %936  ;;  %v1374_v24 = vshll.u32 %v1035_v29, 16  ;;  %v1774_v26 = vld [vmem:[#allocation2 + $0xa4] sm:$0x1] }
  0xcb   : > { %1627 = vst.msk [vmem:[#allocation3 + $0x10] sm:$0xff] %vm1624_vm4, %v1581_v35  ;;  %2172 = vrot.lane.b32.xlu0 %v3586_v49, %s2867_s23  ;;  %v1367_v0 = vrot.slane %v1365_v50, 4  ;;  %v1370_v2 = vrot.slane %v1368_v10, 5  ;;  %v1380_v5 = vrot.slane %v1378_v14, 4  ;;  %v1933_v35 = vrot.slane %v1931_v21, 4 }
  0xcc   : > { %982 = vst.msk [vmem:[#allocation3 + $0x18] sm:$0xff] %vm978_vm2, %v937_v19  ;;  %2094 = vrot.lane.b32.xlu1 %v3574_v45, %s2866_s22  ;;  %v1376_v4 = vrot.slane %v1374_v24, 5  ;;  %v1934_v30 = vrot.slane %v1774_v26, 5  ;;  %v1037_v19 = vld [vmem:[#allocation2 + $0xa8] sm:$0xf] }
  0xcd   : > { %v1673_v53 = vpop.permute.xlu0 %1672  ;;  %v1371_v11 = vor.u32 %v1370_v2, %v1367_v0  ;;  %v1392_v10 = vshll.u32 %v1037_v19, 16 }
  0xce   : > { %v1491_v41 = vpop.permute.xlu1 %1490  ;;  %1719 = vst.msk [vmem:[#allocation3 + $0x10] sm:$0xff] %vm1716_vm5, %v1673_v53  ;;  %v1381_v34 = vor.u32 %v1380_v5, %v1376_v4  ;;  %v1389_v53 = vshrl.u32 %v1037_v19, 16  ;;  %v1935_v50 = vsel %vm2964_vm6, %v1933_v35, %v1934_v30  ;;  %v1039_v5 = vld [vmem:[#allocation2 + $0xb0] sm:$0x1]  ;;  %v1779_v19 = vld [vmem:[#allocation2 + $0xb8] sm:$0xf] }
  0xcf   : > { %1536 = vst.msk [vmem:[#allocation3 + $0x18] sm:$0xff] %vm1532_vm3, %v1491_v41  ;;  %950 = vrot.lane.b32.xlu0 %v3423_v7, %s2864_s20  ;;  %v1372_v31 = vrot.slane %v1371_v11, 4  ;;  %v3667_v57 = vcombine.low %v1932_v55, %v1935_v50  ;;  %v1778_v55 = vld [vmem:[#allocation2 + $0xb4] sm:$0xe] }
  0xd0   : > { %880 = vrot.lane.b32.xlu1 %v3347_v28, %s2865_s21  ;;  %v1353_v28 = vsel %vm2984_vm11, %v1348_v56, %v1352_v27  ;;  %v1382_v44 = vrot.slane %v1381_v34, 4  ;;  %v1413_v34 = vshrl.u32 %v1040_v12, 16  ;;  %v1044_v12 = vld [vmem:[#allocation2 + $0xc4] sm:$0xf] }
  0xd1   : > { %v2220_v43 = vld [vmem:[#allocation3 + $0x8] sm:$0xff]  ;;  %v2003_v59 = vpop.permute.xlu0 %2002  ;;  %v1377_v23 = vsel %vm2984_vm11, %v1372_v31, %v1376_v4 }
  0xd2   : > { %v1583_v47 = vpop.permute.xlu1 %1582  ;;  %2776 = vmatmul.mubr.msk.bf16.vlgmr.msra.gmra.mrb[0].mxu0 %vm2255_vm0, %v2220_v43  ;;  %2049 = vst.msk [vmem:[#allocation3 + $0x10] sm:$0xff] %vm2046_vm7, %v2003_v59  ;;  %v1387_v25 = vsel %vm2984_vm11, %v1382_v44, %v1386_v61  ;;  %v1391_v43 = vrot.slane %v1389_v53, 4  ;;  %v1394_v59 = vrot.slane %v1392_v10, 5  ;;  %v1415_v44 = vrot.slane %v1413_v34, 4 }
  0xd3   : > { %1628 = vst.msk [vmem:[#allocation3 + $0x18] sm:$0xff] %vm1624_vm4, %v1583_v47  ;;  %1504 = vrot.lane.b32.xlu0 %v3527_v37, %s2863_s19  ;;  %v1769_v37 = vld [vmem:[#allocation2 + $0x90] sm:$0xe]  ;;  %v3646_v27 = vcombine.low %v1377_v23, %v1387_v25  ;;  %v1418_v61 = vrot.slane %v1416_v39, 5  ;;  %v1432_v23 = vshll.u32 %v1042_v15, 16  ;;  %v1945_v53 = vrot.slane %v1779_v19, 5 }
  0xd4   : > { %882 = vrot.lane.b32.xlu1 %v3423_v7, %s2865_s21  ;;  %v3624_v7 = vcombine.low %v1353_v28, %v1363_v38  ;;  %v2704_v17 = vrot.slane %v1769_v37, 9  ;;  %v1041_v28 = vld [vmem:[#allocation2 + $0xb8] sm:$0xf]  ;;  %v1776_v25 = vld [vmem:[#allocation2 + $0xac] sm:$0xf]  ;;  %v1559_v39 = vshll.u32 %v1044_v12, 16 }
  0xd5   : > { %v2081_v6 = vpop.permute.xlu0 %2080  ;;  %v1422_v58 = vshll.u32 %v1041_v28, 16  ;;  %v1419_v21 = vor.u32 %v1418_v61, %v1415_v44  ;;  %v1434_v30 = vrot.slane %v1432_v23, 5  ;;  %v2851_v15 = vld [vmem:[#allocation2 + $0xc0] sm:$0xff]  }
  0xd6   : > { %v1675_v51 = vpop.permute.xlu1 %1674  ;;  %2127 = vst.msk [vmem:[#allocation3 + $0x10] sm:$0xff] %vm2124_vm8, %v2081_v6  ;;  %v1408_v6 = vshll.u32 %v1039_v5, 16  ;;  %v1561_v61 = vrot.slane %v1559_v39, 5 }
  0xd7   : > { %1720 = vst.msk [vmem:[#allocation3 + $0x18] sm:$0xff] %vm1716_vm5, %v1675_v51  ;;  %1596 = vrot.lane.b32.xlu0 %v3562_v63, %s2868_s26  ;;  %v1426_v51 = vshrl.u32 %v1041_v28, 16  ;;  %v1424_v13 = vrot.slane %v1422_v58, 5  ;;  %v1563_v58 = vshrl.u32 %v1044_v12, 16 }
  0xd8   : > { %952 = vrot.lane.b32.xlu1 %v3455_v42, %s2864_s20 }
  0xd9   : > { %v2159_v60 = vpop.permute.xlu0 %2158 }
  0xda   : > { %v2005_v16 = vpop.permute.xlu1 %2004  ;;  %2205 = vst.msk [vmem:[#allocation3 + $0x10] sm:$0xff] %vm2202_vm9, %v2159_v60  ;;  %v1410_v60 = vrot.slane %v1408_v6, 5 }
  0xdb   : > { %2050 = vst.msk [vmem:[#allocation3 + $0x18] sm:$0xff] %vm2046_vm7, %v2005_v16  ;;  %1688 = vrot.lane.b32.xlu0 %v3624_v7, %s2869_s29  ;;  %v1428_v16 = vrot.slane %v1426_v51, 4 }
  0xdc   : > { %1506 = vrot.lane.b32.xlu1 %v3562_v63, %s2863_s19  ;;  %v1925_v63 = vsel %vm2964_vm6, %v2704_v17, %v1924_v54 }
  0xdd   : > { %v2161_v22 = vpop.permute.xlu0 %2160  ;;  %v3654_v48 = vcombine.low %v1925_v63, %v1928_v18  ;;  %v1938_v63 = vrot.slane %v1776_v25, 5  ;;  %v1420_v18 = vrot.slane %v1419_v21, 4 }
  0xde   : > { %v2083_v8 = vpop.permute.xlu1 %2082 }
  0xdf   : > { %2128 = vst.msk [vmem:[#allocation3 + $0x18] sm:$0xff] %vm2124_vm8, %v2083_v8  ;;  %2018 = vrot.lane.b32.xlu0 %v3574_v45, %s2862_s18  ;;  %v1038_v45 = vld [vmem:[#allocation2 + $0xac] sm:$0xf]  ;;  %v1777_v8 = vld [vmem:[#allocation2 + $0xb0] sm:$0x1]  ;;  %v1425_v10 = vsel %vm2984_vm11, %v1420_v18, %v1424_v13 }
  0xe0   : > { %2206 = vst.msk [vmem:[#allocation3 + $0x18] sm:$0xff] %vm2202_vm9, %v2161_v22  ;;  %1598 = vrot.lane.b32.xlu1 %v3624_v7, %s2868_s26  ;;  %v1398_v24 = vshll.u32 %v1038_v45, 16  ;;  %v1402_v14 = vshrl.u32 %v1038_v45, 16  ;;  %v1429_v22 = vor.u32 %v1428_v16, %v1424_v13  ;;  %v1940_v45 = vrot.slane %v1938_v63, 4  ;;  %v1047_v16 = vld [vmem:[#allocation2 + $0xd0] sm:$0xf] }
  0xe1   : > { %v939_v62 = vpop.permute.xlu0 %938  ;;  %v2221_v29 = vld [vmem:[#allocation3 + $0x10] sm:$0xff]  ;;  %v1565_v13 = vrot.slane %v1563_v58, 4  ;;  %v1655_v21 = vshrl.u32 %v1047_v16, 16 }
  0xe2   : > { %v869_v46 = vpop.permute.xlu1 %868  ;;  %2779 = vmatprep.mubr.msk.bf16.mxu0 %vm2255_vm0, %v2221_v29  ;;  %v1400_v0 = vrot.slane %v1398_v24, 5  ;;  %v1404_v2 = vrot.slane %v1402_v14, 4  ;;  %v1430_v35 = vrot.slane %v1429_v22, 4  ;;  %v1780_v14 = vld [vmem:[#allocation2 + $0xbc] sm:$0x1] }
  0xe3   : > { %913 = vst.msk [vmem:[#allocation3 + $0x20] sm:$0xff] %vm908_vm1, %v869_v46  ;;  %2096 = vrot.lane.b32.xlu0 %v3586_v49, %s2866_s22  ;;  %v1941_v46 = vrot.slane %v1777_v8, 5  ;;  %v1566_v25 = vor.u32 %v1565_v13, %v1561_v61  ;;  %v1657_v18 = vrot.slane %v1655_v21, 4 }
  0xe4   : > { %983 = vst.msk [vmem:[#allocation3 + $0x20] sm:$0xff] %vm978_vm2, %v939_v62  ;;  %1690 = vrot.lane.b32.xlu1 %v3646_v27, %s2869_s29  ;;  %v1405_v38 = vor.u32 %v1404_v2, %v1400_v0  ;;  %v1435_v24 = vsel %vm2984_vm11, %v1430_v35, %v1434_v30 }
  0xe5   : > { %v1493_v41 = vpop.permute.xlu0 %1492  ;;  %v1567_v19 = vrot.slane %v1566_v25, 4 }
  0xe6   : > { %v871_v56 = vpop.permute.xlu1 %870  ;;  %1537 = vst.msk [vmem:[#allocation3 + $0x20] sm:$0xff] %vm1532_vm3, %v1493_v41  ;;  %v1406_v54 = vrot.slane %v1405_v38, 4 }
  0xe7   : > { %914 = vst.msk [vmem:[#allocation3 + $0x28] sm:$0xff] %vm908_vm1, %v871_v56  ;;  %v2222_v33 = vld [vmem:[#allocation3 + $0x18] sm:$0xff]  ;;  %2174 = vrot.lane.b32.xlu0 %v3654_v48, %s2867_s23  ;;  %v2707_v56 = vrot.slane %v1778_v55, 9 }
  0xe8   : > { %2020 = vrot.lane.b32.xlu1 %v3586_v49, %s2862_s18  ;;  %2780 = vmatmul.mubr.msk.bf16.gmra.mrb[4].mxu0 %vm2255_vm0, %v2222_v33  ;;  %v1395_v49 = vor.u32 %v1394_v59, %v1391_v43  ;;  %v1411_v40 = vsel %vm2984_vm11, %v1406_v54, %v1410_v60  ;;  %v3720_v33 = vcombine.low %v1425_v10, %v1435_v24  ;;  %v1947_v59 = vrot.slane %v1945_v53, 4  ;;  %v1046_v54 = vld [vmem:[#allocation2 + $0xcc] sm:$0xf] }
  0xe9   : > { %v1585_v4 = vpop.permute.xlu0 %1584  ;;  %v1942_v43 = vsel %vm2964_vm6, %v1940_v45, %v1941_v46  ;;  %v1946_v28 = vsel %vm2964_vm6, %v2707_v56, %v1945_v53 }
  0xea   : > { %v941_v47 = vpop.permute.xlu1 %940  ;;  %1629 = vst.msk [vmem:[#allocation3 + $0x20] sm:$0xff] %vm1624_vm4, %v1585_v4  ;;  %v1396_v52 = vrot.slane %v1395_v49, 4 }
  0xeb   : > { %984 = vst.msk [vmem:[#allocation3 + $0x28] sm:$0xff] %vm978_vm2, %v941_v47  ;;  %2176 = vrot.lane.b32.xlu0 %v3667_v57, %s2867_s23  ;;  %v1043_v47 = vld [vmem:[#allocation2 + $0xc0] sm:$0xf] }
  0xec   : > { %2098 = vrot.lane.b32.xlu1 %v3654_v48, %s2866_s22  ;;  %v1553_v34 = vshll.u32 %v1043_v47, 16 }
  0xed   : > { %v1677_v11 = vpop.permute.xlu0 %1676 }
  0xee   : > { %v1495_v37 = vpop.permute.xlu1 %1494  ;;  %1721 = vst.msk [vmem:[#allocation3 + $0x20] sm:$0xff] %vm1716_vm5, %v1677_v11  ;;  %v1550_v11 = vshrl.u32 %v1043_v47, 16  ;;  %v1555_v44 = vrot.slane %v1553_v34, 5 }
  0xef   : > { %1538 = vst.msk [vmem:[#allocation3 + $0x28] sm:$0xff] %vm1532_vm3, %v1495_v37  ;;  %954 = vrot.lane.b32.xlu0 %v3478_v32, %s2864_s20 }
  0xf0   : > { %884 = vrot.lane.b32.xlu1 %v3455_v42, %s2865_s21  ;;  %v1401_v42 = vsel %vm2984_vm11, %v1396_v52, %v1400_v0  ;;  %v1948_v0 = vrot.slane %v1780_v14, 5 }
  0xf1   : > { %v2007_v31 = vpop.permute.xlu0 %2006 }
  0xf2   : > { %v1587_v17 = vpop.permute.xlu1 %1586  ;;  %2051 = vst.msk [vmem:[#allocation3 + $0x20] sm:$0xff] %vm2046_vm7, %v2007_v31  ;;  %v1949_v49 = vsel %vm2964_vm6, %v1947_v59, %v1948_v0  ;;  %v1552_v31 = vrot.slane %v1550_v11, 4  ;;  %v1785_v11 = vld [vmem:[#allocation2 + $0xd0] sm:$0xf] }
  0xf3   : > { %1630 = vst.msk [vmem:[#allocation3 + $0x28] sm:$0xff] %vm1624_vm4, %v1587_v17  ;;  %1508 = vrot.lane.b32.xlu0 %v3624_v7, %s2863_s19  ;;  %v1775_v7 = vld [vmem:[#allocation2 + $0xa8] sm:$0xe]  ;;  %v3741_v37 = vcombine.low %v1946_v28, %v1949_v49  ;;  %v1045_v17 = vld [vmem:[#allocation2 + $0xc8] sm:$0x1]  ;;  %v2146_v58 = vrot.slane %v1785_v11, 5 }
  0xf4   : > { %886 = vrot.lane.b32.xlu1 %v3478_v32, %s2865_s21  ;;  %v3698_v32 = vcombine.low %v1401_v42, %v1411_v40  ;;  %v2706_v29 = vrot.slane %v1775_v7, 9  ;;  %v1642_v42 = vshrl.u32 %v1046_v54, 16  ;;  %v1645_v40 = vshll.u32 %v1046_v54, 16  ;;  %v1784_v54 = vld [vmem:[#allocation2 + $0xcc] sm:$0xe] }
  0xf5   : > { %v2085_v20 = vpop.permute.xlu0 %2084  ;;  %v1556_v23 = vor.u32 %v1555_v44, %v1552_v31  ;;  %v2726_v44 = vrot.slane %v1784_v54, 9 }
  0xf6   : > { %v1679_v26 = vpop.permute.xlu1 %1678  ;;  %2129 = vst.msk [vmem:[#allocation3 + $0x20] sm:$0xff] %vm2124_vm8, %v2085_v20  ;;  %v1651_v20 = vshll.u32 %v1047_v16, 16  ;;  %v1644_v8 = vrot.slane %v1642_v42, 4 }
  0xf7   : > { %1722 = vst.msk [vmem:[#allocation3 + $0x28] sm:$0xff] %vm1716_vm5, %v1679_v26  ;;  %1600 = vrot.lane.b32.xlu0 %v3646_v27, %s2868_s26  ;;  %v1569_v26 = vshll.u32 %v1045_v17, 16  ;;  %v1557_v30 = vrot.slane %v1556_v23, 4 }
  0xf8   : > { %956 = vrot.lane.b32.xlu1 %v3521_v3, %s2864_s20 }
  0xf9   : > { %v2163_v9 = vpop.permute.xlu0 %2162  ;;  %v1562_v10 = vsel %vm2984_vm11, %v1557_v30, %v1561_v61  ;;  %v2148_v61 = vrot.slane %v2146_v58, 4 }
  0xfa   : > { %v2009_v62 = vpop.permute.xlu1 %2008  ;;  %2207 = vst.msk [vmem:[#allocation3 + $0x20] sm:$0xff] %vm2202_vm9, %v2163_v9  ;;  %v1653_v9 = vrot.slane %v1651_v20, 5 }
  0xfb   : > { %2052 = vst.msk [vmem:[#allocation3 + $0x28] sm:$0xff] %vm2046_vm7, %v2009_v62  ;;  %1692 = vrot.lane.b32.xlu0 %v3698_v32, %s2869_s29  ;;  %v1571_v62 = vrot.slane %v1569_v26, 5 }
  0xfc   : > { %1510 = vrot.lane.b32.xlu1 %v3646_v27, %s2863_s19  ;;  %v1939_v27 = vsel %vm2964_vm6, %v2706_v29, %v1938_v63  ;;  %v1647_v63 = vrot.slane %v1645_v40, 5  ;;  %v1048_v29 = vld [vmem:[#allocation2 + $0xd4] sm:$0x1]  ;;  %v1658_v55 = vor.u32 %v1657_v18, %v1653_v9 }
  0xfd   : > { %v2165_v50 = vpop.permute.xlu0 %2164  ;;  %v1661_v53 = vshll.u32 %v1048_v29, 16  ;;  %v1572_v24 = vsel %vm2984_vm11, %v1567_v19, %v1571_v62 }
  0xfe   : > { %v2087_v41 = vpop.permute.xlu1 %2086  ;;  %v1648_v46 = vor.u32 %v1647_v63, %v1644_v8  ;;  %v1659_v56 = vrot.slane %v1658_v55, 4 }
  0xff   : > { %2130 = vst.msk [vmem:[#allocation3 + $0x28] sm:$0xff] %vm2124_vm8, %v2087_v41  ;;  %2022 = vrot.lane.b32.xlu0 %v3654_v48, %s2862_s18  ;;  %v3728_v48 = vcombine.low %v1939_v27, %v1942_v43  ;;  %v2690_v41 = vcombine.low %v1562_v10, %v1572_v24  ;;  %v1663_v43 = vrot.slane %v1661_v53, 5 }
 0x100   : > { %2208 = vst.msk [vmem:[#allocation3 + $0x28] sm:$0xff] %vm2202_vm9, %v2165_v50  ;;  %1602 = vrot.lane.b32.xlu1 %v3698_v32, %s2868_s26  ;;  %v1649_v27 = vrot.slane %v1648_v46, 4 }
 0x101   : > { %v943_v2 = vpop.permute.xlu0 %942  ;;  %v2223_v4 = vld [vmem:[#allocation3 + $0x20] sm:$0xff]  ;;  %v1664_v12 = vsel %vm2984_vm11, %v1659_v56, %v1663_v43 }
 0x102   : > { %v873_v5 = vpop.permute.xlu1 %872  ;;  %2783 = vmatprep.mubr.msk.bf16.mxu0 %vm2255_vm0, %v2223_v4  ;;  %v1783_v4 = vld [vmem:[#allocation2 + $0xc8] sm:$0x1]  ;;  %v1654_v47 = vsel %vm2984_vm11, %v1649_v27, %v1653_v9 }
 0x103   : > { %915 = vst.msk [vmem:[#allocation3 + $0x30] sm:$0xff] %vm908_vm1, %v873_v5  ;;  %2100 = vrot.lane.b32.xlu0 %v3667_v57, %s2866_s22 }
 0x104   : > { %985 = vst.msk [vmem:[#allocation3 + $0x30] sm:$0xff] %vm978_vm2, %v943_v2  ;;  %1694 = vrot.lane.b32.xlu1 %v3720_v33, %s2869_s29  ;;  %v1781_v2 = vld [vmem:[#allocation2 + $0xc0] sm:$0xe] }
 0x105   : > { %v1497_v38 = vpop.permute.xlu0 %1496  ;;  %v2724_v49 = vrot.slane %v1781_v2, 9 }
 0x106   : > { %v875_v6 = vpop.permute.xlu1 %874  ;;  %1539 = vst.msk [vmem:[#allocation3 + $0x30] sm:$0xff] %vm1532_vm3, %v1497_v38 }
 0x107   : > { %916 = vst.msk [vmem:[#allocation3 + $0x38] sm:$0xff] %vm908_vm1, %v875_v6  ;;  %v2224_v51 = vld [vmem:[#allocation3 + $0x28] sm:$0xff]  ;;  %2178 = vrot.lane.b32.xlu0 %v3728_v48, %s2867_s23  ;;  %v2071_v6 = vrot.slane %v1783_v4, 5 }
 0x108   : > { %2024 = vrot.lane.b32.xlu1 %v3667_v57, %s2862_s18  ;;  %2784 = vmatmul.mubr.msk.bf16.gmra.mrb[8].mxu0 %vm2255_vm0, %v2224_v51 }
 0x109   : > { %v1589_v52 = vpop.permute.xlu0 %1588 }
 0x10a   : > { %v945_v60 = vpop.permute.xlu1 %944  ;;  %1631 = vst.msk [vmem:[#allocation3 + $0x30] sm:$0xff] %vm1624_vm4, %v1589_v52 }
 0x10b   : > { %986 = vst.msk [vmem:[#allocation3 + $0x38] sm:$0xff] %vm978_vm2, %v945_v60  ;;  %2180 = vrot.lane.b32.xlu0 %v3741_v37, %s2867_s23  ;;  %v1786_v60 = vld [vmem:[#allocation2 + $0xd4] sm:$0x1] }
 0x10c   : > { %2102 = vrot.lane.b32.xlu1 %v3728_v48, %s2866_s22  ;;  %v2149_v13 = vrot.slane %v1786_v60, 5 }
 0x10d   : > { %v1681_v57 = vpop.permute.xlu0 %1680 }
 0x10e   : > { %v1499_v22 = vpop.permute.xlu1 %1498  ;;  %1723 = vst.msk [vmem:[#allocation3 + $0x30] sm:$0xff] %vm1716_vm5, %v1681_v57  ;;  %v2150_v42 = vsel %vm2964_vm6, %v2148_v61, %v2149_v13 }
 0x10f   : > { %1540 = vst.msk [vmem:[#allocation3 + $0x38] sm:$0xff] %vm1532_vm3, %v1499_v22  ;;  %958 = vrot.lane.b32.xlu0 %v2851_v15, %s2864_s20 }
 0x110   : > { %888 = vrot.lane.b32.xlu1 %v3521_v3, %s2865_s21  ;;  %v2852_v3 = vld [vmem:[#allocation2 + $0xcc] sm:$0xff]  }
 0x111   : > { %v2011_v7 = vpop.permute.xlu0 %2010 }
 0x112   : > { %v1591_v35 = vpop.permute.xlu1 %1590  ;;  %2053 = vst.msk [vmem:[#allocation3 + $0x30] sm:$0xff] %vm2046_vm7, %v2011_v7 }
 0x113   : > { %1632 = vst.msk [vmem:[#allocation3 + $0x38] sm:$0xff] %vm1624_vm4, %v1591_v35  ;;  %1512 = vrot.lane.b32.xlu0 %v3698_v32, %s2863_s19  ;;  %v1782_v32 = vld [vmem:[#allocation2 + $0xc4] sm:$0xf] }
 0x114   : > { %890 = vrot.lane.b32.xlu1 %v2851_v15, %s2865_s21  ;;  %v2068_v0 = vrot.slane %v1782_v32, 5  ;;  %v2147_v15 = vsel %vm2964_vm6, %v2726_v44, %v2146_v58 }
 0x115   : > { %v2089_v45 = vpop.permute.xlu0 %2088  ;;  %v2727_v20 = vcombine.low %v2147_v15, %v2150_v42 }
 0x116   : > { %v1683_v50 = vpop.permute.xlu1 %1682  ;;  %2131 = vst.msk [vmem:[#allocation3 + $0x30] sm:$0xff] %vm2124_vm8, %v2089_v45  ;;  %v2070_v38 = vrot.slane %v2068_v0, 4  ;;  %v2069_v51 = vsel %vm2964_vm6, %v2724_v49, %v2068_v0 }
 0x117   : > { %1724 = vst.msk [vmem:[#allocation3 + $0x38] sm:$0xff] %vm1716_vm5, %v1683_v50  ;;  %1604 = vrot.lane.b32.xlu0 %v3720_v33, %s2868_s26 }
 0x118   : > { %960 = vrot.lane.b32.xlu1 %v2852_v3, %s2864_s20  ;;  %v2072_v52 = vsel %vm2964_vm6, %v2070_v38, %v2071_v6 }
 0x119   : > { %v2167_v14 = vpop.permute.xlu0 %2166  ;;  %v2725_v31 = vcombine.low %v2069_v51, %v2072_v52 }
 0x11a   : > { %v2013_v59 = vpop.permute.xlu1 %2012  ;;  %2209 = vst.msk [vmem:[#allocation3 + $0x30] sm:$0xff] %vm2202_vm9, %v2167_v14 }
 0x11b   : > { %2054 = vst.msk [vmem:[#allocation3 + $0x38] sm:$0xff] %vm2046_vm7, %v2013_v59  ;;  %1696 = vrot.lane.b32.xlu0 %v2690_v41, %s2869_s29 }
 0x11c   : > { %1514 = vrot.lane.b32.xlu1 %v3720_v33, %s2863_s19  ;;  %v2691_v33 = vcombine.low %v1654_v47, %v1664_v12 }
 0x11d   : > { %v2169_v5 = vpop.permute.xlu0 %2168 }
 0x11e   : > { %v2091_v28 = vpop.permute.xlu1 %2090 }
 0x11f   : > { %2132 = vst.msk [vmem:[#allocation3 + $0x38] sm:$0xff] %vm2124_vm8, %v2091_v28  ;;  %2026 = vrot.lane.b32.xlu0 %v3728_v48, %s2862_s18 }
 0x120   : > { %2210 = vst.msk [vmem:[#allocation3 + $0x38] sm:$0xff] %vm2202_vm9, %v2169_v5  ;;  %1606 = vrot.lane.b32.xlu1 %v2690_v41, %s2868_s26 }
 0x121   : > { %v947_v34 = vpop.permute.xlu0 %946  ;;  %v2225_v39 = vld [vmem:[#allocation3 + $0x30] sm:$0xff] }
 0x122   : > { %v877_v36 = vpop.permute.xlu1 %876  ;;  %2787 = vmatprep.mubr.msk.bf16.mxu0 %vm2255_vm0, %v2225_v39 }
 0x123   : > { %917 = vst.msk [vmem:[#allocation3 + $0x40] sm:$0xff] %vm908_vm1, %v877_v36  ;;  %2104 = vrot.lane.b32.xlu0 %v3741_v37, %s2866_s22 }
 0x124   : > { %987 = vst.msk [vmem:[#allocation3 + $0x40] sm:$0xff] %vm978_vm2, %v947_v34  ;;  %1698 = vrot.lane.b32.xlu1 %v2691_v33, %s2869_s29 }
 0x125   : > { %v1501_v48 = vpop.permute.xlu0 %1500 }
 0x126   : > { %v879_v16 = vpop.permute.xlu1 %878  ;;  %1541 = vst.msk [vmem:[#allocation3 + $0x40] sm:$0xff] %vm1532_vm3, %v1501_v48 }
 0x127   : > { %918 = vst.msk [vmem:[#allocation3 + $0x48] sm:$0xff] %vm908_vm1, %v879_v16  ;;  %v2226_v17 = vld [vmem:[#allocation3 + $0x38] sm:$0xff]  ;;  %2182 = vrot.lane.b32.xlu0 %v2725_v31, %s2867_s23 }
 0x128   : > { %2028 = vrot.lane.b32.xlu1 %v3741_v37, %s2862_s18  ;;  %2788 = vmatmul.mubr.msk.bf16.gmra.mrb[12].mxu0 %vm2255_vm0, %v2226_v17 }
 0x129   : > { %v1593_v57 = vpop.permute.xlu0 %1592 }
 0x12a   : > { %v949_v40 = vpop.permute.xlu1 %948  ;;  %1633 = vst.msk [vmem:[#allocation3 + $0x40] sm:$0xff] %vm1624_vm4, %v1593_v57 }
 0x12b   : > { %988 = vst.msk [vmem:[#allocation3 + $0x48] sm:$0xff] %vm978_vm2, %v949_v40 }
 0x12c   : > { %2106 = vrot.lane.b32.xlu1 %v2725_v31, %s2866_s22 }
 0x12d   : > { %v1685_v21 = vpop.permute.xlu0 %1684 }
 0x12e   : > { %v1503_v22 = vpop.permute.xlu1 %1502  ;;  %1725 = vst.msk [vmem:[#allocation3 + $0x40] sm:$0xff] %vm1716_vm5, %v1685_v21 }
 0x12f   : > { %1542 = vst.msk [vmem:[#allocation3 + $0x48] sm:$0xff] %vm1532_vm3, %v1503_v22 }
 0x130   : > { %2184 = vrot.lane.b32.xlu1 %v2727_v20, %s2867_s23 }
 0x131   : > { %v2015_v37 = vpop.permute.xlu0 %2014 }
 0x132   : > { %v1595_v23 = vpop.permute.xlu1 %1594  ;;  %2055 = vst.msk [vmem:[#allocation3 + $0x40] sm:$0xff] %vm2046_vm7, %v2015_v37 }
 0x133   : > { %1634 = vst.msk [vmem:[#allocation3 + $0x48] sm:$0xff] %vm1624_vm4, %v1595_v23 }
 0x135   : > { %v2093_v1 = vpop.permute.xlu0 %2092 }
 0x136   : > { %v1687_v25 = vpop.permute.xlu1 %1686  ;;  %2133 = vst.msk [vmem:[#allocation3 + $0x40] sm:$0xff] %vm2124_vm8, %v2093_v1 }
 0x137   : > { %1726 = vst.msk [vmem:[#allocation3 + $0x48] sm:$0xff] %vm1716_vm5, %v1687_v25 }
 0x139   : > { %v2171_v26 = vpop.permute.xlu0 %2170 }
 0x13a   : > { %v2017_v7 = vpop.permute.xlu1 %2016  ;;  %2211 = vst.msk [vmem:[#allocation3 + $0x40] sm:$0xff] %vm2202_vm9, %v2171_v26 }
 0x13b   : > { %2056 = vst.msk [vmem:[#allocation3 + $0x48] sm:$0xff] %vm2046_vm7, %v2017_v7 }
 0x13d   : > { %v2173_v8 = vpop.permute.xlu0 %2172 }
 0x13e   : > { %v2095_v63 = vpop.permute.xlu1 %2094 }
 0x13f   : > { %2134 = vst.msk [vmem:[#allocation3 + $0x48] sm:$0xff] %vm2124_vm8, %v2095_v63 }
 0x140   : > { %2212 = vst.msk [vmem:[#allocation3 + $0x48] sm:$0xff] %vm2202_vm9, %v2173_v8 }
 0x141   : > { %v951_v9 = vpop.permute.xlu0 %950  ;;  %v2227_v18 = vld [vmem:[#allocation3 + $0x40] sm:$0xff] }
 0x142   : > { %v881_v35 = vpop.permute.xlu1 %880  ;;  %2791 = vmatprep.mubr.msk.bf16.mxu1 %vm2255_vm0, %v2227_v18 }
 0x143   : > { %919 = vst.msk [vmem:[#allocation3 + $0x50] sm:$0xff] %vm908_vm1, %v881_v35 }
 0x144   : > { %989 = vst.msk [vmem:[#allocation3 + $0x50] sm:$0xff] %vm978_vm2, %v951_v9 }
 0x145   : > { %v1505_v30 = vpop.permute.xlu0 %1504 }
 0x146   : > { %v883_v19 = vpop.permute.xlu1 %882  ;;  %1543 = vst.msk [vmem:[#allocation3 + $0x50] sm:$0xff] %vm1532_vm3, %v1505_v30 }
 0x147   : > { %920 = vst.msk [vmem:[#allocation3 + $0x58] sm:$0xff] %vm908_vm1, %v883_v19  ;;  %v2228_v62 = vld [vmem:[#allocation3 + $0x48] sm:$0xff] }
 0x148   : > { %2792 = vmatmul.mubr.msk.bf16.vlgmr.msra.gmra.mrb[0].mxu1 %vm2255_vm0, %v2228_v62 }
 0x149   : > { %v1597_v29 = vpop.permute.xlu0 %1596 }
 0x14a   : > { %v953_v3 = vpop.permute.xlu1 %952  ;;  %1635 = vst.msk [vmem:[#allocation3 + $0x50] sm:$0xff] %vm1624_vm4, %v1597_v29 }
 0x14b   : > { %990 = vst.msk [vmem:[#allocation3 + $0x58] sm:$0xff] %vm978_vm2, %v953_v3 }
 0x14d   : > { %v1689_v45 = vpop.permute.xlu0 %1688 }
 0x14e   : > { %v1507_v46 = vpop.permute.xlu1 %1506  ;;  %1727 = vst.msk [vmem:[#allocation3 + $0x50] sm:$0xff] %vm1716_vm5, %v1689_v45 }
 0x14f   : > { %1544 = vst.msk [vmem:[#allocation3 + $0x58] sm:$0xff] %vm1532_vm3, %v1507_v46 }
 0x151   : > { %v2019_v55 = vpop.permute.xlu0 %2018 }
 0x152   : > { %v1599_v53 = vpop.permute.xlu1 %1598  ;;  %2057 = vst.msk [vmem:[#allocation3 + $0x50] sm:$0xff] %vm2046_vm7, %v2019_v55 }
 0x153   : > { %1636 = vst.msk [vmem:[#allocation3 + $0x58] sm:$0xff] %vm1624_vm4, %v1599_v53 }
 0x155   : > { %v2097_v50 = vpop.permute.xlu0 %2096 }
 0x156   : > { %v1691_v10 = vpop.permute.xlu1 %1690  ;;  %2135 = vst.msk [vmem:[#allocation3 + $0x50] sm:$0xff] %vm2124_vm8, %v2097_v50 }
 0x157   : > { %1728 = vst.msk [vmem:[#allocation3 + $0x58] sm:$0xff] %vm1716_vm5, %v1691_v10 }
 0x159   : > { %v2175_v24 = vpop.permute.xlu0 %2174 }
 0x15a   : > { %v2021_v32 = vpop.permute.xlu1 %2020  ;;  %2213 = vst.msk [vmem:[#allocation3 + $0x50] sm:$0xff] %vm2202_vm9, %v2175_v24 }
 0x15b   : > { %2058 = vst.msk [vmem:[#allocation3 + $0x58] sm:$0xff] %vm2046_vm7, %v2021_v32 }
 0x15d   : > { %v2177_v14 = vpop.permute.xlu0 %2176 }
 0x15e   : > { %v2099_v41 = vpop.permute.xlu1 %2098 }
 0x15f   : > { %2136 = vst.msk [vmem:[#allocation3 + $0x58] sm:$0xff] %vm2124_vm8, %v2099_v41 }
 0x160   : > { %2214 = vst.msk [vmem:[#allocation3 + $0x58] sm:$0xff] %vm2202_vm9, %v2177_v14 }
 0x161   : > { %v955_v27 = vpop.permute.xlu0 %954  ;;  %v2229_v56 = vld [vmem:[#allocation3 + $0x50] sm:$0xff] }
 0x162   : > { %v885_v43 = vpop.permute.xlu1 %884  ;;  %2795 = vmatprep.mubr.msk.bf16.mxu1 %vm2255_vm0, %v2229_v56 }
 0x163   : > { %921 = vst.msk [vmem:[#allocation3 + $0x60] sm:$0xff] %vm908_vm1, %v885_v43 }
 0x164   : > { %991 = vst.msk [vmem:[#allocation3 + $0x60] sm:$0xff] %vm978_vm2, %v955_v27 }
 0x165   : > { %v1509_v59 = vpop.permute.xlu0 %1508 }
 0x166   : > { %v887_v0 = vpop.permute.xlu1 %886  ;;  %1545 = vst.msk [vmem:[#allocation3 + $0x60] sm:$0xff] %vm1532_vm3, %v1509_v59 }
 0x167   : > { %922 = vst.msk [vmem:[#allocation3 + $0x68] sm:$0xff] %vm908_vm1, %v887_v0  ;;  %v2230_v2 = vld [vmem:[#allocation3 + $0x58] sm:$0xff] }
 0x168   : > { %2796 = vmatmul.mubr.msk.bf16.gmra.mrb[4].mxu1 %vm2255_vm0, %v2230_v2 }
 0x169   : > { %v1601_v4 = vpop.permute.xlu0 %1600 }
 0x16a   : > { %v957_v5 = vpop.permute.xlu1 %956  ;;  %1637 = vst.msk [vmem:[#allocation3 + $0x60] sm:$0xff] %vm1624_vm4, %v1601_v4 }
 0x16b   : > { %992 = vst.msk [vmem:[#allocation3 + $0x68] sm:$0xff] %vm978_vm2, %v957_v5 }
 0x16d   : > { %v1693_v47 = vpop.permute.xlu0 %1692 }
 0x16e   : > { %v1511_v12 = vpop.permute.xlu1 %1510  ;;  %1729 = vst.msk [vmem:[#allocation3 + $0x60] sm:$0xff] %vm1716_vm5, %v1693_v47 }
 0x16f   : > { %1546 = vst.msk [vmem:[#allocation3 + $0x68] sm:$0xff] %vm1532_vm3, %v1511_v12 }
 0x171   : > { %v2023_v28 = vpop.permute.xlu0 %2022 }
 0x172   : > { %v1603_v49 = vpop.permute.xlu1 %1602  ;;  %2059 = vst.msk [vmem:[#allocation3 + $0x60] sm:$0xff] %vm2046_vm7, %v2023_v28 }
 0x173   : > { %1638 = vst.msk [vmem:[#allocation3 + $0x68] sm:$0xff] %vm1624_vm4, %v1603_v49 }
 0x175   : > { %v2101_v38 = vpop.permute.xlu0 %2100 }
 0x176   : > { %v1695_v6 = vpop.permute.xlu1 %1694  ;;  %2137 = vst.msk [vmem:[#allocation3 + $0x60] sm:$0xff] %vm2124_vm8, %v2101_v38 }
 0x177   : > { %1730 = vst.msk [vmem:[#allocation3 + $0x68] sm:$0xff] %vm1716_vm5, %v1695_v6 }
 0x179   : > { %v2179_v11 = vpop.permute.xlu0 %2178 }
 0x17a   : > { %v2025_v33 = vpop.permute.xlu1 %2024  ;;  %2215 = vst.msk [vmem:[#allocation3 + $0x60] sm:$0xff] %vm2202_vm9, %v2179_v11 }
 0x17b   : > { %2060 = vst.msk [vmem:[#allocation3 + $0x68] sm:$0xff] %vm2046_vm7, %v2025_v33 }
 0x17d   : > { %v2181_v34 = vpop.permute.xlu0 %2180 }
 0x17e   : > { %v2103_v39 = vpop.permute.xlu1 %2102 }
 0x17f   : > { %2138 = vst.msk [vmem:[#allocation3 + $0x68] sm:$0xff] %vm2124_vm8, %v2103_v39 }
 0x180   : > { %2216 = vst.msk [vmem:[#allocation3 + $0x68] sm:$0xff] %vm2202_vm9, %v2181_v34 }
 0x181   : > { %v2231_v58 = vld [vmem:[#allocation3 + $0x60] sm:$0xff]  ;;  %v959_v36 = vpop.permute.xlu0 %958 }
 0x182   : > { %v889_v51 = vpop.permute.xlu1 %888  ;;  %2799 = vmatprep.mubr.msk.bf16.mxu1 %vm2255_vm0, %v2231_v58 }
 0x183   : > { %923 = vst.msk [vmem:[#allocation3 + $0x70] sm:$0xff] %vm908_vm1, %v889_v51 }
 0x184   : > { %993 = vst.msk [vmem:[#allocation3 + $0x70] sm:$0xff] %vm978_vm2, %v959_v36 }
 0x185   : > { %v1513_v52 = vpop.permute.xlu0 %1512 }
 0x186   : > { %v891_v54 = vpop.permute.xlu1 %890  ;;  %1547 = vst.msk [vmem:[#allocation3 + $0x70] sm:$0xff] %vm1532_vm3, %v1513_v52 }
 0x187   : > { %924 = vst.msk [vmem:[#allocation3 + $0x78] sm:$0xff] %vm908_vm1, %v891_v54  ;;  %v2232_v60 = vld [vmem:[#allocation3 + $0x68] sm:$0xff] }
 0x188   : > { %2800 = vmatmul.mubr.msk.bf16.gmra.mrb[8].mxu1 %vm2255_vm0, %v2232_v60 }
 0x189   : > { %v1605_v48 = vpop.permute.xlu0 %1604 }
 0x18a   : > { %v961_v31 = vpop.permute.xlu1 %960  ;;  %1639 = vst.msk [vmem:[#allocation3 + $0x70] sm:$0xff] %vm1624_vm4, %v1605_v48 }
 0x18b   : > { %994 = vst.msk [vmem:[#allocation3 + $0x78] sm:$0xff] %vm978_vm2, %v961_v31 }
 0x18d   : > { %v1697_v44 = vpop.permute.xlu0 %1696 }
 0x18e   : > { %v1515_v61 = vpop.permute.xlu1 %1514  ;;  %1731 = vst.msk [vmem:[#allocation3 + $0x70] sm:$0xff] %vm1716_vm5, %v1697_v44 }
 0x18f   : > { %1548 = vst.msk [vmem:[#allocation3 + $0x78] sm:$0xff] %vm1532_vm3, %v1515_v61 }
 0x191   : > { %v2027_v13 = vpop.permute.xlu0 %2026 }
 0x192   : > { %v1607_v16 = vpop.permute.xlu1 %1606  ;;  %2061 = vst.msk [vmem:[#allocation3 + $0x70] sm:$0xff] %vm2046_vm7, %v2027_v13 }
 0x193   : > { %1640 = vst.msk [vmem:[#allocation3 + $0x78] sm:$0xff] %vm1624_vm4, %v1607_v16 }
 0x195   : > { %v2105_v17 = vpop.permute.xlu0 %2104 }
 0x196   : > { %v1699_v57 = vpop.permute.xlu1 %1698  ;;  %2139 = vst.msk [vmem:[#allocation3 + $0x70] sm:$0xff] %vm2124_vm8, %v2105_v17 }
 0x197   : > { %1732 = vst.msk [vmem:[#allocation3 + $0x78] sm:$0xff] %vm1716_vm5, %v1699_v57 }
 0x199   : > { %v2183_v15 = vpop.permute.xlu0 %2182 }
 0x19a   : > { %v2029_v42 = vpop.permute.xlu1 %2028  ;;  %2217 = vst.msk [vmem:[#allocation3 + $0x70] sm:$0xff] %vm2202_vm9, %v2183_v15 }
 0x19b   : > { %2062 = vst.msk [vmem:[#allocation3 + $0x78] sm:$0xff] %vm2046_vm7, %v2029_v42 }
 0x19e   : > { %v2107_v40 = vpop.permute.xlu1 %2106 }
 0x19f   : > { %2140 = vst.msk [vmem:[#allocation3 + $0x78] sm:$0xff] %vm2124_vm8, %v2107_v40 }
 0x1a1   : > { %v2233_v20 = vld [vmem:[#allocation3 + $0x70] sm:$0xff] }
 0x1a2   : > { %v2185_v21 = vpop.permute.xlu1 %2184  ;;  %2803 = vmatprep.mubr.msk.bf16.mxu1 %vm2255_vm0, %v2233_v20 }
 0x1a3   : > { %2218 = vst.msk [vmem:[#allocation3 + $0x78] sm:$0xff] %vm2202_vm9, %v2185_v21 }
 0x1a5   : > { %v2777_v22 = vpop.f32.mrb[0].mxu0 }
 0x1a6   : > { %v2342_v37 = vpop.f32.mrb[1].mxu0  ;;  %v2509_v63 = vmul.f32 %v2777_v22, %v2777_v22 }
 0x1a7   : > { %v2778_v23 = vpop.f32.mrb[2].mxu0  ;;  %v2507_v25 = vmul.f32 %v2342_v37, %v2342_v37 }
 0x1a8   : > { %v2345_v1 = vpop.f32.mrb[3].mxu0  ;;  %v2510_v35 = vmul.f32 %v2778_v23, %v2778_v23 }
 0x1a9   : > { %v2469_v26 = vadd.f32 %v2345_v1, %v2342_v37  ;;  %v2508_v7 = vmul.f32 %v2345_v1, %v2345_v1 }
 0x1aa   : > { %v2234_v8 = vld [vmem:[#allocation3 + $0x78] sm:$0xff] }
 0x1ab   : > { %v2470_v9 = vadd.f32 %v2777_v22, %v2469_v26  ;;  %v2539_v18 = vadd.f32 %v2508_v7, %v2507_v25  ;;  %2804 = vmatmul.mubr.msk.bf16.gmra.mrb[12].mxu1 %vm2255_vm0, %v2234_v8 }
 0x1ad   : > { %v2540_v30 = vadd.f32 %v2539_v18, %v2509_v63  ;;  %v2471_v19 = vadd.f32 %v2778_v23, %v2470_v9 }
 0x1af   : > { %v2541_v62 = vadd.f32 %v2540_v30, %v2510_v35 }
 0x1bb   : > { %v2781_v29 = vpop.f32.mrb[4].mxu0 }
 0x1bc   : > { %v2358_v3 = vpop.f32.mrb[5].mxu0  ;;  %v2513_v50 = vmul.f32 %v2781_v29, %v2781_v29 }
 0x1bd   : > { %v2472_v45 = vadd.f32 %v2471_v19, %v2358_v3  ;;  %v2511_v46 = vmul.f32 %v2358_v3, %v2358_v3  ;;  %v2782_v55 = vpop.f32.mrb[6].mxu0 }
 0x1be   : > { %v2361_v53 = vpop.f32.mrb[7].mxu0  ;;  %v2514_v14 = vmul.f32 %v2782_v55, %v2782_v55 }
 0x1bf   : > { %v2542_v10 = vadd.f32 %v2541_v62, %v2511_v46  ;;  %v2473_v24 = vadd.f32 %v2472_v45, %v2361_v53  ;;  %v2512_v32 = vmul.f32 %v2361_v53, %v2361_v53 }
 0x1c1   : > { %v2474_v41 = vadd.f32 %v2781_v29, %v2473_v24  ;;  %v2543_v27 = vadd.f32 %v2542_v10, %v2512_v32 }
 0x1c3   : > { %v2544_v56 = vadd.f32 %v2543_v27, %v2513_v50  ;;  %v2475_v43 = vadd.f32 %v2782_v55, %v2474_v41 }
 0x1c5   : > { %v2545_v59 = vadd.f32 %v2544_v56, %v2514_v14 }
 0x1db   : > { %v2785_v0 = vpop.f32.mrb[8].mxu0 }
 0x1dc   : > { %v2374_v2 = vpop.f32.mrb[9].mxu0  ;;  %v2517_v28 = vmul.f32 %v2785_v0, %v2785_v0 }
 0x1dd   : > { %v2476_v4 = vadd.f32 %v2475_v43, %v2374_v2  ;;  %v2515_v5 = vmul.f32 %v2374_v2, %v2374_v2  ;;  %v2786_v47 = vpop.f32.mrb[10].mxu0 }
 0x1de   : > { %v2377_v12 = vpop.f32.mrb[11].mxu0  ;;  %v2518_v11 = vmul.f32 %v2786_v47, %v2786_v47 }
 0x1df   : > { %v2546_v49 = vadd.f32 %v2545_v59, %v2515_v5  ;;  %v2477_v38 = vadd.f32 %v2476_v4, %v2377_v12  ;;  %v2516_v6 = vmul.f32 %v2377_v12, %v2377_v12 }
 0x1e1   : > { %v2478_v33 = vadd.f32 %v2785_v0, %v2477_v38  ;;  %v2547_v34 = vadd.f32 %v2546_v49, %v2516_v6 }
 0x1e3   : > { %v2548_v39 = vadd.f32 %v2547_v34, %v2517_v28  ;;  %v2479_v58 = vadd.f32 %v2786_v47, %v2478_v33 }
 0x1e5   : > { %v2549_v36 = vadd.f32 %v2548_v39, %v2518_v11 }
 0x1fb   : > { %v2789_v51 = vpop.f32.mrb[12].mxu0 }
 0x1fc   : > { %v2390_v52 = vpop.f32.mrb[13].mxu0  ;;  %v2521_v44 = vmul.f32 %v2789_v51, %v2789_v51 }
 0x1fd   : > { %v2480_v54 = vadd.f32 %v2479_v58, %v2390_v52  ;;  %v2519_v60 = vmul.f32 %v2390_v52, %v2390_v52  ;;  %v2790_v48 = vpop.f32.mrb[14].mxu0 }
 0x1fe   : > { %v2393_v31 = vpop.f32.mrb[15].mxu0  ;;  %v2522_v17 = vmul.f32 %v2790_v48, %v2790_v48 }
 0x1ff   : > { %v2550_v61 = vadd.f32 %v2549_v36, %v2519_v60  ;;  %v2481_v13 = vadd.f32 %v2480_v54, %v2393_v31  ;;  %v2520_v16 = vmul.f32 %v2393_v31, %v2393_v31 }
 0x201   : > { %v2482_v57 = vadd.f32 %v2789_v51, %v2481_v13  ;;  %v2551_v15 = vadd.f32 %v2550_v61, %v2520_v16 }
 0x203   : > { %v2552_v42 = vadd.f32 %v2551_v15, %v2521_v44  ;;  %v2483_v40 = vadd.f32 %v2790_v48, %v2482_v57 }
 0x205   : > { %v2553_v20 = vadd.f32 %v2552_v42, %v2522_v17 }
 0x21b   : > { %v2793_v21 = vpop.f32.mrb[0].mxu1 }
 0x21c   : > { %v2406_v22 = vpop.f32.mrb[1].mxu1  ;;  %v2525_v26 = vmul.f32 %v2793_v21, %v2793_v21 }
 0x21d   : > { %v2484_v37 = vadd.f32 %v2483_v40, %v2406_v22  ;;  %v2523_v23 = vmul.f32 %v2406_v22, %v2406_v22  ;;  %v2794_v1 = vpop.f32.mrb[2].mxu1 }
 0x21e   : > { %v2409_v25 = vpop.f32.mrb[3].mxu1  ;;  %v2526_v9 = vmul.f32 %v2794_v1, %v2794_v1 }
 0x21f   : > { %v2554_v7 = vadd.f32 %v2553_v20, %v2523_v23  ;;  %v2485_v8 = vadd.f32 %v2484_v37, %v2409_v25  ;;  %v2524_v63 = vmul.f32 %v2409_v25, %v2409_v25 }
 0x221   : > { %v2486_v18 = vadd.f32 %v2793_v21, %v2485_v8  ;;  %v2555_v35 = vadd.f32 %v2554_v7, %v2524_v63 }
 0x223   : > { %v2556_v30 = vadd.f32 %v2555_v35, %v2525_v26  ;;  %v2487_v19 = vadd.f32 %v2794_v1, %v2486_v18 }
 0x225   : > { %v2557_v62 = vadd.f32 %v2556_v30, %v2526_v9 }
 0x23b   : > { %v2797_v29 = vpop.f32.mrb[4].mxu1 }
 0x23c   : > { %v2422_v3 = vpop.f32.mrb[5].mxu1  ;;  %v2529_v50 = vmul.f32 %v2797_v29, %v2797_v29 }
 0x23d   : > { %v2488_v45 = vadd.f32 %v2487_v19, %v2422_v3  ;;  %v2527_v46 = vmul.f32 %v2422_v3, %v2422_v3  ;;  %v2798_v55 = vpop.f32.mrb[6].mxu1 }
 0x23e   : > { %v2425_v53 = vpop.f32.mrb[7].mxu1  ;;  %v2530_v14 = vmul.f32 %v2798_v55, %v2798_v55 }
 0x23f   : > { %v2558_v10 = vadd.f32 %v2557_v62, %v2527_v46  ;;  %v2489_v24 = vadd.f32 %v2488_v45, %v2425_v53  ;;  %v2528_v32 = vmul.f32 %v2425_v53, %v2425_v53 }
 0x241   : > { %v2490_v41 = vadd.f32 %v2797_v29, %v2489_v24  ;;  %v2559_v27 = vadd.f32 %v2558_v10, %v2528_v32 }
 0x243   : > { %v2560_v56 = vadd.f32 %v2559_v27, %v2529_v50  ;;  %v2491_v43 = vadd.f32 %v2798_v55, %v2490_v41 }
 0x245   : > { %v2561_v59 = vadd.f32 %v2560_v56, %v2530_v14 }
 0x25b   : > { %v2801_v0 = vpop.f32.mrb[8].mxu1 }
 0x25c   : > { %v2438_v2 = vpop.f32.mrb[9].mxu1  ;;  %v2533_v28 = vmul.f32 %v2801_v0, %v2801_v0 }
 0x25d   : > { %v2492_v4 = vadd.f32 %v2491_v43, %v2438_v2  ;;  %v2531_v5 = vmul.f32 %v2438_v2, %v2438_v2  ;;  %v2802_v47 = vpop.f32.mrb[10].mxu1 }
 0x25e   : > { %v2441_v12 = vpop.f32.mrb[11].mxu1  ;;  %v2534_v11 = vmul.f32 %v2802_v47, %v2802_v47 }
 0x25f   : > { %v2562_v49 = vadd.f32 %v2561_v59, %v2531_v5  ;;  %v2493_v38 = vadd.f32 %v2492_v4, %v2441_v12  ;;  %v2532_v6 = vmul.f32 %v2441_v12, %v2441_v12 }
 0x261   : > { %v2494_v33 = vadd.f32 %v2801_v0, %v2493_v38  ;;  %v2563_v34 = vadd.f32 %v2562_v49, %v2532_v6 }
 0x263   : > { %v2564_v39 = vadd.f32 %v2563_v34, %v2533_v28  ;;  %v2495_v58 = vadd.f32 %v2802_v47, %v2494_v33 }
 0x265   : > { %v2565_v36 = vadd.f32 %v2564_v39, %v2534_v11 }
 0x27e   : > { %v2805_v51 = vpop.f32.mrb[12].mxu1 }
 0x27f   : > { %v2454_v52 = vpop.f32.mrb[13].mxu1  ;;  %v2537_v16 = vmul.f32 %v2805_v51, %v2805_v51 }
 0x280   : > { %v2496_v54 = vadd.f32 %v2495_v58, %v2454_v52  ;;  %v2535_v60 = vmul.f32 %v2454_v52, %v2454_v52  ;;  %v2806_v48 = vpop.f32.mrb[14].mxu1 }
 0x281   : > { %v2457_v31 = vpop.f32.mrb[15].mxu1  ;;  %v2538_v15 = vmul.f32 %v2806_v48, %v2806_v48 }
 0x282   : > { %v2566_v44 = vadd.f32 %v2565_v36, %v2535_v60  ;;  %v2497_v61 = vadd.f32 %v2496_v54, %v2457_v31  ;;  %v2536_v13 = vmul.f32 %v2457_v31, %v2457_v31 }
 0x284   : > { %v2498_v17 = vadd.f32 %v2805_v51, %v2497_v61  ;;  %v2567_v57 = vadd.f32 %v2566_v44, %v2536_v13 }
 0x286   : > { %v2499_v42 = vadd.f32 %v2806_v48, %v2498_v17  ;;  %v2568_v40 = vadd.f32 %v2567_v57, %v2537_v16 }
 0x288   : > { %v2500_v20 = vrot.slane %v2499_v42, 4  ;;  %v2569_v21 = vadd.f32 %v2568_v40, %v2538_v15 }
 0x28a   : > { %v2501_v22 = vadd.f32 %v2500_v20, %v2499_v42  ;;  %v2570_v37 = vrot.slane %v2569_v21, 4 }
 0x28c   : > { %v2502_v23 = vrot.slane %v2501_v22, 2  ;;  %v2571_v1 = vadd.f32 %v2570_v37, %v2569_v21 }
 0x28e   : > { %v2503_v25 = vadd.f32 %v2502_v23, %v2501_v22  ;;  %v2572_v26 = vrot.slane %v2571_v1, 2 }
 0x290   : > { %v2504_v7 = vrot.slane %v2503_v25, 1  ;;  %v2573_v8 = vadd.f32 %v2572_v26, %v2571_v1 }
 0x292   : > { %v2505_v63 = vadd.f32 %v2504_v7, %v2503_v25  ;;  %v2574_v9 = vrot.slane %v2573_v8, 1 }
 0x294   : > { %2506 = vst [vmem:[%s172_s7] sm:$0x1] %v2505_v63  ;;  %v2575_v18 = vadd.f32 %v2574_v9, %v2573_v8 }
 0x296   : > { %2576 = vst [vmem:[%s175_s10] sm:$0x1] %v2575_v18 }
 0x297 PF: > { %s14_s12 = sadd.s32 1, %s2859_s12  }
 0x298   : > { %p11_p4 = scmp.ge.s32.totalorder %s14_s12, 4  }
 0x29a   :  { %13 = sbr.rel (!%p11_p4) target bundleno = 1 (0x1), region = 71 }

</bundles_post_ra>
